<compile_context>
chip_gen: v7x
topology: tpu7x:2x2x1
jax: 0.10.0
libtpu: 0.0.40
codegen_flags: <defaults>
</compile_context>

<pallas_src>
import inspect
from functools import partial

import jax
import jax.numpy as jnp
from jax import lax
from jax.experimental import pallas as pl
from jax.experimental.pallas import tpu as pltpu

NEG_SLOPE = 0.05
BN_EPS = 1e-5


def _lrelu(v):
    return jnp.where(v >= 0, v, NEG_SLOPE * v)


# ---------------------------------------------------------------------------
# Fused kernel: 3 x (dw3x3 + pw1x1 + LReLU) -> CCA -> c5 1x1 -> + residual.
# Feature maps live in the lane-dense (n_img*H, W*C) layout throughout; all
# heavy work is 2-D MXU matmuls.
# ---------------------------------------------------------------------------
def rlfb1_kernel(x_ref, sup_ref, sdn_ref,
                 m10_ref, m11_ref, m12_ref, pb1_ref,
                 m20_ref, m21_ref, m22_ref, pb2_ref,
                 m30_ref, m31_ref, m32_ref, pb3_ref,
                 w1_ref, b1_ref, w2f_ref, b2f_ref,
                 g_ref, gt_ref, w5_ref, b5_ref,
                 out_ref, *, n_img):
    rows, WC = out_ref.shape
    C = g_ref.shape[1]
    H = rows // n_img
    W = WC // C
    inv_hw = 1.0 / float(H * W)

    x = x_ref[...]                       # (rows, WC) f32
    sup = sup_ref[...]                   # (rows, rows) bf16: row r <- row r-1
    sdn = sdn_ref[...]                   # (rows, rows) bf16: row r <- row r+1

    def stage(a, m_up_ref, m_mid_ref, m_dn_ref, pb_ref):
        a_bf = a.astype(jnp.bfloat16)
        # H-halo as 0/1 selector matmuls (rows at per-image edges are zero).
        a_up = jnp.dot(sup, a_bf,
                       preferred_element_type=jnp.float32).astype(jnp.bfloat16)
        a_dn = jnp.dot(sdn, a_bf,
                       preferred_element_type=jnp.float32).astype(jnp.bfloat16)
        # dw3x3 (+bias) and pw1x1 fused into banded block-diagonal matrices.
        y = jnp.dot(a_bf, m_mid_ref[...], preferred_element_type=jnp.float32)
        y = y + jnp.dot(a_up, m_up_ref[...], preferred_element_type=jnp.float32)
        y = y + jnp.dot(a_dn, m_dn_ref[...], preferred_element_type=jnp.float32)
        return _lrelu(y + pb_ref[...])

    h = stage(x, m10_ref, m11_ref, m12_ref, pb1_ref)
    h = stage(h, m20_ref, m21_ref, m22_ref, pb2_ref)
    h = stage(h, m30_ref, m31_ref, m32_ref, pb3_ref)

    # ---- CCA: per-image per-channel (std + mean), squeeze/excite, gate -----
    g = g_ref[...]                       # (WC, C): sum lanes over W per channel
    gt = gt_ref[...]                     # (C, WC): broadcast channel over W
    gated = []
    for n in range(n_img):               # n_img is small & static -> unrolled
        hs = h[n * H:(n + 1) * H, :]                                   # (H, WC)
        mean_c = jnp.dot(jnp.sum(hs, axis=0, keepdims=True), g,
                         preferred_element_type=jnp.float32) * inv_hw  # (1, C)
        d = hs - jnp.dot(mean_c, gt, preferred_element_type=jnp.float32)
        var_c = jnp.dot(jnp.sum(d * d, axis=0, keepdims=True), g,
                        preferred_element_type=jnp.float32) * inv_hw   # (1, C)
        yc = jnp.sqrt(var_c) + mean_c                                  # std+mean
        # squeeze -> LReLU -> excite (BatchNorm folded) -> sigmoid
        z1 = jnp.sum(w1_ref[...] * yc, axis=1, keepdims=True) + b1_ref[...]
        z1 = _lrelu(z1)                                                # (Cr, 1)
        z2 = jnp.sum(w2f_ref[...] * z1, axis=0, keepdims=True) + b2f_ref[...]
        att = 1.0 / (1.0 + jnp.exp(-z2))                               # (1, C)
        att_wc = jnp.dot(att, gt, preferred_element_type=jnp.float32)  # (1, WC)
        gated.append(hs * att_wc)                                      # (H, WC)
    h_att = gated[0] if n_img == 1 else jnp.concatenate(gated, axis=0)

    # c5 (1x1 conv, block-diagonal) on attention-gated features + residual.
    c5 = jnp.dot(h_att.astype(jnp.bfloat16), w5_ref[...],
                 preferred_element_type=jnp.float32) + b5_ref[...]
    out_ref[...] = c5 + x


# ---------------------------------------------------------------------------
# Host-side parameter repacking: lane-dense, dw-into-pw folded, bias/BN folded.
# ---------------------------------------------------------------------------
def _prepare_kernel_params(params, H, W, C, n_img):
    WC = W * C
    rows = n_img * H
    f32 = jnp.float32
    bf16 = jnp.bfloat16

    # Per-image H-halo selector matrices: row r picks row r-1 / r+1, with the
    # per-image boundary rows zeroed (== zero padding of the 3x3 conv).
    r = jnp.arange(rows)
    in_row = r % H
    keep_up = (in_row != 0).astype(f32)[:, None]
    keep_dn = (in_row != H - 1).astype(f32)[:, None]
    sup = (jnp.eye(rows, k=-1, dtype=f32) * keep_up).astype(bf16)
    sdn = (jnp.eye(rows, k=1, dtype=f32) * keep_dn).astype(bf16)

    eye_w = jnp.eye(W, dtype=f32)

    def stage(sp):
        dww = sp["dww"]                          # (3, 3, C) depthwise weights
        pwwt = sp["pwwt"]                        # (C, C) pointwise (in, out)
        mats = []
        for kh in range(3):
            m = jnp.zeros((WC, WC), f32)
            for kw in range(3):
                blk = dww[kh, kw][:, None] * pwwt            # (C_in, C_out)
                m = m + jnp.kron(jnp.eye(W, k=-(kw - 1), dtype=f32), blk)
            mats.append(m.astype(bf16))                       # banded (WC, WC)
        pb = jnp.tile(sp["dwb"] @ pwwt, (1, W))                # (1, WC)
        return mats + [pb]

    ops = [sup, sdn]
    for name in ("c1", "c2", "c3"):
        ops += stage(params[name])

    g = jnp.tile(jnp.eye(C, dtype=f32), (W, 1))                # (WC, C)
    gt = jnp.tile(jnp.eye(C, dtype=f32), (1, W))               # (C, WC)
    w2f = params["w2t"] * params["bns"]                        # fold BN scale
    b2f = params["b2"] * params["bns"] + params["bnb"]         # fold BN shift
    w5_bd = jnp.kron(eye_w, params["w5t"]).astype(bf16)        # (WC, WC)
    b5t = jnp.tile(params["b5"], (1, W))                       # (1, WC)
    ops += [params["w1"], params["b1"], w2f, b2f, g, gt, w5_bd, b5t]
    return ops


def _num_grid_steps(batch):
    """2 'parallel' grid steps on v7x (2 TensorCores/chip), else 1 step so the
    whole batch is one block (bigger matmul M, no per-step overhead)."""
    try:
        kind = jax.devices()[0].device_kind.lower()
    except Exception:
        kind = ""
    if ("v7" in kind or "tpu7" in kind) and batch >= 2 and batch % 2 == 0:
        return 2
    return 1


def _const_spec(p):
    # Constant-across-the-grid inputs: single-buffer them when supported.
    kwargs = {}
    try:
        if hasattr(pl, "Buffered") and \
           "pipeline_mode" in inspect.signature(pl.BlockSpec).parameters:
            kwargs["pipeline_mode"] = pl.Buffered(1)
    except Exception:
        kwargs = {}
    return pl.BlockSpec(p.shape, lambda i: (0, 0), **kwargs)


@jax.jit
def rlfb1_forward(x_nchw, params):
    x = jnp.transpose(x_nchw, (0, 2, 3, 1)).astype(jnp.float32)   # NCHW -> NHWC
    N, H, W, C = x.shape
    WC = W * C
    steps = _num_grid_steps(N)            # static, resolved at trace time
    n_img = N // steps
    rows = n_img * H

    xf = x.reshape(N * H, WC)             # lane-dense: row = n*H + h, lane = w*C + c
    kparams = _prepare_kernel_params(params, H, W, C, n_img)

    feat_spec = pl.BlockSpec((rows, WC), lambda i: (i, 0))

    out = pl.pallas_call(
        partial(rlfb1_kernel, n_img=n_img),
        out_shape=jax.ShapeDtypeStruct((N * H, WC), jnp.float32),
        grid=(steps,),
        in_specs=[feat_spec] + [_const_spec(p) for p in kparams],
        out_specs=feat_spec,
        input_output_aliases={0: 0},      # residual input reuses the out buffer
        compiler_params=pltpu.CompilerParams(
            dimension_semantics=("parallel",),
            vmem_limit_bytes=32 * 1024 * 1024),
    )(xf, *kparams)

    return jnp.transpose(out.reshape(N, H, W, C), (0, 3, 1, 2))   # -> NCHW


# ---------------------------------------------------------------------------
# Deterministic parameter init (shapes follow the PyTorch module's __init__).
# ---------------------------------------------------------------------------
def init_params(key, C, reduction=16):
    Cr = max(C // reduction, 1)
    ks = jax.random.split(key, 9)

    def nrm(k, shape, s=0.1):
        return s * jax.random.normal(k, shape, jnp.float32)

    def stage_params(k):
        k1, k2, k3 = jax.random.split(k, 3)
        return dict(dww=nrm(k1, (3, 3, C)),          # depthwise 3x3 weight
                    dwb=nrm(k2, (1, C), 0.01),       # depthwise bias
                    pwwt=nrm(k3, (C, C)).T)          # pointwise weight (in, out)

    bn_scale = float(1.0 / (1.0 + BN_EPS) ** 0.5)    # gamma=1, running_var=1
    return dict(
        c1=stage_params(ks[0]),
        c2=stage_params(ks[1]),
        c3=stage_params(ks[2]),
        w1=nrm(ks[3], (Cr, C)),                      # CCA squeeze conv weight
        b1=nrm(ks[4], (Cr, 1), 0.01),
        w2t=nrm(ks[5], (C, Cr)).T,                   # CCA excite conv weight (T)
        b2=nrm(ks[6], (1, C), 0.01),
        bns=jnp.full((1, C), bn_scale, jnp.float32),  # folded BN scale
        bnb=jnp.zeros((1, C), jnp.float32),           # folded BN shift
        w5t=nrm(ks[7], (C, C)).T,                     # c5 1x1 weight (in, out)
        b5=nrm(ks[8], (1, C), 0.01),
    )


# ---------------------------------------------------------------------------
# Pure-JAX f32 reference (correctness check only).
# ---------------------------------------------------------------------------
def _ref_forward(x_nchw, params):
    x = jnp.transpose(x_nchw, (0, 2, 3, 1)).astype(jnp.float32)
    N, H, W, C = x.shape

    def stage(inp, sp):
        kern = sp["dww"][:, :, None, :]               # (3,3,1,C) HWIO grouped
        dw = lax.conv_general_dilated(
            inp, kern, window_strides=(1, 1), padding=((1, 1), (1, 1)),
            dimension_numbers=("NHWC", "HWIO", "NHWC"),
            feature_group_count=C) + sp["dwb"].reshape(1, 1, 1, C)
        pw = jnp.einsum("nhwi,io->nhwo", dw, sp["pwwt"])
        return jnp.where(pw >= 0, pw, NEG_SLOPE * pw)

    h = stage(x, params["c1"])
    h = stage(h, params["c2"])
    h = stage(h, params["c3"])
    mean = jnp.mean(h, axis=(1, 2), keepdims=True)
    std = jnp.sqrt(jnp.mean((h - mean) ** 2, axis=(1, 2), keepdims=True))
    y = (std + mean)[:, 0, 0, :]                      # (N, C)
    z1 = jnp.einsum("nc,rc->nr", y, params["w1"]) + params["b1"][:, 0][None, :]
    z1 = jnp.where(z1 >= 0, z1, NEG_SLOPE * z1)
    z2 = jnp.einsum("nr,rc->nc", z1, params["w2t"]) + params["b2"]
    z2 = z2 * params["bns"] + params["bnb"]
    s = jax.nn.sigmoid(z2)[:, None, None, :]
    c5 = jnp.einsum("nhwi,io->nhwo", h * s, params["w5t"]) \
        + params["b5"].reshape(1, 1, 1, C)
    out = c5 + x
    return jnp.transpose(out, (0, 3, 1, 2))


if __name__ == "__main__":
    key = jax.random.PRNGKey(0)
    kx, kp = jax.random.split(key)
    # C must be >= reduction (16) so the CCA squeeze has >= 1 channel.
    N, C, H, W = 2, 16, 16, 16
    x = jax.random.normal(kx, (N, C, H, W), jnp.float32)
    params = init_params(kp, C)

    out = jax.block_until_ready(rlfb1_forward(x, params))
    ref = jax.block_until_ready(_ref_forward(x, params))

    assert out.shape == (N, C, H, W)
    err = float(jnp.max(jnp.abs(out - ref)))
    # tolerance loosened vs. pure f32: stage/c5 matmul inputs are bf16
    if not (err < 2e-2):
        raise AssertionError(f"kernel/reference mismatch: max abs err = {err}")
    print("KERNEL_OK")
</pallas_src>

<mosaic_0001>
module attributes {stable_mosaic.version = 11 : i64} {
  func.func @rlfb1_kernel(%arg0: i32, %arg1: memref<32x256xf32, #tpu.memory_space<vmem>>, %arg2: memref<32x32xbf16, #tpu.memory_space<vmem>>, %arg3: memref<32x32xbf16, #tpu.memory_space<vmem>>, %arg4: memref<256x256xbf16, #tpu.memory_space<vmem>>, %arg5: memref<256x256xbf16, #tpu.memory_space<vmem>>, %arg6: memref<256x256xbf16, #tpu.memory_space<vmem>>, %arg7: memref<1x256xf32, #tpu.memory_space<vmem>>, %arg8: memref<256x256xbf16, #tpu.memory_space<vmem>>, %arg9: memref<256x256xbf16, #tpu.memory_space<vmem>>, %arg10: memref<256x256xbf16, #tpu.memory_space<vmem>>, %arg11: memref<1x256xf32, #tpu.memory_space<vmem>>, %arg12: memref<256x256xbf16, #tpu.memory_space<vmem>>, %arg13: memref<256x256xbf16, #tpu.memory_space<vmem>>, %arg14: memref<256x256xbf16, #tpu.memory_space<vmem>>, %arg15: memref<1x256xf32, #tpu.memory_space<vmem>>, %arg16: memref<1x16xf32, #tpu.memory_space<vmem>>, %arg17: memref<1x1xf32, #tpu.memory_space<vmem>>, %arg18: memref<1x16xf32, #tpu.memory_space<vmem>>, %arg19: memref<1x16xf32, #tpu.memory_space<vmem>>, %arg20: memref<256x16xf32, #tpu.memory_space<vmem>>, %arg21: memref<16x256xf32, #tpu.memory_space<vmem>>, %arg22: memref<256x256xbf16, #tpu.memory_space<vmem>>, %arg23: memref<1x256xf32, #tpu.memory_space<vmem>>, %arg24: memref<32x256xf32, #tpu.memory_space<vmem>>) attributes {dimension_semantics = [#tpu.dimension_semantics<parallel>], iteration_bounds = array<i64: 1>, scalar_prefetch = 0 : i64, scratch_operands = 0 : i64, tpu.core_type = #tpu.core_type<tc>, window_params = [{transform_indices = @transform_0, window_bounds = array<i64: 32, 256>}, {pipeline_mode = #tpu.pipeline_mode<synchronous>, transform_indices = @transform_1, window_bounds = array<i64: 32, 32>}, {pipeline_mode = #tpu.pipeline_mode<synchronous>, transform_indices = @transform_2, window_bounds = array<i64: 32, 32>}, {pipeline_mode = #tpu.pipeline_mode<synchronous>, transform_indices = @transform_3, window_bounds = array<i64: 256, 256>}, {pipeline_mode = #tpu.pipeline_mode<synchronous>, transform_indices = @transform_4, window_bounds = array<i64: 256, 256>}, {pipeline_mode = #tpu.pipeline_mode<synchronous>, transform_indices = @transform_5, window_bounds = array<i64: 256, 256>}, {pipeline_mode = #tpu.pipeline_mode<synchronous>, transform_indices = @transform_6, window_bounds = array<i64: 1, 256>}, {pipeline_mode = #tpu.pipeline_mode<synchronous>, transform_indices = @transform_7, window_bounds = array<i64: 256, 256>}, {pipeline_mode = #tpu.pipeline_mode<synchronous>, transform_indices = @transform_8, window_bounds = array<i64: 256, 256>}, {pipeline_mode = #tpu.pipeline_mode<synchronous>, transform_indices = @transform_9, window_bounds = array<i64: 256, 256>}, {pipeline_mode = #tpu.pipeline_mode<synchronous>, transform_indices = @transform_10, window_bounds = array<i64: 1, 256>}, {pipeline_mode = #tpu.pipeline_mode<synchronous>, transform_indices = @transform_11, window_bounds = array<i64: 256, 256>}, {pipeline_mode = #tpu.pipeline_mode<synchronous>, transform_indices = @transform_12, window_bounds = array<i64: 256, 256>}, {pipeline_mode = #tpu.pipeline_mode<synchronous>, transform_indices = @transform_13, window_bounds = array<i64: 256, 256>}, {pipeline_mode = #tpu.pipeline_mode<synchronous>, transform_indices = @transform_14, window_bounds = array<i64: 1, 256>}, {pipeline_mode = #tpu.pipeline_mode<synchronous>, transform_indices = @transform_15, window_bounds = array<i64: 1, 16>}, {pipeline_mode = #tpu.pipeline_mode<synchronous>, transform_indices = @transform_16, window_bounds = array<i64: 1, 1>}, {pipeline_mode = #tpu.pipeline_mode<synchronous>, transform_indices = @transform_17, window_bounds = array<i64: 1, 16>}, {pipeline_mode = #tpu.pipeline_mode<synchronous>, transform_indices = @transform_18, window_bounds = array<i64: 1, 16>}, {pipeline_mode = #tpu.pipeline_mode<synchronous>, transform_indices = @transform_19, window_bounds = array<i64: 256, 16>}, {pipeline_mode = #tpu.pipeline_mode<synchronous>, transform_indices = @transform_20, window_bounds = array<i64: 16, 256>}, {pipeline_mode = #tpu.pipeline_mode<synchronous>, transform_indices = @transform_21, window_bounds = array<i64: 256, 256>}, {pipeline_mode = #tpu.pipeline_mode<synchronous>, transform_indices = @transform_22, window_bounds = array<i64: 1, 256>}, {transform_indices = @transform_23, window_bounds = array<i64: 32, 256>}]} {
    %c0 = arith.constant 0 : index
    %c0_0 = arith.constant 0 : index
    %0 = vector.load %arg1[%c0, %c0_0] : memref<32x256xf32, #tpu.memory_space<vmem>>, vector<32x256xf32>
    %c0_1 = arith.constant 0 : index
    %c0_2 = arith.constant 0 : index
    %1 = vector.load %arg2[%c0_1, %c0_2] : memref<32x32xbf16, #tpu.memory_space<vmem>>, vector<32x32xbf16>
    %c0_3 = arith.constant 0 : index
    %c0_4 = arith.constant 0 : index
    %2 = vector.load %arg3[%c0_3, %c0_4] : memref<32x32xbf16, #tpu.memory_space<vmem>>, vector<32x32xbf16>
    %3 = arith.truncf %0 : vector<32x256xf32> to vector<32x256xbf16>
    %cst = arith.constant dense<0.000000e+00> : vector<32x256xf32>
    %4 = tpu.matmul %1, %3, %cst {dimension_numbers = #tpu.dot_dimension_numbers<[1], [0], [0], [1], [0, 0, 1, 1], [], []>} : vector<32x32xbf16>, vector<32x256xbf16>, vector<32x256xf32> -> vector<32x256xf32>
    %5 = arith.truncf %4 : vector<32x256xf32> to vector<32x256xbf16>
    %cst_5 = arith.constant dense<0.000000e+00> : vector<32x256xf32>
    %6 = tpu.matmul %2, %3, %cst_5 {dimension_numbers = #tpu.dot_dimension_numbers<[1], [0], [0], [1], [0, 0, 1, 1], [], []>} : vector<32x32xbf16>, vector<32x256xbf16>, vector<32x256xf32> -> vector<32x256xf32>
    %7 = arith.truncf %6 : vector<32x256xf32> to vector<32x256xbf16>
    %c0_6 = arith.constant 0 : index
    %c0_7 = arith.constant 0 : index
    %8 = vector.load %arg5[%c0_6, %c0_7] : memref<256x256xbf16, #tpu.memory_space<vmem>>, vector<256x256xbf16>
    %cst_8 = arith.constant dense<0.000000e+00> : vector<32x256xf32>
    %9 = tpu.matmul %3, %8, %cst_8 {dimension_numbers = #tpu.dot_dimension_numbers<[1], [0], [0], [1], [0, 0, 1, 1], [], []>} : vector<32x256xbf16>, vector<256x256xbf16>, vector<32x256xf32> -> vector<32x256xf32>
    %c0_9 = arith.constant 0 : index
    %c0_10 = arith.constant 0 : index
    %10 = vector.load %arg4[%c0_9, %c0_10] : memref<256x256xbf16, #tpu.memory_space<vmem>>, vector<256x256xbf16>
    %cst_11 = arith.constant dense<0.000000e+00> : vector<32x256xf32>
    %11 = tpu.matmul %5, %10, %cst_11 {dimension_numbers = #tpu.dot_dimension_numbers<[1], [0], [0], [1], [0, 0, 1, 1], [], []>} : vector<32x256xbf16>, vector<256x256xbf16>, vector<32x256xf32> -> vector<32x256xf32>
    %12 = arith.addf %9, %11 : vector<32x256xf32>
    %c0_12 = arith.constant 0 : index
    %c0_13 = arith.constant 0 : index
    %13 = vector.load %arg6[%c0_12, %c0_13] : memref<256x256xbf16, #tpu.memory_space<vmem>>, vector<256x256xbf16>
    %cst_14 = arith.constant dense<0.000000e+00> : vector<32x256xf32>
    %14 = tpu.matmul %7, %13, %cst_14 {dimension_numbers = #tpu.dot_dimension_numbers<[1], [0], [0], [1], [0, 0, 1, 1], [], []>} : vector<32x256xbf16>, vector<256x256xbf16>, vector<32x256xf32> -> vector<32x256xf32>
    %15 = arith.addf %12, %14 : vector<32x256xf32>
    %c0_15 = arith.constant 0 : index
    %c0_16 = arith.constant 0 : index
    %16 = vector.load %arg7[%c0_15, %c0_16] : memref<1x256xf32, #tpu.memory_space<vmem>>, vector<1x256xf32>
    %17 = vector.broadcast %16 : vector<1x256xf32> to vector<32x256xf32>
    %18 = arith.addf %15, %17 : vector<32x256xf32>
    %cst_17 = arith.constant 0.000000e+00 : f32
    %19 = vector.broadcast %cst_17 : f32 to vector<32x256xf32>
    %20 = arith.cmpf oge, %18, %19 : vector<32x256xf32>
    %cst_18 = arith.constant 5.000000e-02 : f32
    %21 = vector.broadcast %cst_18 : f32 to vector<32x256xf32>
    %22 = arith.mulf %21, %18 : vector<32x256xf32>
    %23 = arith.select %20, %18, %22 : vector<32x256xi1>, vector<32x256xf32>
    %24 = arith.truncf %23 : vector<32x256xf32> to vector<32x256xbf16>
    %cst_19 = arith.constant dense<0.000000e+00> : vector<32x256xf32>
    %25 = tpu.matmul %1, %24, %cst_19 {dimension_numbers = #tpu.dot_dimension_numbers<[1], [0], [0], [1], [0, 0, 1, 1], [], []>} : vector<32x32xbf16>, vector<32x256xbf16>, vector<32x256xf32> -> vector<32x256xf32>
    %26 = arith.truncf %25 : vector<32x256xf32> to vector<32x256xbf16>
    %cst_20 = arith.constant dense<0.000000e+00> : vector<32x256xf32>
    %27 = tpu.matmul %2, %24, %cst_20 {dimension_numbers = #tpu.dot_dimension_numbers<[1], [0], [0], [1], [0, 0, 1, 1], [], []>} : vector<32x32xbf16>, vector<32x256xbf16>, vector<32x256xf32> -> vector<32x256xf32>
    %28 = arith.truncf %27 : vector<32x256xf32> to vector<32x256xbf16>
    %c0_21 = arith.constant 0 : index
    %c0_22 = arith.constant 0 : index
    %29 = vector.load %arg9[%c0_21, %c0_22] : memref<256x256xbf16, #tpu.memory_space<vmem>>, vector<256x256xbf16>
    %cst_23 = arith.constant dense<0.000000e+00> : vector<32x256xf32>
    %30 = tpu.matmul %24, %29, %cst_23 {dimension_numbers = #tpu.dot_dimension_numbers<[1], [0], [0], [1], [0, 0, 1, 1], [], []>} : vector<32x256xbf16>, vector<256x256xbf16>, vector<32x256xf32> -> vector<32x256xf32>
    %c0_24 = arith.constant 0 : index
    %c0_25 = arith.constant 0 : index
    %31 = vector.load %arg8[%c0_24, %c0_25] : memref<256x256xbf16, #tpu.memory_space<vmem>>, vector<256x256xbf16>
    %cst_26 = arith.constant dense<0.000000e+00> : vector<32x256xf32>
    %32 = tpu.matmul %26, %31, %cst_26 {dimension_numbers = #tpu.dot_dimension_numbers<[1], [0], [0], [1], [0, 0, 1, 1], [], []>} : vector<32x256xbf16>, vector<256x256xbf16>, vector<32x256xf32> -> vector<32x256xf32>
    %33 = arith.addf %30, %32 : vector<32x256xf32>
    %c0_27 = arith.constant 0 : index
    %c0_28 = arith.constant 0 : index
    %34 = vector.load %arg10[%c0_27, %c0_28] : memref<256x256xbf16, #tpu.memory_space<vmem>>, vector<256x256xbf16>
    %cst_29 = arith.constant dense<0.000000e+00> : vector<32x256xf32>
    %35 = tpu.matmul %28, %34, %cst_29 {dimension_numbers = #tpu.dot_dimension_numbers<[1], [0], [0], [1], [0, 0, 1, 1], [], []>} : vector<32x256xbf16>, vector<256x256xbf16>, vector<32x256xf32> -> vector<32x256xf32>
    %36 = arith.addf %33, %35 : vector<32x256xf32>
    %c0_30 = arith.constant 0 : index
    %c0_31 = arith.constant 0 : index
    %37 = vector.load %arg11[%c0_30, %c0_31] : memref<1x256xf32, #tpu.memory_space<vmem>>, vector<1x256xf32>
    %38 = vector.broadcast %37 : vector<1x256xf32> to vector<32x256xf32>
    %39 = arith.addf %36, %38 : vector<32x256xf32>
    %cst_32 = arith.constant 0.000000e+00 : f32
    %40 = vector.broadcast %cst_32 : f32 to vector<32x256xf32>
    %41 = arith.cmpf oge, %39, %40 : vector<32x256xf32>
    %cst_33 = arith.constant 5.000000e-02 : f32
    %42 = vector.broadcast %cst_33 : f32 to vector<32x256xf32>
    %43 = arith.mulf %42, %39 : vector<32x256xf32>
    %44 = arith.select %41, %39, %43 : vector<32x256xi1>, vector<32x256xf32>
    %45 = arith.truncf %44 : vector<32x256xf32> to vector<32x256xbf16>
    %cst_34 = arith.constant dense<0.000000e+00> : vector<32x256xf32>
    %46 = tpu.matmul %1, %45, %cst_34 {dimension_numbers = #tpu.dot_dimension_numbers<[1], [0], [0], [1], [0, 0, 1, 1], [], []>} : vector<32x32xbf16>, vector<32x256xbf16>, vector<32x256xf32> -> vector<32x256xf32>
    %47 = arith.truncf %46 : vector<32x256xf32> to vector<32x256xbf16>
    %cst_35 = arith.constant dense<0.000000e+00> : vector<32x256xf32>
    %48 = tpu.matmul %2, %45, %cst_35 {dimension_numbers = #tpu.dot_dimension_numbers<[1], [0], [0], [1], [0, 0, 1, 1], [], []>} : vector<32x32xbf16>, vector<32x256xbf16>, vector<32x256xf32> -> vector<32x256xf32>
    %49 = arith.truncf %48 : vector<32x256xf32> to vector<32x256xbf16>
    %c0_36 = arith.constant 0 : index
    %c0_37 = arith.constant 0 : index
    %50 = vector.load %arg13[%c0_36, %c0_37] : memref<256x256xbf16, #tpu.memory_space<vmem>>, vector<256x256xbf16>
    %cst_38 = arith.constant dense<0.000000e+00> : vector<32x256xf32>
    %51 = tpu.matmul %45, %50, %cst_38 {dimension_numbers = #tpu.dot_dimension_numbers<[1], [0], [0], [1], [0, 0, 1, 1], [], []>} : vector<32x256xbf16>, vector<256x256xbf16>, vector<32x256xf32> -> vector<32x256xf32>
    %c0_39 = arith.constant 0 : index
    %c0_40 = arith.constant 0 : index
    %52 = vector.load %arg12[%c0_39, %c0_40] : memref<256x256xbf16, #tpu.memory_space<vmem>>, vector<256x256xbf16>
    %cst_41 = arith.constant dense<0.000000e+00> : vector<32x256xf32>
    %53 = tpu.matmul %47, %52, %cst_41 {dimension_numbers = #tpu.dot_dimension_numbers<[1], [0], [0], [1], [0, 0, 1, 1], [], []>} : vector<32x256xbf16>, vector<256x256xbf16>, vector<32x256xf32> -> vector<32x256xf32>
    %54 = arith.addf %51, %53 : vector<32x256xf32>
    %c0_42 = arith.constant 0 : index
    %c0_43 = arith.constant 0 : index
    %55 = vector.load %arg14[%c0_42, %c0_43] : memref<256x256xbf16, #tpu.memory_space<vmem>>, vector<256x256xbf16>
    %cst_44 = arith.constant dense<0.000000e+00> : vector<32x256xf32>
    %56 = tpu.matmul %49, %55, %cst_44 {dimension_numbers = #tpu.dot_dimension_numbers<[1], [0], [0], [1], [0, 0, 1, 1], [], []>} : vector<32x256xbf16>, vector<256x256xbf16>, vector<32x256xf32> -> vector<32x256xf32>
    %57 = arith.addf %54, %56 : vector<32x256xf32>
    %c0_45 = arith.constant 0 : index
    %c0_46 = arith.constant 0 : index
    %58 = vector.load %arg15[%c0_45, %c0_46] : memref<1x256xf32, #tpu.memory_space<vmem>>, vector<1x256xf32>
    %59 = vector.broadcast %58 : vector<1x256xf32> to vector<32x256xf32>
    %60 = arith.addf %57, %59 : vector<32x256xf32>
    %cst_47 = arith.constant 0.000000e+00 : f32
    %61 = vector.broadcast %cst_47 : f32 to vector<32x256xf32>
    %62 = arith.cmpf oge, %60, %61 : vector<32x256xf32>
    %cst_48 = arith.constant 5.000000e-02 : f32
    %63 = vector.broadcast %cst_48 : f32 to vector<32x256xf32>
    %64 = arith.mulf %63, %60 : vector<32x256xf32>
    %65 = arith.select %62, %60, %64 : vector<32x256xi1>, vector<32x256xf32>
    %c0_49 = arith.constant 0 : index
    %c0_50 = arith.constant 0 : index
    %66 = vector.load %arg20[%c0_49, %c0_50] : memref<256x16xf32, #tpu.memory_space<vmem>>, vector<256x16xf32>
    %c0_51 = arith.constant 0 : index
    %c0_52 = arith.constant 0 : index
    %67 = vector.load %arg21[%c0_51, %c0_52] : memref<16x256xf32, #tpu.memory_space<vmem>>, vector<16x256xf32>
    %68 = vector.extract_strided_slice %65 {offsets = [0, 0], sizes = [16, 256], strides = [1, 1]} : vector<32x256xf32> to vector<16x256xf32>
    %cst_53 = arith.constant dense<0.000000e+00> : vector<256xf32>
    %69 = vector.multi_reduction <add>, %68, %cst_53 [0] : vector<16x256xf32> to vector<256xf32>
    %70 = vector.shape_cast %69 : vector<256xf32> to vector<1x256xf32>
    %cst_54 = arith.constant dense<0.000000e+00> : vector<1x16xf32>
    %71 = tpu.matmul %70, %66, %cst_54 {dimension_numbers = #tpu.dot_dimension_numbers<[1], [0], [0], [1], [0, 0, 1, 1], [], []>} : vector<1x256xf32>, vector<256x16xf32>, vector<1x16xf32> -> vector<1x16xf32>
    %cst_55 = arith.constant 3.906250e-03 : f32
    %72 = vector.broadcast %cst_55 : f32 to vector<1x16xf32>
    %73 = arith.mulf %71, %72 : vector<1x16xf32>
    %cst_56 = arith.constant dense<0.000000e+00> : vector<1x256xf32>
    %74 = tpu.matmul %73, %67, %cst_56 {dimension_numbers = #tpu.dot_dimension_numbers<[1], [0], [0], [1], [0, 0, 1, 1], [], []>} : vector<1x16xf32>, vector<16x256xf32>, vector<1x256xf32> -> vector<1x256xf32>
    %75 = vector.broadcast %74 : vector<1x256xf32> to vector<16x256xf32>
    %76 = arith.subf %68, %75 : vector<16x256xf32>
    %77 = arith.mulf %76, %76 : vector<16x256xf32>
    %cst_57 = arith.constant dense<0.000000e+00> : vector<256xf32>
    %78 = vector.multi_reduction <add>, %77, %cst_57 [0] : vector<16x256xf32> to vector<256xf32>
    %79 = vector.shape_cast %78 : vector<256xf32> to vector<1x256xf32>
    %cst_58 = arith.constant dense<0.000000e+00> : vector<1x16xf32>
    %80 = tpu.matmul %79, %66, %cst_58 {dimension_numbers = #tpu.dot_dimension_numbers<[1], [0], [0], [1], [0, 0, 1, 1], [], []>} : vector<1x256xf32>, vector<256x16xf32>, vector<1x16xf32> -> vector<1x16xf32>
    %cst_59 = arith.constant 3.906250e-03 : f32
    %81 = vector.broadcast %cst_59 : f32 to vector<1x16xf32>
    %82 = arith.mulf %80, %81 : vector<1x16xf32>
    %83 = math.sqrt %82 : vector<1x16xf32>
    %84 = arith.addf %83, %73 : vector<1x16xf32>
    %c0_60 = arith.constant 0 : index
    %c0_61 = arith.constant 0 : index
    %85 = vector.load %arg16[%c0_60, %c0_61] : memref<1x16xf32, #tpu.memory_space<vmem>>, vector<1x16xf32>
    %86 = arith.mulf %85, %84 : vector<1x16xf32>
    %cst_62 = arith.constant dense<0.000000e+00> : vector<1xf32>
    %87 = vector.multi_reduction <add>, %86, %cst_62 [1] : vector<1x16xf32> to vector<1xf32>
    %88 = vector.shape_cast %87 : vector<1xf32> to vector<1x1xf32>
    %c0_63 = arith.constant 0 : index
    %c0_64 = arith.constant 0 : index
    %89 = vector.load %arg17[%c0_63, %c0_64] : memref<1x1xf32, #tpu.memory_space<vmem>>, vector<1x1xf32>
    %90 = arith.addf %88, %89 : vector<1x1xf32>
    %cst_65 = arith.constant 0.000000e+00 : f32
    %91 = vector.broadcast %cst_65 : f32 to vector<1x1xf32>
    %92 = arith.cmpf oge, %90, %91 : vector<1x1xf32>
    %cst_66 = arith.constant 5.000000e-02 : f32
    %93 = vector.broadcast %cst_66 : f32 to vector<1x1xf32>
    %94 = arith.mulf %93, %90 : vector<1x1xf32>
    %95 = arith.select %92, %90, %94 : vector<1x1xi1>, vector<1x1xf32>
    %c0_67 = arith.constant 0 : index
    %c0_68 = arith.constant 0 : index
    %96 = vector.load %arg18[%c0_67, %c0_68] : memref<1x16xf32, #tpu.memory_space<vmem>>, vector<1x16xf32>
    %97 = vector.broadcast %95 : vector<1x1xf32> to vector<1x16xf32>
    %98 = arith.mulf %96, %97 : vector<1x16xf32>
    %cst_69 = arith.constant dense<0.000000e+00> : vector<16xf32>
    %99 = vector.multi_reduction <add>, %98, %cst_69 [0] : vector<1x16xf32> to vector<16xf32>
    %100 = vector.shape_cast %99 : vector<16xf32> to vector<1x16xf32>
    %c0_70 = arith.constant 0 : index
    %c0_71 = arith.constant 0 : index
    %101 = vector.load %arg19[%c0_70, %c0_71] : memref<1x16xf32, #tpu.memory_space<vmem>>, vector<1x16xf32>
    %102 = arith.addf %100, %101 : vector<1x16xf32>
    %cst_72 = arith.constant 0.000000e+00 : f32
    %103 = vector.broadcast %cst_72 : f32 to vector<1x16xf32>
    %104 = arith.subf %103, %102 : vector<1x16xf32>
    %105 = math.exp %104 : vector<1x16xf32>
    %cst_73 = arith.constant 1.000000e+00 : f32
    %106 = vector.broadcast %cst_73 : f32 to vector<1x16xf32>
    %107 = arith.addf %106, %105 : vector<1x16xf32>
    %cst_74 = arith.constant 1.000000e+00 : f32
    %108 = vector.broadcast %cst_74 : f32 to vector<1x16xf32>
    %109 = arith.divf %108, %107 : vector<1x16xf32>
    %cst_75 = arith.constant dense<0.000000e+00> : vector<1x256xf32>
    %110 = tpu.matmul %109, %67, %cst_75 {dimension_numbers = #tpu.dot_dimension_numbers<[1], [0], [0], [1], [0, 0, 1, 1], [], []>} : vector<1x16xf32>, vector<16x256xf32>, vector<1x256xf32> -> vector<1x256xf32>
    %111 = vector.broadcast %110 : vector<1x256xf32> to vector<16x256xf32>
    %112 = arith.mulf %68, %111 : vector<16x256xf32>
    %113 = vector.extract_strided_slice %65 {offsets = [16, 0], sizes = [16, 256], strides = [1, 1]} : vector<32x256xf32> to vector<16x256xf32>
    %cst_76 = arith.constant dense<0.000000e+00> : vector<256xf32>
    %114 = vector.multi_reduction <add>, %113, %cst_76 [0] : vector<16x256xf32> to vector<256xf32>
    %115 = vector.shape_cast %114 : vector<256xf32> to vector<1x256xf32>
    %cst_77 = arith.constant dense<0.000000e+00> : vector<1x16xf32>
    %116 = tpu.matmul %115, %66, %cst_77 {dimension_numbers = #tpu.dot_dimension_numbers<[1], [0], [0], [1], [0, 0, 1, 1], [], []>} : vector<1x256xf32>, vector<256x16xf32>, vector<1x16xf32> -> vector<1x16xf32>
    %cst_78 = arith.constant 3.906250e-03 : f32
    %117 = vector.broadcast %cst_78 : f32 to vector<1x16xf32>
    %118 = arith.mulf %116, %117 : vector<1x16xf32>
    %cst_79 = arith.constant dense<0.000000e+00> : vector<1x256xf32>
    %119 = tpu.matmul %118, %67, %cst_79 {dimension_numbers = #tpu.dot_dimension_numbers<[1], [0], [0], [1], [0, 0, 1, 1], [], []>} : vector<1x16xf32>, vector<16x256xf32>, vector<1x256xf32> -> vector<1x256xf32>
    %120 = vector.broadcast %119 : vector<1x256xf32> to vector<16x256xf32>
    %121 = arith.subf %113, %120 : vector<16x256xf32>
    %122 = arith.mulf %121, %121 : vector<16x256xf32>
    %cst_80 = arith.constant dense<0.000000e+00> : vector<256xf32>
    %123 = vector.multi_reduction <add>, %122, %cst_80 [0] : vector<16x256xf32> to vector<256xf32>
    %124 = vector.shape_cast %123 : vector<256xf32> to vector<1x256xf32>
    %cst_81 = arith.constant dense<0.000000e+00> : vector<1x16xf32>
    %125 = tpu.matmul %124, %66, %cst_81 {dimension_numbers = #tpu.dot_dimension_numbers<[1], [0], [0], [1], [0, 0, 1, 1], [], []>} : vector<1x256xf32>, vector<256x16xf32>, vector<1x16xf32> -> vector<1x16xf32>
    %cst_82 = arith.constant 3.906250e-03 : f32
    %126 = vector.broadcast %cst_82 : f32 to vector<1x16xf32>
    %127 = arith.mulf %125, %126 : vector<1x16xf32>
    %128 = math.sqrt %127 : vector<1x16xf32>
    %129 = arith.addf %128, %118 : vector<1x16xf32>
    %c0_83 = arith.constant 0 : index
    %c0_84 = arith.constant 0 : index
    %130 = vector.load %arg16[%c0_83, %c0_84] : memref<1x16xf32, #tpu.memory_space<vmem>>, vector<1x16xf32>
    %131 = arith.mulf %130, %129 : vector<1x16xf32>
    %cst_85 = arith.constant dense<0.000000e+00> : vector<1xf32>
    %132 = vector.multi_reduction <add>, %131, %cst_85 [1] : vector<1x16xf32> to vector<1xf32>
    %133 = vector.shape_cast %132 : vector<1xf32> to vector<1x1xf32>
    %c0_86 = arith.constant 0 : index
    %c0_87 = arith.constant 0 : index
    %134 = vector.load %arg17[%c0_86, %c0_87] : memref<1x1xf32, #tpu.memory_space<vmem>>, vector<1x1xf32>
    %135 = arith.addf %133, %134 : vector<1x1xf32>
    %cst_88 = arith.constant 0.000000e+00 : f32
    %136 = vector.broadcast %cst_88 : f32 to vector<1x1xf32>
    %137 = arith.cmpf oge, %135, %136 : vector<1x1xf32>
    %cst_89 = arith.constant 5.000000e-02 : f32
    %138 = vector.broadcast %cst_89 : f32 to vector<1x1xf32>
    %139 = arith.mulf %138, %135 : vector<1x1xf32>
    %140 = arith.select %137, %135, %139 : vector<1x1xi1>, vector<1x1xf32>
    %c0_90 = arith.constant 0 : index
    %c0_91 = arith.constant 0 : index
    %141 = vector.load %arg18[%c0_90, %c0_91] : memref<1x16xf32, #tpu.memory_space<vmem>>, vector<1x16xf32>
    %142 = vector.broadcast %140 : vector<1x1xf32> to vector<1x16xf32>
    %143 = arith.mulf %141, %142 : vector<1x16xf32>
    %cst_92 = arith.constant dense<0.000000e+00> : vector<16xf32>
    %144 = vector.multi_reduction <add>, %143, %cst_92 [0] : vector<1x16xf32> to vector<16xf32>
    %145 = vector.shape_cast %144 : vector<16xf32> to vector<1x16xf32>
    %c0_93 = arith.constant 0 : index
    %c0_94 = arith.constant 0 : index
    %146 = vector.load %arg19[%c0_93, %c0_94] : memref<1x16xf32, #tpu.memory_space<vmem>>, vector<1x16xf32>
    %147 = arith.addf %145, %146 : vector<1x16xf32>
    %cst_95 = arith.constant 0.000000e+00 : f32
    %148 = vector.broadcast %cst_95 : f32 to vector<1x16xf32>
    %149 = arith.subf %148, %147 : vector<1x16xf32>
    %150 = math.exp %149 : vector<1x16xf32>
    %cst_96 = arith.constant 1.000000e+00 : f32
    %151 = vector.broadcast %cst_96 : f32 to vector<1x16xf32>
    %152 = arith.addf %151, %150 : vector<1x16xf32>
    %cst_97 = arith.constant 1.000000e+00 : f32
    %153 = vector.broadcast %cst_97 : f32 to vector<1x16xf32>
    %154 = arith.divf %153, %152 : vector<1x16xf32>
    %cst_98 = arith.constant dense<0.000000e+00> : vector<1x256xf32>
    %155 = tpu.matmul %154, %67, %cst_98 {dimension_numbers = #tpu.dot_dimension_numbers<[1], [0], [0], [1], [0, 0, 1, 1], [], []>} : vector<1x16xf32>, vector<16x256xf32>, vector<1x256xf32> -> vector<1x256xf32>
    %156 = vector.broadcast %155 : vector<1x256xf32> to vector<16x256xf32>
    %157 = arith.mulf %113, %156 : vector<16x256xf32>
    %158 = tpu.concatenate %112, %157 in 0 : vector<16x256xf32>, vector<16x256xf32> -> vector<32x256xf32>
    %159 = arith.truncf %158 : vector<32x256xf32> to vector<32x256xbf16>
    %c0_99 = arith.constant 0 : index
    %c0_100 = arith.constant 0 : index
    %160 = vector.load %arg22[%c0_99, %c0_100] : memref<256x256xbf16, #tpu.memory_space<vmem>>, vector<256x256xbf16>
    %cst_101 = arith.constant dense<0.000000e+00> : vector<32x256xf32>
    %161 = tpu.matmul %159, %160, %cst_101 {dimension_numbers = #tpu.dot_dimension_numbers<[1], [0], [0], [1], [0, 0, 1, 1], [], []>} : vector<32x256xbf16>, vector<256x256xbf16>, vector<32x256xf32> -> vector<32x256xf32>
    %c0_102 = arith.constant 0 : index
    %c0_103 = arith.constant 0 : index
    %162 = vector.load %arg23[%c0_102, %c0_103] : memref<1x256xf32, #tpu.memory_space<vmem>>, vector<1x256xf32>
    %163 = vector.broadcast %162 : vector<1x256xf32> to vector<32x256xf32>
    %164 = arith.addf %161, %163 : vector<32x256xf32>
    %165 = arith.addf %164, %0 : vector<32x256xf32>
    %c0_104 = arith.constant 0 : index
    %c0_105 = arith.constant 0 : index
    %166 = vector.load %arg24[%c0_104, %c0_105] : memref<32x256xf32, #tpu.memory_space<vmem>>, vector<32x256xf32>
    tpu.vector_store %arg24[%c0_104, %c0_105], %165 {strides = array<i32>} : memref<32x256xf32, #tpu.memory_space<vmem>>, vector<32x256xf32>,
    return
  }
  func.func @transform_0(%arg0: i32) -> (i32, i32) {
    %c0_i32 = arith.constant 0 : i32
    %c0_i32_0 = arith.constant 0 : i32
    return %arg0, %c0_i32 : i32, i32
  }
  func.func @transform_1(%arg0: i32) -> (i32, i32) {
    %c0_i32 = arith.constant 0 : i32
    %c0_i32_0 = arith.constant 0 : i32
    %c0_i32_1 = arith.constant 0 : i32
    return %c0_i32, %c0_i32_0 : i32, i32
  }
  func.func @transform_2(%arg0: i32) -> (i32, i32) {
    %c0_i32 = arith.constant 0 : i32
    %c0_i32_0 = arith.constant 0 : i32
    %c0_i32_1 = arith.constant 0 : i32
    return %c0_i32, %c0_i32_0 : i32, i32
  }
  func.func @transform_3(%arg0: i32) -> (i32, i32) {
    %c0_i32 = arith.constant 0 : i32
    %c0_i32_0 = arith.constant 0 : i32
    %c0_i32_1 = arith.constant 0 : i32
    return %c0_i32, %c0_i32_0 : i32, i32
  }
  func.func @transform_4(%arg0: i32) -> (i32, i32) {
    %c0_i32 = arith.constant 0 : i32
    %c0_i32_0 = arith.constant 0 : i32
    %c0_i32_1 = arith.constant 0 : i32
    return %c0_i32, %c0_i32_0 : i32, i32
  }
  func.func @transform_5(%arg0: i32) -> (i32, i32) {
    %c0_i32 = arith.constant 0 : i32
    %c0_i32_0 = arith.constant 0 : i32
    %c0_i32_1 = arith.constant 0 : i32
    return %c0_i32, %c0_i32_0 : i32, i32
  }
  func.func @transform_6(%arg0: i32) -> (i32, i32) {
    %c0_i32 = arith.constant 0 : i32
    %c0_i32_0 = arith.constant 0 : i32
    %c0_i32_1 = arith.constant 0 : i32
    return %c0_i32, %c0_i32_0 : i32, i32
  }
  func.func @transform_7(%arg0: i32) -> (i32, i32) {
    %c0_i32 = arith.constant 0 : i32
    %c0_i32_0 = arith.constant 0 : i32
    %c0_i32_1 = arith.constant 0 : i32
    return %c0_i32, %c0_i32_0 : i32, i32
  }
  func.func @transform_8(%arg0: i32) -> (i32, i32) {
    %c0_i32 = arith.constant 0 : i32
    %c0_i32_0 = arith.constant 0 : i32
    %c0_i32_1 = arith.constant 0 : i32
    return %c0_i32, %c0_i32_0 : i32, i32
  }
  func.func @transform_9(%arg0: i32) -> (i32, i32) {
    %c0_i32 = arith.constant 0 : i32
    %c0_i32_0 = arith.constant 0 : i32
    %c0_i32_1 = arith.constant 0 : i32
    return %c0_i32, %c0_i32_0 : i32, i32
  }
  func.func @transform_10(%arg0: i32) -> (i32, i32) {
    %c0_i32 = arith.constant 0 : i32
    %c0_i32_0 = arith.constant 0 : i32
    %c0_i32_1 = arith.constant 0 : i32
    return %c0_i32, %c0_i32_0 : i32, i32
  }
  func.func @transform_11(%arg0: i32) -> (i32, i32) {
    %c0_i32 = arith.constant 0 : i32
    %c0_i32_0 = arith.constant 0 : i32
    %c0_i32_1 = arith.constant 0 : i32
    return %c0_i32, %c0_i32_0 : i32, i32
  }
  func.func @transform_12(%arg0: i32) -> (i32, i32) {
    %c0_i32 = arith.constant 0 : i32
    %c0_i32_0 = arith.constant 0 : i32
    %c0_i32_1 = arith.constant 0 : i32
    return %c0_i32, %c0_i32_0 : i32, i32
  }
  func.func @transform_13(%arg0: i32) -> (i32, i32) {
    %c0_i32 = arith.constant 0 : i32
    %c0_i32_0 = arith.constant 0 : i32
    %c0_i32_1 = arith.constant 0 : i32
    return %c0_i32, %c0_i32_0 : i32, i32
  }
  func.func @transform_14(%arg0: i32) -> (i32, i32) {
    %c0_i32 = arith.constant 0 : i32
    %c0_i32_0 = arith.constant 0 : i32
    %c0_i32_1 = arith.constant 0 : i32
    return %c0_i32, %c0_i32_0 : i32, i32
  }
  func.func @transform_15(%arg0: i32) -> (i32, i32) {
    %c0_i32 = arith.constant 0 : i32
    %c0_i32_0 = arith.constant 0 : i32
    %c0_i32_1 = arith.constant 0 : i32
    return %c0_i32, %c0_i32_0 : i32, i32
  }
  func.func @transform_16(%arg0: i32) -> (i32, i32) {
    %c0_i32 = arith.constant 0 : i32
    %c0_i32_0 = arith.constant 0 : i32
    %c0_i32_1 = arith.constant 0 : i32
    return %c0_i32, %c0_i32_0 : i32, i32
  }
  func.func @transform_17(%arg0: i32) -> (i32, i32) {
    %c0_i32 = arith.constant 0 : i32
    %c0_i32_0 = arith.constant 0 : i32
    %c0_i32_1 = arith.constant 0 : i32
    return %c0_i32, %c0_i32_0 : i32, i32
  }
  func.func @transform_18(%arg0: i32) -> (i32, i32) {
    %c0_i32 = arith.constant 0 : i32
    %c0_i32_0 = arith.constant 0 : i32
    %c0_i32_1 = arith.constant 0 : i32
    return %c0_i32, %c0_i32_0 : i32, i32
  }
  func.func @transform_19(%arg0: i32) -> (i32, i32) {
    %c0_i32 = arith.constant 0 : i32
    %c0_i32_0 = arith.constant 0 : i32
    %c0_i32_1 = arith.constant 0 : i32
    return %c0_i32, %c0_i32_0 : i32, i32
  }
  func.func @transform_20(%arg0: i32) -> (i32, i32) {
    %c0_i32 = arith.constant 0 : i32
    %c0_i32_0 = arith.constant 0 : i32
    %c0_i32_1 = arith.constant 0 : i32
    return %c0_i32, %c0_i32_0 : i32, i32
  }
  func.func @transform_21(%arg0: i32) -> (i32, i32) {
    %c0_i32 = arith.constant 0 : i32
    %c0_i32_0 = arith.constant 0 : i32
    %c0_i32_1 = arith.constant 0 : i32
    return %c0_i32, %c0_i32_0 : i32, i32
  }
  func.func @transform_22(%arg0: i32) -> (i32, i32) {
    %c0_i32 = arith.constant 0 : i32
    %c0_i32_0 = arith.constant 0 : i32
    %c0_i32_1 = arith.constant 0 : i32
    return %c0_i32, %c0_i32_0 : i32, i32
  }
  func.func @transform_23(%arg0: i32) -> (i32, i32) {
    %c0_i32 = arith.constant 0 : i32
    %c0_i32_0 = arith.constant 0 : i32
    return %arg0, %c0_i32 : i32, i32
  }
}

</mosaic_0001>

<bundles_post_ra>
// kernel: tile.54
= control target key start
LH: loop header
LB: loop body
LE: loop exit
PB: predicated region body
PF: predicated region fallthrough
CT: control target
= control target key end

     0   :  { %vm65_vm0 = vcmask 1043458   ;;  %s105_s6 = smov 3  ;;  %vm70_vm1 = vcmask 1045508   ;;  %vm75_vm2 = vcmask 1047558   ;;  %s108_s9 = smov 12  ;;  %vm4_vm3 = vcmask 1047556   ;;  %s1498_s0 = inlined_call_operand.vmem [shape: f32[16,16,16], index: 0, kind: input, shape index: {}]   ;;  %s1499_s1 = inlined_call_operand.vmem [shape: f32[16,256], index: 1, kind: output, shape index: {}]  }
   0x1   :  { %v726_v0 = vld [vmem:[%s1498_s0 + $0x87] ss:$16 sm:%s105_s6]   ;;  %s113_s10 = smov 48  ;;  %s118_s15 = smov 192  ;;  %vm6_vm4 = vcmask 130048   ;;  %vm79_vm5 = vcmask 1048448  }
   0x2   :  { %v727_v1 = vld [vmem:[%s1498_s0 + $0x87] ss:$16 sm:%s108_s9]   ;;  %s60_s16 = smov 3  ;;  %s63_s21 = smov 12  ;;  %vm170_vm6 = vcmask 917248   ;;  %vm261_vm7 = vcmask 786048  }
   0x3   :  { %v728_v2 = vld [vmem:[%s1498_s0 + $0x87] ss:$16 sm:%s113_s10]   ;;  %v111_v3 = vsel %vm65_vm0, %v727_v1, %v726_v0  ;;  %s68_s22 = smov 48  ;;  %s73_s27 = smov 192  ;;  %vm352_vm8 = vcmask 654848   ;;  %vm443_vm9 = vcmask 523648  }
   0x4   :  { %v729_v4 = vld [vmem:[%s1498_s0 + $0x87] ss:$16 sm:%s118_s15]   ;;  %v116_v6 = vsel %vm70_vm1, %v728_v2, %v111_v3  ;;  %s128_s28 = smov 3  ;;  %s131_s4 = smov 12  ;;  %vm534_vm10 = vcmask 392448   ;;  %vm625_vm11 = vcmask 261248  }
   0x5   :  { %v717_v5 = vld [vmem:[%s1498_s0 + $0x7] ss:$16 sm:%s60_s16]   ;;  %v121_v9 = vsel %vm75_vm2, %v729_v4, %v116_v6  ;;  %v731_v12 = vld [vmem:[%s1498_s0 + $0x8f] ss:$16 sm:%s128_s28]   ;;  %s136_s5 = smov 48  ;;  %s857_s6 = smov 112  }
   0x6   :  { %v718_v7 = vld [vmem:[%s1498_s0 + $0x7] ss:$16 sm:%s63_s21]   ;;  %122 = vrot.lane.b32.xlu1 %v121_v9, %s857_s6  ;;  %s141_s9 = smov 192  ;;  %s82_s10 = smov 3 }
   0x7   :  { %v719_v8 = vld [vmem:[%s1498_s0 + $0x7] ss:$16 sm:%s68_s22]   ;;  %v66_v10 = vsel %vm65_vm0, %v718_v7, %v717_v5  ;;  %v732_v14 = vld [vmem:[%s1498_s0 + $0x8f] ss:$16 sm:%s131_s4]   ;;  %s85_s15 = smov 12  ;;  %s90_s16 = smov 48 }
   0x8   :  { %v720_v11 = vld [vmem:[%s1498_s0 + $0x7] ss:$16 sm:%s73_s27]   ;;  %v71_v13 = vsel %vm70_vm1, %v719_v8, %v66_v10  ;;  %v134_v16 = vsel %vm65_vm0, %v732_v14, %v731_v12  ;;  %v733_v17 = vld [vmem:[%s1498_s0 + $0x8f] ss:$16 sm:%s136_s5]   ;;  %s95_s19 = smov 192  ;;  %s173_s24 = smov 3 }
   0x9   :  { %v76_v15 = vsel %vm75_vm2, %v720_v11, %v71_v13  ;;  %v734_v18 = vld [vmem:[%s1498_s0 + $0x8f] ss:$16 sm:%s141_s9]   ;;  %v139_v19 = vsel %vm70_vm1, %v733_v17, %v134_v16  ;;  %s176_s25 = smov 12  ;;  %s181_s28 = smov 48  ;;  %v740_v27 = vld [vmem:[%s1498_s0 + $0xe] ss:$16 sm:%s173_s24]  }
   0xa   :  { %77 = vrot.lane.b32.xlu0 %v76_v15, %s857_s6  ;;  %v721_v20 = vld [vmem:[%s1498_s0 + $0xf] ss:$16 sm:%s82_s10]   ;;  %v144_v21 = vsel %vm75_vm2, %v734_v18, %v139_v19  ;;  %s186_s29 = smov 192  ;;  %s151_s5 = smov 3 }
   0xb   :  { %v722_v22 = vld [vmem:[%s1498_s0 + $0xf] ss:$16 sm:%s85_s15]   ;;  %145 = vrot.lane.b32.xlu1 %v144_v21, %s857_s6  ;;  %s154_s7 = smov 12  ;;  %s159_s12 = smov 48 }
   0xc   :  { %v723_v23 = vld [vmem:[%s1498_s0 + $0xf] ss:$16 sm:%s90_s16]   ;;  %v88_v24 = vsel %vm65_vm0, %v722_v22, %v721_v20  ;;  %v741_v28 = vld [vmem:[%s1498_s0 + $0xe] ss:$16 sm:%s176_s25]   ;;  %s164_s13 = smov 192  ;;  %s219_s15 = smov 3 }
   0xd   :  { %v724_v25 = vld [vmem:[%s1498_s0 + $0xf] ss:$16 sm:%s95_s19]   ;;  %v93_v26 = vsel %vm70_vm1, %v723_v23, %v88_v24  ;;  %v179_v30 = vsel %vm65_vm0, %v741_v28, %v740_v27  ;;  %v742_v31 = vld [vmem:[%s1498_s0 + $0xe] ss:$16 sm:%s181_s28]   ;;  %s222_s16 = smov 12  ;;  %s227_s21 = smov 48 }
   0xe   :  { %v98_v29 = vsel %vm75_vm2, %v724_v25, %v93_v26  ;;  %v743_v32 = vld [vmem:[%s1498_s0 + $0xe] ss:$16 sm:%s186_s29]   ;;  %v184_v33 = vsel %vm70_vm1, %v742_v31, %v179_v30  ;;  %v736_v34 = vld [vmem:[%s1498_s0 + $0x6] ss:$16 sm:%s151_s5]   ;;  %s232_s22 = smov 192  ;;  %s858_s23 = smov 96  }
   0xf   :  { %99 = vrot.lane.b32.xlu0 %v98_v29, %s857_s6  ;;  %v189_v35 = vsel %vm75_vm2, %v743_v32, %v184_v33  ;;  %v737_v36 = vld [vmem:[%s1498_s0 + $0x6] ss:$16 sm:%s154_s7]   ;;  %s196_s26 = smov 3  ;;  %s199_s2 = smov 12 }
  0x10   :  { %v738_v37 = vld [vmem:[%s1498_s0 + $0x6] ss:$16 sm:%s159_s12]   ;;  %190 = vrot.lane.b32.xlu1 %v189_v35, %s858_s23  ;;  %v157_v38 = vsel %vm65_vm0, %v737_v36, %v736_v34  ;;  %s204_s3 = smov 48  ;;  %s209_s9 = smov 192 }
  0x11   :  { %v739_v39 = vld [vmem:[%s1498_s0 + $0x6] ss:$16 sm:%s164_s13]   ;;  %v162_v40 = vsel %vm70_vm1, %v738_v37, %v157_v38  ;;  %v750_v41 = vld [vmem:[%s1498_s0 + $0x8e] ss:$16 sm:%s219_s15]   ;;  %s264_s12 = smov 3  ;;  %s267_s13 = smov 12 }
  0x12   :  { %v751_v42 = vld [vmem:[%s1498_s0 + $0x8e] ss:$16 sm:%s222_s16]   ;;  %v167_v43 = vsel %vm75_vm2, %v739_v39, %v162_v40  ;;  %v745_v48 = vld [vmem:[%s1498_s0 + $0x86] ss:$16 sm:%s196_s26]   ;;  %s272_s17 = smov 48  ;;  %s277_s18 = smov 192 }
  0x13   :  { %v225_v44 = vsel %vm65_vm0, %v751_v42, %v750_v41  ;;  %v752_v45 = vld [vmem:[%s1498_s0 + $0x8e] ss:$16 sm:%s227_s21]   ;;  %168 = vrot.lane.b32.xlu0 %v167_v43, %s858_s23  ;;  %s242_s21 = smov 3  ;;  %s245_s27 = smov 12 }
  0x14   :  { %v753_v46 = vld [vmem:[%s1498_s0 + $0x8e] ss:$16 sm:%s232_s22]   ;;  %v230_v47 = vsel %vm70_vm1, %v752_v45, %v225_v44  ;;  %v746_v50 = vld [vmem:[%s1498_s0 + $0x86] ss:$16 sm:%s199_s2]   ;;  %s250_s28 = smov 48  ;;  %s255_s4 = smov 192 }
  0x15   :  { %v235_v49 = vsel %vm75_vm2, %v753_v46, %v230_v47  ;;  %v747_v51 = vld [vmem:[%s1498_s0 + $0x86] ss:$16 sm:%s204_s3]   ;;  %v202_v52 = vsel %vm65_vm0, %v746_v50, %v745_v48  ;;  %v759_v55 = vld [vmem:[%s1498_s0 + $0xd] ss:$16 sm:%s264_s12]   ;;  %s310_s7 = smov 3  ;;  %s313_s8 = smov 12 }
  0x16   :  { %236 = vrot.lane.b32.xlu1 %v235_v49, %s858_s23  ;;  %v748_v53 = vld [vmem:[%s1498_s0 + $0x86] ss:$16 sm:%s209_s9]   ;;  %v207_v54 = vsel %vm70_vm1, %v747_v51, %v202_v52  ;;  %s323_s6 = smov 192  ;;  %s859_s14 = smov 80  }
  0x17   :  { %v760_v56 = vld [vmem:[%s1498_s0 + $0xd] ss:$16 sm:%s267_s13]   ;;  %v212_v57 = vsel %vm75_vm2, %v748_v53, %v207_v54  ;;  %v755_v62 = vld [vmem:[%s1498_s0 + $0x5] ss:$16 sm:%s242_s21]   ;;  %s318_s13 = smov 48  ;;  %s290_s22 = smov 12 }
  0x18   :  { %v270_v58 = vsel %vm65_vm0, %v760_v56, %v759_v55  ;;  %v761_v59 = vld [vmem:[%s1498_s0 + $0xd] ss:$16 sm:%s272_s17]   ;;  %213 = vrot.lane.b32.xlu0 %v212_v57, %s858_s23  ;;  %s287_s17 = smov 3  ;;  %s295_s24 = smov 48 }
  0x19   :  { %v762_v60 = vld [vmem:[%s1498_s0 + $0xd] ss:$16 sm:%s277_s18]   ;;  %v275_v61 = vsel %vm70_vm1, %v761_v59, %v270_v58  ;;  %v756_v0 = vld [vmem:[%s1498_s0 + $0x5] ss:$16 sm:%s245_s27]   ;;  %s300_s29 = smov 192  ;;  %s355_s3 = smov 3 }
  0x1a   :  { %v280_v63 = vsel %vm75_vm2, %v762_v60, %v275_v61  ;;  %v757_v1 = vld [vmem:[%s1498_s0 + $0x5] ss:$16 sm:%s250_s28]   ;;  %v248_v2 = vsel %vm65_vm0, %v756_v0, %v755_v62  ;;  %v769_v5 = vld [vmem:[%s1498_s0 + $0x8d] ss:$16 sm:%s310_s7]   ;;  %s363_s9 = smov 48  ;;  %s368_s10 = smov 192 }
  0x1b   :  { %281 = vrot.lane.b32.xlu1 %v280_v63, %s859_s14  ;;  %v758_v3 = vld [vmem:[%s1498_s0 + $0x5] ss:$16 sm:%s255_s4]   ;;  %v253_v4 = vsel %vm70_vm1, %v757_v1, %v248_v2  ;;  %s358_s4 = smov 12  ;;  %s336_s18 = smov 12 }
  0x1c   :  { %v770_v6 = vld [vmem:[%s1498_s0 + $0x8d] ss:$16 sm:%s313_s8]   ;;  %v258_v7 = vsel %vm75_vm2, %v758_v3, %v253_v4  ;;  %v764_v12 = vld [vmem:[%s1498_s0 + $0x85] ss:$16 sm:%s287_s17]   ;;  %s341_s19 = smov 48  ;;  %s346_s25 = smov 192 }
  0x1d   :  { %v316_v8 = vsel %vm65_vm0, %v770_v6, %v769_v5  ;;  %v771_v9 = vld [vmem:[%s1498_s0 + $0x8d] ss:$16 sm:%s318_s13]   ;;  %259 = vrot.lane.b32.xlu0 %v258_v7, %s859_s14  ;;  %s333_s13 = smov 3  ;;  %s401_s27 = smov 3 }
  0x1e   :  { %v772_v10 = vld [vmem:[%s1498_s0 + $0x8d] ss:$16 sm:%s323_s6]   ;;  %v321_v11 = vsel %vm70_vm1, %v771_v9, %v316_v8  ;;  %v765_v14 = vld [vmem:[%s1498_s0 + $0x85] ss:$16 sm:%s290_s22]   ;;  %s404_s28 = smov 12  ;;  %s414_s23 = smov 192 }
  0x1f   :  { %v326_v13 = vsel %vm75_vm2, %v772_v10, %v321_v11  ;;  %v766_v15 = vld [vmem:[%s1498_s0 + $0x85] ss:$16 sm:%s295_s24]   ;;  %v293_v16 = vsel %vm65_vm0, %v765_v14, %v764_v12  ;;  %v778_v19 = vld [vmem:[%s1498_s0 + $0xc] ss:$16 sm:%s355_s3]   ;;  %s860_s5 = smov 64   ;;  %s381_s6 = smov 12 }
  0x20   :  { %327 = vrot.lane.b32.xlu1 %v326_v13, %s859_s14  ;;  %v767_v17 = vld [vmem:[%s1498_s0 + $0x85] ss:$16 sm:%s300_s29]   ;;  %v298_v18 = vsel %vm70_vm1, %v766_v15, %v293_v16  ;;  %s386_s15 = smov 48  ;;  %s391_s20 = smov 192 }
  0x21   :  { %v779_v20 = vld [vmem:[%s1498_s0 + $0xc] ss:$16 sm:%s358_s4]   ;;  %v303_v21 = vsel %vm75_vm2, %v767_v17, %v298_v18  ;;  %v774_v26 = vld [vmem:[%s1498_s0 + $0x4] ss:$16 sm:%s333_s13]   ;;  %s409_s4 = smov 48  ;;  %s446_s24 = smov 3 }
  0x22   :  { %v361_v22 = vsel %vm65_vm0, %v779_v20, %v778_v19  ;;  %v780_v23 = vld [vmem:[%s1498_s0 + $0xc] ss:$16 sm:%s363_s9]   ;;  %304 = vrot.lane.b32.xlu0 %v303_v21, %s859_s14  ;;  %s378_s9 = smov 3  ;;  %s454_s29 = smov 48 }
  0x23   :  { %v781_v24 = vld [vmem:[%s1498_s0 + $0xc] ss:$16 sm:%s368_s10]   ;;  %v366_v25 = vsel %vm70_vm1, %v780_v23, %v361_v22  ;;  %v775_v28 = vld [vmem:[%s1498_s0 + $0x4] ss:$16 sm:%s336_s18]   ;;  %s459_s30 = smov 192  ;;  %s427_s10 = smov 12 }
  0x24   :  { %v371_v27 = vsel %vm75_vm2, %v781_v24, %v366_v25  ;;  %v776_v29 = vld [vmem:[%s1498_s0 + $0x4] ss:$16 sm:%s341_s19]   ;;  %v339_v30 = vsel %vm65_vm0, %v775_v28, %v774_v26  ;;  %v788_v33 = vld [vmem:[%s1498_s0 + $0x8c] ss:$16 sm:%s401_s27]   ;;  %s432_s11 = smov 48  ;;  %s437_s16 = smov 192 }
  0x25   :  { %372 = vrot.lane.b32.xlu1 %v371_v27, %s860_s5  ;;  %v777_v31 = vld [vmem:[%s1498_s0 + $0x4] ss:$16 sm:%s346_s25]   ;;  %v344_v32 = vsel %vm70_vm1, %v776_v29, %v339_v30  ;;  %s449_s25 = smov 12  ;;  %s492_s18 = smov 3 }
  0x26   :  { %v789_v34 = vld [vmem:[%s1498_s0 + $0x8c] ss:$16 sm:%s404_s28]   ;;  %v349_v35 = vsel %vm75_vm2, %v777_v31, %v344_v32  ;;  %v783_v40 = vld [vmem:[%s1498_s0 + $0x84] ss:$16 sm:%s378_s9]   ;;  %s495_s19 = smov 12  ;;  %s505_s14 = smov 192 }
  0x27   :  { %v407_v36 = vsel %vm65_vm0, %v789_v34, %v788_v33  ;;  %v790_v37 = vld [vmem:[%s1498_s0 + $0x8c] ss:$16 sm:%s409_s4]   ;;  %350 = vrot.lane.b32.xlu0 %v349_v35, %s860_s5  ;;  %s424_s4 = smov 3  ;;  %s861_s26 = smov 48  }
  0x28   :  { %v791_v38 = vld [vmem:[%s1498_s0 + $0x8c] ss:$16 sm:%s414_s23]   ;;  %v412_v39 = vsel %vm70_vm1, %v790_v37, %v407_v36  ;;  %v784_v42 = vld [vmem:[%s1498_s0 + $0x84] ss:$16 sm:%s381_s6]   ;;  %s472_s23 = smov 12  ;;  %s477_s7 = smov 48 }
  0x29   :  { %v417_v41 = vsel %vm75_vm2, %v791_v38, %v412_v39  ;;  %v785_v43 = vld [vmem:[%s1498_s0 + $0x84] ss:$16 sm:%s386_s15]   ;;  %v384_v44 = vsel %vm65_vm0, %v784_v42, %v783_v40  ;;  %v797_v47 = vld [vmem:[%s1498_s0 + $0xb] ss:$16 sm:%s446_s24]   ;;  %s482_s12 = smov 192  ;;  %s537_s15 = smov 3 }
  0x2a   :  { %418 = vrot.lane.b32.xlu1 %v417_v41, %s860_s5  ;;  %v786_v45 = vld [vmem:[%s1498_s0 + $0x84] ss:$16 sm:%s391_s20]   ;;  %v389_v46 = vsel %vm70_vm1, %v785_v43, %v384_v44  ;;  %s545_s20 = smov 48  ;;  %s550_s21 = smov 192 }
  0x2b   :  { %v798_v48 = vld [vmem:[%s1498_s0 + $0xb] ss:$16 sm:%s449_s25]   ;;  %v394_v49 = vsel %vm75_vm2, %v786_v45, %v389_v46  ;;  %v793_v54 = vld [vmem:[%s1498_s0 + $0x3] ss:$16 sm:%s424_s4]   ;;  %s500_s25 = smov 48  ;;  %s523_s2 = smov 48 }
  0x2c   :  { %v452_v50 = vsel %vm65_vm0, %v798_v48, %v797_v47  ;;  %v799_v51 = vld [vmem:[%s1498_s0 + $0xb] ss:$16 sm:%s454_s29]   ;;  %395 = vrot.lane.b32.xlu0 %v394_v49, %s860_s5  ;;  %s469_s29 = smov 3  ;;  %s528_s8 = smov 192 }
  0x2d   :  { %v800_v52 = vld [vmem:[%s1498_s0 + $0xb] ss:$16 sm:%s459_s30]   ;;  %v457_v53 = vsel %vm70_vm1, %v799_v51, %v452_v50  ;;  %v794_v56 = vld [vmem:[%s1498_s0 + $0x3] ss:$16 sm:%s427_s10]   ;;  %s518_s30 = smov 12  ;;  %s583_s10 = smov 3 }
  0x2e   :  { %v462_v55 = vsel %vm75_vm2, %v800_v52, %v457_v53  ;;  %v795_v57 = vld [vmem:[%s1498_s0 + $0x3] ss:$16 sm:%s432_s11]   ;;  %v430_v58 = vsel %vm65_vm0, %v794_v56, %v793_v54  ;;  %v807_v61 = vld [vmem:[%s1498_s0 + $0x8b] ss:$16 sm:%s492_s18]   ;;  %s586_s11 = smov 12  ;;  %s596_s5 = smov 192 }
  0x2f   :  { %463 = vrot.lane.b32.xlu1 %v462_v55, %s861_s26  ;;  %v796_v59 = vld [vmem:[%s1498_s0 + $0x3] ss:$16 sm:%s437_s16]   ;;  %v435_v60 = vsel %vm70_vm1, %v795_v57, %v430_v58  ;;  %s540_s16 = smov 12  ;;  %s862_s17 = smov 32  }
  0x30   :  { %v808_v62 = vld [vmem:[%s1498_s0 + $0x8b] ss:$16 sm:%s495_s19]   ;;  %v440_v63 = vsel %vm75_vm2, %v796_v59, %v435_v60  ;;  %v802_v4 = vld [vmem:[%s1498_s0 + $0x83] ss:$16 sm:%s469_s29]   ;;  %s568_s27 = smov 48  ;;  %s573_s3 = smov 192 }
  0x31   :  { %v498_v0 = vsel %vm65_vm0, %v808_v62, %v807_v61  ;;  %v809_v1 = vld [vmem:[%s1498_s0 + $0x8b] ss:$16 sm:%s500_s25]   ;;  %441 = vrot.lane.b32.xlu0 %v440_v63, %s861_s26  ;;  %s515_s25 = smov 3  ;;  %s641_s13 = smov 192 }
  0x32   :  { %v810_v2 = vld [vmem:[%s1498_s0 + $0x8b] ss:$16 sm:%s505_s14]   ;;  %v503_v3 = vsel %vm70_vm1, %v809_v1, %v498_v0  ;;  %v803_v6 = vld [vmem:[%s1498_s0 + $0x83] ss:$16 sm:%s472_s23]   ;;  %s563_s14 = smov 12  ;;  %s609_s24 = smov 12 }
  0x33   :  { %v508_v5 = vsel %vm75_vm2, %v810_v2, %v503_v3  ;;  %v804_v7 = vld [vmem:[%s1498_s0 + $0x83] ss:$16 sm:%s477_s7]   ;;  %v475_v8 = vsel %vm65_vm0, %v803_v6, %v802_v4  ;;  %v816_v11 = vld [vmem:[%s1498_s0 + $0xa] ss:$16 sm:%s537_s15]   ;;  %s628_s7 = smov 3  ;;  %s677_s4 = smov 12 }
  0x34   :  { %509 = vrot.lane.b32.xlu1 %v508_v5, %s861_s26  ;;  %v805_v9 = vld [vmem:[%s1498_s0 + $0x83] ss:$16 sm:%s482_s12]   ;;  %v480_v10 = vsel %vm70_vm1, %v804_v7, %v475_v8  ;;  %s636_s12 = smov 48  ;;  %v2_v38 = vld [vmem:[%s1498_s0] ss:$8 sm:$0xf]  }
  0x35   :  { %v817_v12 = vld [vmem:[%s1498_s0 + $0xa] ss:$16 sm:%s540_s16]   ;;  %v485_v13 = vsel %vm75_vm2, %v805_v9, %v480_v10  ;;  %v812_v18 = vld [vmem:[%s1498_s0 + $0x2] ss:$16 sm:%s515_s25]   ;;  %s591_s16 = smov 48  ;;  %s614_s25 = smov 48 }
  0x36   :  { %v543_v14 = vsel %vm65_vm0, %v817_v12, %v816_v11  ;;  %v818_v15 = vld [vmem:[%s1498_s0 + $0xa] ss:$16 sm:%s545_s20]   ;;  %486 = vrot.lane.b32.xlu0 %v485_v13, %s861_s26  ;;  %s560_s20 = smov 3  ;;  %v3_v48 = vld [vmem:[%s1498_s0] ss:$8 sm:$0xf0]  }
  0x37   :  { %v819_v16 = vld [vmem:[%s1498_s0 + $0xa] ss:$16 sm:%s550_s21]   ;;  %v548_v17 = vsel %vm70_vm1, %v818_v15, %v543_v14  ;;  %v813_v20 = vld [vmem:[%s1498_s0 + $0x2] ss:$16 sm:%s518_s30]   ;;  %s619_s30 = smov 192  ;;  %v5_v52 = vsel %vm4_vm3, %v3_v48, %v2_v38  ;;  %s664_s26 = smov 192 }
  0x38   :  { %v553_v19 = vsel %vm75_vm2, %v819_v16, %v548_v17  ;;  %v814_v21 = vld [vmem:[%s1498_s0 + $0x2] ss:$16 sm:%s523_s2]   ;;  %v521_v22 = vsel %vm65_vm0, %v813_v20, %v812_v18  ;;  %v826_v25 = vld [vmem:[%s1498_s0 + $0x8a] ss:$16 sm:%s583_s10]   ;;  %s674_s2 = smov 3 }
  0x39   :  { %554 = vrot.lane.b32.xlu1 %v553_v19, %s862_s17  ;;  %v815_v23 = vld [vmem:[%s1498_s0 + $0x2] ss:$16 sm:%s528_s8]   ;;  %v526_v24 = vsel %vm70_vm1, %v814_v21, %v521_v22  ;;  %s631_s8 = smov 12  ;;  %7 = vst.msk [vmem:[%s1499_s1] ss:$8 sm:$0x3] %vm6_vm4, %v5_v52  }
  0x3a   :  { %v827_v26 = vld [vmem:[%s1498_s0 + $0x8a] ss:$16 sm:%s586_s11]   ;;  %v531_v27 = vsel %vm75_vm2, %v815_v23, %v526_v24  ;;  %v821_v32 = vld [vmem:[%s1498_s0 + $0x82] ss:$16 sm:%s560_s20]   ;;  %s682_s11 = smov 48 }
  0x3b   :  { %v589_v28 = vsel %vm65_vm0, %v827_v26, %v826_v25  ;;  %v828_v29 = vld [vmem:[%s1498_s0 + $0x8a] ss:$16 sm:%s591_s16]   ;;  %532 = vrot.lane.b32.xlu0 %v531_v27, %s862_s17  ;;  %s606_s16 = smov 3  ;;  %696 = vst.msk [vmem:[%s1499_s1 - $0xf] ss:$8 sm:$0xc] %vm6_vm4, %v5_v52  }
  0x3c   :  { %v829_v30 = vld [vmem:[%s1498_s0 + $0x8a] ss:$16 sm:%s596_s5]   ;;  %v594_v31 = vsel %vm70_vm1, %v828_v29, %v589_v28  ;;  %v822_v34 = vld [vmem:[%s1498_s0 + $0x82] ss:$16 sm:%s563_s14]  }
  0x3d   :  { %v599_v33 = vsel %vm75_vm2, %v829_v30, %v594_v31  ;;  %v823_v35 = vld [vmem:[%s1498_s0 + $0x82] ss:$16 sm:%s568_s27]   ;;  %v566_v36 = vsel %vm65_vm0, %v822_v34, %v821_v32  ;;  %v835_v40 = vld [vmem:[%s1498_s0 + $0x9] ss:$16 sm:%s628_s7]  }
  0x3e   :  { %600 = vrot.lane.b32.xlu1 %v599_v33, %s862_s17  ;;  %v824_v37 = vld [vmem:[%s1498_s0 + $0x82] ss:$16 sm:%s573_s3]   ;;  %v571_v39 = vsel %vm70_vm1, %v823_v35, %v566_v36  ;;  %697 = vst.msk [vmem:[%s1499_s1 - $0x1e] ss:$8 sm:$0x30] %vm6_vm4, %v5_v52   ;;  %s659_s3 = smov 48 }
  0x3f   :  { %v836_v41 = vld [vmem:[%s1498_s0 + $0x9] ss:$16 sm:%s631_s8]   ;;  %v576_v42 = vsel %vm75_vm2, %v824_v37, %v571_v39  ;;  %v831_v47 = vld [vmem:[%s1498_s0 + $0x1] ss:$16 sm:%s606_s16]   ;;  %s651_s16 = smov 3 }
  0x40   :  { %v634_v43 = vsel %vm65_vm0, %v836_v41, %v835_v40  ;;  %v837_v44 = vld [vmem:[%s1498_s0 + $0x9] ss:$16 sm:%s636_s12]   ;;  %577 = vrot.lane.b32.xlu0 %v576_v42, %s862_s17  ;;  %s687_s12 = smov 192  ;;  %698 = vst.msk [vmem:[%s1499_s1 - $0x2d] ss:$8 sm:$0xc0] %vm6_vm4, %v5_v52  }
  0x41   :  { %v838_v45 = vld [vmem:[%s1498_s0 + $0x9] ss:$16 sm:%s641_s13]   ;;  %v639_v46 = vsel %vm70_vm1, %v837_v44, %v634_v43  ;;  %v832_v50 = vld [vmem:[%s1498_s0 + $0x1] ss:$16 sm:%s609_s24]   ;;  %s863_s13 = smov 16   ;;  %s654_s17 = smov 12 }
  0x42   :  { %v644_v49 = vsel %vm75_vm2, %v838_v45, %v639_v46  ;;  %v833_v51 = vld [vmem:[%s1498_s0 + $0x1] ss:$16 sm:%s614_s25]   ;;  %v612_v53 = vsel %vm65_vm0, %v832_v50, %v831_v47  ;;  %v699_v55 = vld [vmem:[%s1498_s0 + $0x40] ss:$8 sm:$0xf]  }
  0x43   :  { %645 = vrot.lane.b32.xlu1 %v644_v49, %s863_s13  ;;  %v834_v54 = vld [vmem:[%s1498_s0 + $0x1] ss:$16 sm:%s619_s30]   ;;  %v617_v56 = vsel %vm70_vm1, %v833_v51, %v612_v53  ;;  %v700_v1 = vld [vmem:[%s1498_s0 + $0x40] ss:$8 sm:$0xf0]  }
  0x44   :  { %v845_v57 = vld [vmem:[%s1498_s0 + $0x89] ss:$16 sm:%s674_s2]   ;;  %v622_v59 = vsel %vm75_vm2, %v834_v54, %v617_v56  ;;  %v840_v0 = vld [vmem:[%s1498_s0 + $0x81] ss:$16 sm:%s651_s16]   ;;  %v19_v5 = vsel %vm4_vm3, %v700_v1, %v699_v55 }
  0x45   :  { %v846_v58 = vld [vmem:[%s1498_s0 + $0x89] ss:$16 sm:%s677_s4]   ;;  %623 = vrot.lane.b32.xlu0 %v622_v59, %s863_s13  ;;  %701 = vst.msk [vmem:[%s1499_s1 + $0x4] ss:$8 sm:$0x3] %vm6_vm4, %v19_v5  }
  0x46   :  { %v680_v60 = vsel %vm65_vm0, %v846_v58, %v845_v57  ;;  %v847_v61 = vld [vmem:[%s1498_s0 + $0x89] ss:$16 sm:%s682_s11]   ;;  %v841_v3 = vld [vmem:[%s1498_s0 + $0x81] ss:$16 sm:%s654_s17]  }
  0x47   :  { %v848_v62 = vld [vmem:[%s1498_s0 + $0x89] ss:$16 sm:%s687_s12]   ;;  %v685_v63 = vsel %vm70_vm1, %v847_v61, %v680_v60  ;;  %v842_v4 = vld [vmem:[%s1498_s0 + $0x81] ss:$16 sm:%s659_s3]   ;;  %v657_v6 = vsel %vm65_vm0, %v841_v3, %v840_v0 }
  0x48   :  { %v690_v2 = vsel %vm75_vm2, %v848_v62, %v685_v63  ;;  %v843_v7 = vld [vmem:[%s1498_s0 + $0x81] ss:$16 sm:%s664_s26]   ;;  %702 = vst.msk [vmem:[%s1499_s1 - $0xb] ss:$8 sm:$0xc] %vm6_vm4, %v19_v5   ;;  %v662_v9 = vsel %vm70_vm1, %v842_v4, %v657_v6 }
  0x49   :  { %691 = vrot.lane.b32.xlu1 %v690_v2, %s863_s13  ;;  %703 = vst.msk [vmem:[%s1499_s1 - $0x1a] ss:$8 sm:$0x30] %vm6_vm4, %v19_v5   ;;  %704 = vst.msk [vmem:[%s1499_s1 - $0x29] ss:$8 sm:$0xc0] %vm6_vm4, %v19_v5   ;;  %v667_v12 = vsel %vm75_vm2, %v843_v7, %v662_v9 }
  0x4a   :  { %v705_v8 = vld [vmem:[%s1498_s0 + $0x80] ss:$8 sm:$0xf]   ;;  %668 = vrot.lane.b32.xlu0 %v667_v12, %s863_s13 }
  0x4b   :  { %v706_v10 = vld [vmem:[%s1498_s0 + $0x80] ss:$8 sm:$0xf0]  }
  0x4c   :  { %v711_v11 = vld [vmem:[%s1498_s0 + $0xc0] ss:$8 sm:$0xf]   ;;  %v34_v13 = vsel %vm4_vm3, %v706_v10, %v705_v8 }
  0x4d   :  { %v712_v14 = vld [vmem:[%s1498_s0 + $0xc0] ss:$8 sm:$0xf0]   ;;  %707 = vst.msk [vmem:[%s1499_s1 + $0x10] ss:$8 sm:$0x3] %vm6_vm4, %v34_v13  }
  0x4e   :  { %708 = vst.msk [vmem:[%s1499_s1 + $0x1] ss:$8 sm:$0xc] %vm6_vm4, %v34_v13   ;;  %709 = vst.msk [vmem:[%s1499_s1 - $0xe] ss:$8 sm:$0x30] %vm6_vm4, %v34_v13   ;;  %v49_v15 = vsel %vm4_vm3, %v712_v14, %v711_v11 }
  0x4f   :  { %710 = vst.msk [vmem:[%s1499_s1 - $0x1d] ss:$8 sm:$0xc0] %vm6_vm4, %v34_v13   ;;  %713 = vst.msk [vmem:[%s1499_s1 + $0x14] ss:$8 sm:$0x3] %vm6_vm4, %v49_v15  }
  0x50   :  { %714 = vst.msk [vmem:[%s1499_s1 + $0x5] ss:$8 sm:$0xc] %vm6_vm4, %v49_v15   ;;  %715 = vst.msk [vmem:[%s1499_s1 - $0xa] ss:$8 sm:$0x30] %vm6_vm4, %v49_v15  }
  0x51   :  { %716 = vst.msk [vmem:[%s1499_s1 - $0x19] ss:$8 sm:$0xc0] %vm6_vm4, %v49_v15  }
  0x78   :  { %v123_v16 = vpop.permute.xlu1 %122  }
  0x79   :  { %730 = vst.msk [vmem:[%s1499_s1 + $0x10] sm:$0xff] %vm79_vm5, %v123_v16  }
  0x7c   :  { %v78_v17 = vpop.permute.xlu0 %77  }
  0x7d   :  { %80 = vst.msk [vmem:[%s1499_s1] sm:$0xff] %vm79_vm5, %v78_v17   ;;  %v146_v18 = vpop.permute.xlu1 %145  }
  0x7e   :  { %735 = vst.msk [vmem:[%s1499_s1 + $0x18] sm:$0xff] %vm79_vm5, %v146_v18  }
  0x81   :  { %v100_v19 = vpop.permute.xlu0 %99  }
  0x82   :  { %725 = vst.msk [vmem:[%s1499_s1 + $0x8] sm:$0xff] %vm79_vm5, %v100_v19   ;;  %v191_v20 = vpop.permute.xlu1 %190  }
  0x83   :  { %744 = vst.msk [vmem:[%s1499_s1 + $0x8] sm:$0xff] %vm170_vm6, %v191_v20  }
  0x85   :  { %v169_v21 = vpop.permute.xlu0 %168  }
  0x86   :  { %171 = vst.msk [vmem:[%s1499_s1] sm:$0xff] %vm170_vm6, %v169_v21  }
  0x88   :  { %v237_v22 = vpop.permute.xlu1 %236  }
  0x89   :  { %754 = vst.msk [vmem:[%s1499_s1 + $0x18] sm:$0xff] %vm170_vm6, %v237_v22  }
  0x8a   :  { %v214_v23 = vpop.permute.xlu0 %213  }
  0x8b   :  { %749 = vst.msk [vmem:[%s1499_s1 + $0x10] sm:$0xff] %vm170_vm6, %v214_v23  }
  0x8d   :  { %v282_v24 = vpop.permute.xlu1 %281  }
  0x8e   :  { %763 = vst.msk [vmem:[%s1499_s1 + $0x8] sm:$0xff] %vm261_vm7, %v282_v24  }
  0x8f   :  { %v260_v25 = vpop.permute.xlu0 %259  }
  0x90   :  { %262 = vst.msk [vmem:[%s1499_s1] sm:$0xff] %vm261_vm7, %v260_v25  }
  0x92   :  { %v328_v26 = vpop.permute.xlu1 %327  }
  0x93   :  { %773 = vst.msk [vmem:[%s1499_s1 + $0x18] sm:$0xff] %vm261_vm7, %v328_v26  }
  0x94   :  { %v305_v27 = vpop.permute.xlu0 %304  }
  0x95   :  { %768 = vst.msk [vmem:[%s1499_s1 + $0x10] sm:$0xff] %vm261_vm7, %v305_v27  }
  0x97   :  { %v373_v28 = vpop.permute.xlu1 %372  }
  0x98   :  { %782 = vst.msk [vmem:[%s1499_s1 + $0x8] sm:$0xff] %vm352_vm8, %v373_v28  }
  0x99   :  { %v351_v29 = vpop.permute.xlu0 %350  }
  0x9a   :  { %353 = vst.msk [vmem:[%s1499_s1] sm:$0xff] %vm352_vm8, %v351_v29  }
  0x9c   :  { %v419_v30 = vpop.permute.xlu1 %418  }
  0x9d   :  { %792 = vst.msk [vmem:[%s1499_s1 + $0x18] sm:$0xff] %vm352_vm8, %v419_v30  }
  0x9e   :  { %v396_v31 = vpop.permute.xlu0 %395  }
  0x9f   :  { %787 = vst.msk [vmem:[%s1499_s1 + $0x10] sm:$0xff] %vm352_vm8, %v396_v31  }
  0xa1   :  { %v464_v32 = vpop.permute.xlu1 %463  }
  0xa2   :  { %801 = vst.msk [vmem:[%s1499_s1 + $0x8] sm:$0xff] %vm443_vm9, %v464_v32  }
  0xa3   :  { %v442_v33 = vpop.permute.xlu0 %441  }
  0xa4   :  { %444 = vst.msk [vmem:[%s1499_s1] sm:$0xff] %vm443_vm9, %v442_v33  }
  0xa6   :  { %v510_v34 = vpop.permute.xlu1 %509  }
  0xa7   :  { %811 = vst.msk [vmem:[%s1499_s1 + $0x18] sm:$0xff] %vm443_vm9, %v510_v34  }
  0xa8   :  { %v487_v35 = vpop.permute.xlu0 %486  }
  0xa9   :  { %806 = vst.msk [vmem:[%s1499_s1 + $0x10] sm:$0xff] %vm443_vm9, %v487_v35  }
  0xab   :  { %v555_v36 = vpop.permute.xlu1 %554  }
  0xac   :  { %820 = vst.msk [vmem:[%s1499_s1 + $0x8] sm:$0xff] %vm534_vm10, %v555_v36  }
  0xad   :  { %v533_v37 = vpop.permute.xlu0 %532  }
  0xae   :  { %535 = vst.msk [vmem:[%s1499_s1] sm:$0xff] %vm534_vm10, %v533_v37  }
  0xb0   :  { %v601_v38 = vpop.permute.xlu1 %600  }
  0xb1   :  { %830 = vst.msk [vmem:[%s1499_s1 + $0x18] sm:$0xff] %vm534_vm10, %v601_v38  }
  0xb2   :  { %v578_v39 = vpop.permute.xlu0 %577  }
  0xb3   :  { %825 = vst.msk [vmem:[%s1499_s1 + $0x10] sm:$0xff] %vm534_vm10, %v578_v39  }
  0xb5   :  { %v646_v40 = vpop.permute.xlu1 %645  }
  0xb6   :  { %839 = vst.msk [vmem:[%s1499_s1 + $0x8] sm:$0xff] %vm625_vm11, %v646_v40  }
  0xb7   :  { %v624_v41 = vpop.permute.xlu0 %623  }
  0xb8   :  { %626 = vst.msk [vmem:[%s1499_s1] sm:$0xff] %vm625_vm11, %v624_v41  }
  0xbb   :  { %v692_v42 = vpop.permute.xlu1 %691  }
  0xbc   :  { %849 = vst.msk [vmem:[%s1499_s1 + $0x18] sm:$0xff] %vm625_vm11, %v692_v42   ;;  %v669_v43 = vpop.permute.xlu0 %668  }
  0xbd   :  { %844 = vst.msk [vmem:[%s1499_s1 + $0x10] sm:$0xff] %vm625_vm11, %v669_v43  }

// kernel: rlfb1_forward.1
= control target key start
LH: loop header
LB: loop body
LE: loop exit
PB: predicated region body
PF: predicated region fallthrough
CT: control target
= control target key end

     0   :  { %v5104_v3 = vmov 0   ;;  %vm107_vm0 = vcmask 261120   ;;  %s6852_s0 = inlined_call_operand.vmem [shape: f32[32,256], index: 0, kind: input, shape index: {}, may-alias: {0,23}]   ;;  %s6853_s1 = inlined_call_operand.vmem [shape: bf16[32,32], index: 1, kind: input, shape index: {}]   ;;  %s6854_s2 = inlined_call_operand.vmem [shape: bf16[32,32], index: 2, kind: input, shape index: {}]   ;;  %s6855_s3 = inlined_call_operand.vmem [shape: bf16[256,256], index: 3, kind: input, shape index: {}]   ;;  %s6856_s4 = inlined_call_operand.vmem [shape: bf16[256,256], index: 4, kind: input, shape index: {}]   ;;  %s6857_s5 = inlined_call_operand.vmem [shape: bf16[256,256], index: 5, kind: input, shape index: {}]   ;;  %s6858_s7 = inlined_call_operand.vmem [shape: bf16[256,256], index: 7, kind: input, shape index: {}]   ;;  %s6859_s6 = inlined_call_operand.vmem [shape: f32[1,256], index: 6, kind: input, shape index: {}]   ;;  %s6860_s8 = inlined_call_operand.vmem [shape: bf16[256,256], index: 8, kind: input, shape index: {}]   ;;  %s6861_s9 = inlined_call_operand.vmem [shape: bf16[256,256], index: 9, kind: input, shape index: {}]   ;;  %s6862_s11 = inlined_call_operand.vmem [shape: bf16[256,256], index: 11, kind: input, shape index: {}]   ;;  %s6863_s10 = inlined_call_operand.vmem [shape: f32[1,256], index: 10, kind: input, shape index: {}]   ;;  %s6864_s12 = inlined_call_operand.vmem [shape: bf16[256,256], index: 12, kind: input, shape index: {}]   ;;  %s6865_s13 = inlined_call_operand.vmem [shape: bf16[256,256], index: 13, kind: input, shape index: {}]   ;;  %s6866_s19 = inlined_call_operand.vmem [shape: f32[256,16], index: 19, kind: input, shape index: {}]   ;;  %s6867_s14 = inlined_call_operand.vmem [shape: f32[1,256], index: 14, kind: input, shape index: {}]   ;;  %s6868_s20 = inlined_call_operand.vmem [shape: f32[16,256], index: 20, kind: input, shape index: {}]   ;;  %s6869_s16 = inlined_call_operand.<no memory space> [shape: f32[1,1], index: 16, kind: input, shape index: {}]   ;;  %s6870_s15 = inlined_call_operand.vmem [shape: f32[1,16], index: 15, kind: input, shape index: {}]   ;;  %s6871_s17 = inlined_call_operand.vmem [shape: f32[1,16], index: 17, kind: input, shape index: {}]   ;;  %s6872_s18 = inlined_call_operand.vmem [shape: f32[1,16], index: 18, kind: input, shape index: {}]   ;;  %s6873_s21 = inlined_call_operand.vmem [shape: bf16[256,256], index: 21, kind: input, shape index: {}]   ;;  %s6874_s22 = inlined_call_operand.vmem [shape: f32[1,256], index: 22, kind: input, shape index: {}]   ;;  %s6875_s23 = inlined_call_operand.vmem [shape: f32[32,256], index: 23, kind: output, shape index: {}, may-alias: {0,23}]  }
   0x1   :  { %6883 = sst [smem:[#allocation3_spill]] %s6852_s0  ;;  %146 = vmatprep.mubr.bf16.mxu0 %v5104_v3  ;;  %219 = vmatprep.mubr.bf16.mxu1 %v5104_v3 }
   0x2   :  { %6884 = sst [smem:[#allocation4_spill]] %s6853_s1  ;;  %s6891_s24 = sld [smem:[#allocation3_spill]]  ;;  %4594 = vset.pattern.permute.xlu0 %v5104_v3  ;;  %4595 = vset.pattern.permute.xlu1 %v5104_v3 }
   0x3   :  { %6885 = sst [smem:[#allocation5_spill]] %s6854_s2  ;;  %s6892_s1 = sld [smem:[#allocation4_spill]] }
   0x4   :  { %6886 = sst [smem:[#allocation6_spill]] %s6855_s3 }
   0x5   :  { %6887 = sst [smem:[#allocation7_spill]] %s6856_s4  ;;  %s6894_s28 = sld [smem:[#allocation6_spill]] }
   0x6   :  { %6888 = sst [smem:[#allocation8_spill]] %s6857_s5  ;;  %s6895_s0 = sld [smem:[#allocation7_spill]] }
   0x7   :  { %6889 = sst [smem:[#allocation9_spill]] %s6858_s7  ;;  %s6893_s7 = sld [smem:[#allocation5_spill]] }
   0x8   :  { %6890 = sst [smem:[#allocation10_spill]] %s6859_s6  ;;  %v78_v0 = vld [vmem:[%s6891_s24 + $0x8] sm:$0xff]  ;;  %v80_v1 = vld [vmem:[%s6891_s24 + $0x18] sm:$0xff]  ;;  %v77_v2 = vld [vmem:[%s6891_s24] sm:$0xff]  ;;  %s6896_s29 = sld [smem:[#allocation8_spill]] }
   0x9   :  { %v5237_v4 = vpack.c.bf16 %v80_v1, %v78_v0  ;;  %v79_v5 = vld [vmem:[%s6891_s24 + $0x10] sm:$0xff]  ;;  %v82_v6 = vld [vmem:[%s6891_s24 + $0x28] sm:$0xff]  ;;  %v84_v7 = vld [vmem:[%s6891_s24 + $0x38] sm:$0xff]  ;;  %s6897_s2 = sld [smem:[#allocation10_spill]]  ;;  %s6898_s3 = sld [smem:[#allocation9_spill]] }
   0xa   :  { %v5250_v8 = vpack.c.bf16 %v79_v5, %v77_v2  ;;  %v5252_v9 = vpack.c.bf16 %v84_v7, %v82_v6  ;;  %v81_v10 = vld [vmem:[%s6891_s24 + $0x20] sm:$0xff]  ;;  %v83_v11 = vld [vmem:[%s6891_s24 + $0x30] sm:$0xff]  ;;  %v5304_v20 = vld [vmem:[%s6892_s1 + $0x8] sm:$0xff]  }
   0xb   :  { %114 = vmatprep.subr.bf16.mxu0 %v5237_v4  ;;  %187 = vmatprep.subr.bf16.mxu1 %v5237_v4  ;;  %v5263_v12 = vpack.c.bf16 %v83_v11, %v81_v10  ;;  %v5271_v13 = vld [vmem:[%s6892_s1] sm:$0xff]   ;;  %v4605_v17 = vld [vmem:[%s6894_s28 + $0x14] ss:$8 sps:$4 sm:$0xff]   ;;  %v4603_v18 = vld [vmem:[%s6894_s28 + $0x10] ss:$8 sps:$4 sm:$0xff]  }
   0xc   :  { %115 = vmatpush1.bf16.msra.mxu0 %v5250_v8  ;;  %188 = vmatpush1.bf16.msra.mxu1 %v5250_v8  ;;  %v4602_v15 = vld [vmem:[%s6894_s28 + $0x4] ss:$8 sps:$4 sm:$0xff]   ;;  %v4600_v16 = vld [vmem:[%s6894_s28] ss:$8 sps:$4 sm:$0xff]   ;;  %v4611_v23 = vld [vmem:[%s6894_s28 + $0x34] ss:$8 sps:$4 sm:$0xff]  }
   0xd   :  { %116 = vmatprep.subr.bf16.mxu0 %v5252_v9  ;;  %189 = vmatprep.subr.bf16.mxu1 %v5252_v9  ;;  %v5276_v14 = vld [vmem:[%s6893_s7] sm:$0xff]   ;;  %v5309_v21 = vld [vmem:[%s6893_s7 + $0x8] sm:$0xff]   ;;  %v4609_v24 = vld [vmem:[%s6894_s28 + $0x30] ss:$8 sps:$4 sm:$0xff]  }
   0xe   :  { %v4608_v19 = vld [vmem:[%s6894_s28 + $0x24] ss:$8 sps:$4 sm:$0xff]   ;;  %v4606_v22 = vld [vmem:[%s6894_s28 + $0x20] ss:$8 sps:$4 sm:$0xff]   ;;  %v4617_v27 = vld [vmem:[%s6894_s28 + $0x54] ss:$8 sps:$4 sm:$0xff]  }
   0xf   :  { %v4614_v25 = vld [vmem:[%s6894_s28 + $0x44] ss:$8 sps:$4 sm:$0xff]   ;;  %v4612_v26 = vld [vmem:[%s6894_s28 + $0x40] ss:$8 sps:$4 sm:$0xff]   ;;  %v4615_v28 = vld [vmem:[%s6894_s28 + $0x50] ss:$8 sps:$4 sm:$0xff]  }
  0x10   :  { %117 = vmatpush1.bf16.msra.mxu0 %v5263_v12  ;;  %190 = vmatpush1.bf16.msra.mxu1 %v5263_v12  ;;  %v4620_v29 = vld [vmem:[%s6894_s28 + $0x64] ss:$8 sps:$4 sm:$0xff]   ;;  %v4618_v30 = vld [vmem:[%s6894_s28 + $0x60] ss:$8 sps:$4 sm:$0xff]   ;;  %v4623_v31 = vld [vmem:[%s6894_s28 + $0x74] ss:$8 sps:$4 sm:$0xff]  }
  0x11   :  { %468 = vmatprep.subr.bf16.mxu0 %v4602_v15  ;;  %v4621_v32 = vld [vmem:[%s6894_s28 + $0x70] ss:$8 sps:$4 sm:$0xff]   ;;  %v4626_v33 = vld [vmem:[%s6894_s28 + $0x84] ss:$8 sps:$4 sm:$0xff]   ;;  %v4624_v34 = vld [vmem:[%s6894_s28 + $0x80] ss:$8 sps:$4 sm:$0xff]  }
  0x12   :  { %v4629_v35 = vld [vmem:[%s6894_s28 + $0x94] ss:$8 sps:$4 sm:$0xff]   ;;  %v4627_v36 = vld [vmem:[%s6894_s28 + $0x90] ss:$8 sps:$4 sm:$0xff]   ;;  %v4632_v37 = vld [vmem:[%s6894_s28 + $0xa4] ss:$8 sps:$4 sm:$0xff]  }
  0x13   :  { %3918 = vmatmul.mubr.msk.bf16.vlgmr.msra.gmra.mrb[0].mxu0 %vm107_vm0, %v5271_v13  ;;  %3922 = vmatmul.mubr.msk.bf16.vlgmr.msra.gmra.mrb[0].mxu1 %vm107_vm0, %v5276_v14  ;;  %v4630_v38 = vld [vmem:[%s6894_s28 + $0xa0] ss:$8 sps:$4 sm:$0xff]   ;;  %v4635_v39 = vld [vmem:[%s6894_s28 + $0xb4] ss:$8 sps:$4 sm:$0xff]   ;;  %v4633_v40 = vld [vmem:[%s6894_s28 + $0xb0] ss:$8 sps:$4 sm:$0xff]  }
  0x14   :  { %156 = vmatprep.mubr.bf16.mxu0 %v5104_v3  ;;  %229 = vmatprep.mubr.bf16.mxu1 %v5104_v3  ;;  %v4638_v41 = vld [vmem:[%s6894_s28 + $0xc4] ss:$8 sps:$4 sm:$0xff]   ;;  %v4636_v42 = vld [vmem:[%s6894_s28 + $0xc0] ss:$8 sps:$4 sm:$0xff]   ;;  %v4641_v43 = vld [vmem:[%s6894_s28 + $0xd4] ss:$8 sps:$4 sm:$0xff]  }
  0x15   :  { %469 = vmatpush1.bf16.msra.mxu0 %v4600_v16  ;;  %v4639_v44 = vld [vmem:[%s6894_s28 + $0xd0] ss:$8 sps:$4 sm:$0xff]   ;;  %v4644_v45 = vld [vmem:[%s6894_s28 + $0xe4] ss:$8 sps:$4 sm:$0xff]   ;;  %v4642_v46 = vld [vmem:[%s6894_s28 + $0xe0] ss:$8 sps:$4 sm:$0xff]  }
  0x16   :  { %470 = vmatprep.subr.bf16.mxu0 %v4605_v17  ;;  %v4647_v47 = vld [vmem:[%s6894_s28 + $0xf4] ss:$8 sps:$4 sm:$0xff]   ;;  %v4645_v48 = vld [vmem:[%s6894_s28 + $0xf0] ss:$8 sps:$4 sm:$0xff]   ;;  %v4650_v49 = vld [vmem:[%s6895_s0 + $0x4] ss:$8 sps:$4 sm:$0xff]  }
  0x17   :  { %v4648_v61 = vld [vmem:[%s6895_s0] ss:$8 sps:$4 sm:$0xff]   ;;  %v4653_v63 = vld [vmem:[%s6895_s0 + $0x14] ss:$8 sps:$4 sm:$0xff]   ;;  %v4651_v0 = vld [vmem:[%s6895_s0 + $0x10] ss:$8 sps:$4 sm:$0xff]  }
  0x18   :  { %v4656_v5 = vld [vmem:[%s6895_s0 + $0x24] ss:$8 sps:$4 sm:$0xff]  }
  0x19   :  { %471 = vmatpush1.bf16.msra.mxu0 %v4603_v18 }
  0x1a   :  { %472 = vmatprep.subr.bf16.mxu0 %v4608_v19  ;;  %v4654_v19 = vld [vmem:[%s6895_s0 + $0x20] ss:$8 sps:$4 sm:$0xff]  }
  0x1b   :  { %3919 = vmatmul.mubr.msk.bf16.gmra.mrb[4].mxu0 %vm107_vm0, %v5304_v20  ;;  %3923 = vmatmul.mubr.msk.bf16.gmra.mrb[4].mxu1 %vm107_vm0, %v5309_v21 }
  0x1c   :  { %1077 = vmatprep.mubr.bf16.mxu1 %v5104_v3 }
  0x1d   :  { %473 = vmatpush1.bf16.msra.mxu0 %v4606_v22 }
  0x1e   :  { %474 = vmatprep.subr.bf16.mxu0 %v4611_v23 }
  0x21   :  { %475 = vmatpush1.bf16.msra.mxu0 %v4609_v24  ;;  %v4659_v24 = vld [vmem:[%s6895_s0 + $0x34] ss:$8 sps:$4 sm:$0xff]  }
  0x22   :  { %476 = vmatprep.subr.bf16.mxu0 %v4614_v25  ;;  %v4657_v25 = vld [vmem:[%s6895_s0 + $0x30] ss:$8 sps:$4 sm:$0xff]  }
  0x25   :  { %477 = vmatpush1.bf16.msra.mxu0 %v4612_v26  ;;  %v4662_v26 = vld [vmem:[%s6895_s0 + $0x44] ss:$8 sps:$4 sm:$0xff]  }
  0x26   :  { %478 = vmatprep.subr.bf16.mxu0 %v4617_v27  ;;  %v4660_v27 = vld [vmem:[%s6895_s0 + $0x40] ss:$8 sps:$4 sm:$0xff]  }
  0x29   :  { %479 = vmatpush1.bf16.msra.mxu0 %v4615_v28  ;;  %v4665_v28 = vld [vmem:[%s6895_s0 + $0x54] ss:$8 sps:$4 sm:$0xff]  }
  0x2a   :  { %480 = vmatprep.subr.bf16.mxu0 %v4620_v29  ;;  %v4668_v29 = vld [vmem:[%s6895_s0 + $0x64] ss:$8 sps:$4 sm:$0xff]  }
  0x2d   :  { %481 = vmatpush1.bf16.msra.mxu0 %v4618_v30  ;;  %v4666_v30 = vld [vmem:[%s6895_s0 + $0x60] ss:$8 sps:$4 sm:$0xff]  }
  0x2e   :  { %482 = vmatprep.subr.bf16.mxu0 %v4623_v31  ;;  %v4671_v31 = vld [vmem:[%s6895_s0 + $0x74] ss:$8 sps:$4 sm:$0xff]  }
  0x31   :  { %483 = vmatpush1.bf16.msra.mxu0 %v4621_v32  ;;  %v4669_v32 = vld [vmem:[%s6895_s0 + $0x70] ss:$8 sps:$4 sm:$0xff]  }
  0x32   :  { %484 = vmatprep.subr.bf16.mxu0 %v4626_v33  ;;  %v4674_v33 = vld [vmem:[%s6895_s0 + $0x84] ss:$8 sps:$4 sm:$0xff]  }
  0x35   :  { %485 = vmatpush1.bf16.msra.mxu0 %v4624_v34  ;;  %v4672_v34 = vld [vmem:[%s6895_s0 + $0x80] ss:$8 sps:$4 sm:$0xff]  }
  0x36   :  { %486 = vmatprep.subr.bf16.mxu0 %v4629_v35  ;;  %v4677_v35 = vld [vmem:[%s6895_s0 + $0x94] ss:$8 sps:$4 sm:$0xff]  }
  0x39   :  { %487 = vmatpush1.bf16.msra.mxu0 %v4627_v36  ;;  %v4675_v36 = vld [vmem:[%s6895_s0 + $0x90] ss:$8 sps:$4 sm:$0xff]  }
  0x3a   :  { %488 = vmatprep.subr.bf16.mxu0 %v4632_v37  ;;  %v4680_v37 = vld [vmem:[%s6895_s0 + $0xa4] ss:$8 sps:$4 sm:$0xff]  }
  0x3d   :  { %489 = vmatpush1.bf16.msra.mxu0 %v4630_v38  ;;  %v4678_v38 = vld [vmem:[%s6895_s0 + $0xa0] ss:$8 sps:$4 sm:$0xff]  }
  0x3e   :  { %490 = vmatprep.subr.bf16.mxu0 %v4635_v39  ;;  %v4683_v39 = vld [vmem:[%s6895_s0 + $0xb4] ss:$8 sps:$4 sm:$0xff]  }
  0x41   :  { %491 = vmatpush1.bf16.msra.mxu0 %v4633_v40  ;;  %v4681_v40 = vld [vmem:[%s6895_s0 + $0xb0] ss:$8 sps:$4 sm:$0xff]  }
  0x42   :  { %492 = vmatprep.subr.bf16.mxu0 %v4638_v41  ;;  %v4686_v41 = vld [vmem:[%s6895_s0 + $0xc4] ss:$8 sps:$4 sm:$0xff]  }
  0x45   :  { %493 = vmatpush1.bf16.msra.mxu0 %v4636_v42  ;;  %v4684_v42 = vld [vmem:[%s6895_s0 + $0xc0] ss:$8 sps:$4 sm:$0xff]  }
  0x46   :  { %494 = vmatprep.subr.bf16.mxu0 %v4641_v43  ;;  %v4689_v43 = vld [vmem:[%s6895_s0 + $0xd4] ss:$8 sps:$4 sm:$0xff]  }
  0x49   :  { %495 = vmatpush1.bf16.msra.mxu0 %v4639_v44  ;;  %v4687_v44 = vld [vmem:[%s6895_s0 + $0xd0] ss:$8 sps:$4 sm:$0xff]  }
  0x4a   :  { %496 = vmatprep.subr.bf16.mxu0 %v4644_v45  ;;  %v4692_v45 = vld [vmem:[%s6895_s0 + $0xe4] ss:$8 sps:$4 sm:$0xff]  }
  0x4d   :  { %497 = vmatpush1.bf16.msra.mxu0 %v4642_v46  ;;  %v4690_v46 = vld [vmem:[%s6895_s0 + $0xe0] ss:$8 sps:$4 sm:$0xff]  }
  0x4e   :  { %498 = vmatprep.subr.bf16.mxu0 %v4647_v47  ;;  %v4695_v47 = vld [vmem:[%s6895_s0 + $0xf4] ss:$8 sps:$4 sm:$0xff]  }
  0x51   :  { %499 = vmatpush1.bf16.msra.mxu0 %v4645_v48  ;;  %v4693_v48 = vld [vmem:[%s6895_s0 + $0xf0] ss:$8 sps:$4 sm:$0xff]  }
  0x52   :  { %681 = vmatprep.subr.bf16.mxu0 %v4650_v49  ;;  %v4698_v49 = vld [vmem:[%s6896_s29 + $0x4] ss:$8 sps:$4 sm:$0xff]  }
  0xe6   :  { %v148_v50 = vpop.f32.mrb[0].mxu0  ;;  %v5400_v51 = vpop.f32.mrb[0].mxu1 }
  0xe7   :  { %v150_v52 = vpop.f32.mrb[1].mxu0  ;;  %v5402_v53 = vpop.f32.mrb[1].mxu1 }
  0xe8   :  { %v152_v54 = vpop.f32.mrb[2].mxu0  ;;  %v5404_v55 = vpop.f32.mrb[2].mxu1 }
  0xe9   :  { %v167_v56 = vpack.c.bf16 %v152_v54, %v148_v50  ;;  %v154_v57 = vpop.f32.mrb[3].mxu0  ;;  %v240_v58 = vpack.c.bf16 %v5404_v55, %v5400_v51  ;;  %v5408_v59 = vpop.f32.mrb[3].mxu1  ;;  %v4696_v50 = vld [vmem:[%s6896_s29] ss:$8 sps:$4 sm:$0xff]   ;;  %v4699_v54 = vld [vmem:[%s6896_s29 + $0x10] ss:$8 sps:$4 sm:$0xff]  }
  0xea   :  { %v168_v60 = vpack.c.bf16 %v154_v57, %v150_v52  ;;  %v241_v62 = vpack.c.bf16 %v5408_v59, %v5402_v53  ;;  %v4701_v52 = vld [vmem:[%s6896_s29 + $0x14] ss:$8 sps:$4 sm:$0xff]   ;;  %v4702_v57 = vld [vmem:[%s6896_s29 + $0x20] ss:$8 sps:$4 sm:$0xff]   ;;  %v4711_v53 = vld [vmem:[%s6896_s29 + $0x50] ss:$8 sps:$4 sm:$0xff]  }
  0xeb   :  { %v4716_v59 = vld [vmem:[%s6896_s29 + $0x64] ss:$8 sps:$4 sm:$0xff]  }
  0xec   :  { %500 = vmatprep.mubr.bf16.mxu0 %v168_v60  ;;  %v4710_v60 = vld [vmem:[%s6896_s29 + $0x44] ss:$8 sps:$4 sm:$0xff]  }
  0xed   :  { %501 = vmatmul.mubr.bf16.vlgmr.msra.gmra.mrb[8].mxu0 %v167_v56  ;;  %v4704_v56 = vld [vmem:[%s6896_s29 + $0x24] ss:$8 sps:$4 sm:$0xff]  }
  0xee   :  { %682 = vmatpush1.bf16.msra.mxu0 %v4648_v61  ;;  %v158_v1 = vpop.f32.mrb[4].mxu0  ;;  %v5421_v2 = vpop.f32.mrb[4].mxu1  ;;  %v4708_v61 = vld [vmem:[%s6896_s29 + $0x40] ss:$8 sps:$4 sm:$0xff]  }
  0xef   :  { %683 = vmatprep.subr.bf16.mxu0 %v4653_v63  ;;  %v160_v6 = vpop.f32.mrb[5].mxu0  ;;  %v5426_v7 = vpop.f32.mrb[5].mxu1  ;;  %v4719_v63 = vld [vmem:[%s6896_s29 + $0x74] ss:$8 sps:$4 sm:$0xff]  }
  0xf0   :  { %v162_v10 = vpop.f32.mrb[6].mxu0  ;;  %v5428_v11 = vpop.f32.mrb[6].mxu1 }
  0xf1   :  { %v169_v15 = vpack.c.bf16 %v162_v10, %v158_v1  ;;  %v164_v16 = vpop.f32.mrb[7].mxu0  ;;  %v242_v17 = vpack.c.bf16 %v5428_v11, %v5421_v2  ;;  %v5432_v18 = vpop.f32.mrb[7].mxu1  ;;  %v4722_v1 = vld [vmem:[%s6896_s29 + $0x84] ss:$8 sps:$4 sm:$0xff]   ;;  %v4723_v10 = vld [vmem:[%s6896_s29 + $0x90] ss:$8 sps:$4 sm:$0xff]  }
  0xf2   :  { %684 = vmatpush1.bf16.msra.mxu0 %v4651_v0  ;;  %v170_v22 = vpack.c.bf16 %v164_v16, %v160_v6  ;;  %v243_v23 = vpack.c.bf16 %v5432_v18, %v5426_v7  ;;  %v4717_v0 = vld [vmem:[%s6896_s29 + $0x70] ss:$8 sps:$4 sm:$0xff]   ;;  %v4725_v6 = vld [vmem:[%s6896_s29 + $0x94] ss:$8 sps:$4 sm:$0xff]   ;;  %v4726_v16 = vld [vmem:[%s6896_s29 + $0xa0] ss:$8 sps:$4 sm:$0xff]  }
  0xf3   :  { %685 = vmatprep.subr.bf16.mxu0 %v4656_v5  ;;  %v4720_v5 = vld [vmem:[%s6896_s29 + $0x80] ss:$8 sps:$4 sm:$0xff]  }
  0xf4   :  { %510 = vmatprep.mubr.bf16.mxu0 %v170_v22  ;;  %v4729_v22 = vld [vmem:[%s6896_s29 + $0xb0] ss:$8 sps:$4 sm:$0xff]  }
  0xf5   :  { %511 = vmatmul.mubr.bf16.gmra.mrb[12].mxu0 %v169_v15  ;;  %v4728_v15 = vld [vmem:[%s6896_s29 + $0xa4] ss:$8 sps:$4 sm:$0xff]  }
  0xf6   :  { %686 = vmatpush1.bf16.msra.mxu0 %v4654_v19  ;;  %713 = vmatprep.mubr.bf16.mxu0 %v5237_v4  ;;  %v4663_v4 = vld [vmem:[%s6895_s0 + $0x50] ss:$8 sps:$4 sm:$0xff]   ;;  %v4731_v19 = vld [vmem:[%s6896_s29 + $0xb4] ss:$8 sps:$4 sm:$0xff]  }
  0xf7   :  { %687 = vmatprep.subr.bf16.mxu0 %v4659_v24  ;;  %v4734_v24 = vld [vmem:[%s6896_s29 + $0xc4] ss:$8 sps:$4 sm:$0xff]  }
  0xfa   :  { %688 = vmatpush1.bf16.msra.mxu0 %v4657_v25  ;;  %v4732_v25 = vld [vmem:[%s6896_s29 + $0xc0] ss:$8 sps:$4 sm:$0xff]  }
  0xfb   :  { %689 = vmatprep.subr.bf16.mxu0 %v4662_v26  ;;  %v4737_v26 = vld [vmem:[%s6896_s29 + $0xd4] ss:$8 sps:$4 sm:$0xff]  }
  0xfe   :  { %690 = vmatpush1.bf16.msra.mxu0 %v4660_v27  ;;  %v4735_v27 = vld [vmem:[%s6896_s29 + $0xd0] ss:$8 sps:$4 sm:$0xff]  }
  0xff   :  { %691 = vmatprep.subr.bf16.mxu0 %v4665_v28  ;;  %v4740_v28 = vld [vmem:[%s6896_s29 + $0xe4] ss:$8 sps:$4 sm:$0xff]  }
 0x102   :  { %692 = vmatpush1.bf16.msra.mxu0 %v4663_v4  ;;  %v4738_v4 = vld [vmem:[%s6896_s29 + $0xe0] ss:$8 sps:$4 sm:$0xff]  }
 0x103   :  { %693 = vmatprep.subr.bf16.mxu0 %v4668_v29  ;;  %v4743_v29 = vld [vmem:[%s6896_s29 + $0xf4] ss:$8 sps:$4 sm:$0xff]  }
 0x106   :  { %694 = vmatpush1.bf16.msra.mxu0 %v4666_v30  ;;  %v4741_v30 = vld [vmem:[%s6896_s29 + $0xf0] ss:$8 sps:$4 sm:$0xff]  }
 0x107   :  { %695 = vmatprep.subr.bf16.mxu0 %v4671_v31  ;;  %v989_v31 = vlaneseq }
 0x10a   :  { %696 = vmatpush1.bf16.msra.mxu0 %v4669_v32  ;;  %v990_v32 = vshrl.u32 %v989_v31, 7  ;;  %v4776_v31 = vld [vmem:[%s6898_s3 + $0xa4] ss:$8 sps:$4 sm:$0xff]  }
 0x10b   :  { %697 = vmatprep.subr.bf16.mxu0 %v4674_v33 }
 0x10c   :  { %v5630_v33 = vsub.s32 0, %v990_v32  ;;  %v5635_v51 = vsub.s32 1, %v990_v32  ;;  %v4774_v32 = vld [vmem:[%s6898_s3 + $0xa0] ss:$8 sps:$4 sm:$0xff]  }
 0x10e   :  { %698 = vmatpush1.bf16.msra.mxu0 %v4672_v34  ;;  %v987_v34 = vld [vmem:[%s6897_s2] sm:$0x3] }
 0x10f   :  { %699 = vmatprep.subr.bf16.mxu0 %v4677_v35  ;;  %v992_v55 = vrot.slane %v987_v34, %v5630_v33 }
 0x112   :  { %700 = vmatpush1.bf16.msra.mxu0 %v4675_v36 }
 0x113   :  { %701 = vmatprep.subr.bf16.mxu0 %v4680_v37 }
 0x116   :  { %702 = vmatpush1.bf16.msra.mxu0 %v4678_v38 }
 0x117   :  { %703 = vmatprep.subr.bf16.mxu0 %v4683_v39 }
 0x11a   :  { %704 = vmatpush1.bf16.msra.mxu0 %v4681_v40 }
 0x11b   :  { %705 = vmatprep.subr.bf16.mxu0 %v4686_v41 }
 0x11e   :  { %706 = vmatpush1.bf16.msra.mxu0 %v4684_v42 }
 0x11f   :  { %707 = vmatprep.subr.bf16.mxu0 %v4689_v43 }
 0x122   :  { %708 = vmatpush1.bf16.msra.mxu0 %v4687_v44 }
 0x123   :  { %709 = vmatprep.subr.bf16.mxu0 %v4692_v45 }
 0x126   :  { %710 = vmatpush1.bf16.msra.mxu0 %v4690_v46 }
 0x127   :  { %711 = vmatprep.subr.bf16.mxu0 %v4695_v47 }
 0x12a   :  { %712 = vmatpush1.bf16.msra.mxu0 %v4693_v48 }
 0x12b   :  { %926 = vmatprep.subr.bf16.mxu0 %v4698_v49 }
 0x12d   :  { %714 = vmatmul.mubr.bf16.vlgmr.msra.gmra.mrb[8].mxu0 %v5250_v8  ;;  %v4707_v8 = vld [vmem:[%s6896_s29 + $0x34] ss:$8 sps:$4 sm:$0xff]  }
 0x12e   :  { %927 = vmatpush1.bf16.msra.mxu0 %v4696_v50  ;;  %723 = vmatprep.mubr.bf16.mxu0 %v5252_v9  ;;  %v4705_v9 = vld [vmem:[%s6896_s29 + $0x30] ss:$8 sps:$4 sm:$0xff]  }
 0x12f   :  { %928 = vmatprep.subr.bf16.mxu0 %v4701_v52 }
 0x132   :  { %929 = vmatpush1.bf16.msra.mxu0 %v4699_v54 }
 0x133   :  { %930 = vmatprep.subr.bf16.mxu0 %v4704_v56 }
 0x135   :  { %724 = vmatmul.mubr.bf16.gmra.mrb[12].mxu0 %v5263_v12  ;;  %v4713_v12 = vld [vmem:[%s6896_s29 + $0x54] ss:$8 sps:$4 sm:$0xff]  }
 0x136   :  { %931 = vmatpush1.bf16.msra.mxu0 %v4702_v57  ;;  %958 = vmatprep.mubr.bf16.mxu0 %v241_v62  ;;  %v4714_v62 = vld [vmem:[%s6896_s29 + $0x60] ss:$8 sps:$4 sm:$0xff]  }
 0x137   :  { %932 = vmatprep.subr.bf16.mxu0 %v4707_v8 }
 0x13a   :  { %933 = vmatpush1.bf16.msra.mxu0 %v4705_v9 }
 0x13b   :  { %934 = vmatprep.subr.bf16.mxu0 %v4710_v60 }
 0x13e   :  { %935 = vmatpush1.bf16.msra.mxu0 %v4708_v61 }
 0x13f   :  { %936 = vmatprep.subr.bf16.mxu0 %v4713_v12 }
 0x142   :  { %937 = vmatpush1.bf16.msra.mxu0 %v4711_v53 }
 0x143   :  { %938 = vmatprep.subr.bf16.mxu0 %v4716_v59 }
 0x146   :  { %939 = vmatpush1.bf16.msra.mxu0 %v4714_v62 }
 0x147   :  { %940 = vmatprep.subr.bf16.mxu0 %v4719_v63 }
 0x14a   :  { %941 = vmatpush1.bf16.msra.mxu0 %v4717_v0 }
 0x14b   :  { %942 = vmatprep.subr.bf16.mxu0 %v4722_v1  ;;  %v4746_v1 = vld [vmem:[%s6898_s3 + $0x4] ss:$8 sps:$4 sm:$0xff]  }
 0x14e   :  { %943 = vmatpush1.bf16.msra.mxu0 %v4720_v5  ;;  %v4747_v5 = vld [vmem:[%s6898_s3 + $0x10] ss:$8 sps:$4 sm:$0xff]  }
 0x14f   :  { %944 = vmatprep.subr.bf16.mxu0 %v4725_v6  ;;  %v4752_v6 = vld [vmem:[%s6898_s3 + $0x24] ss:$8 sps:$4 sm:$0xff]  }
 0x152   :  { %945 = vmatpush1.bf16.msra.mxu0 %v4723_v10  ;;  %v4750_v10 = vld [vmem:[%s6898_s3 + $0x20] ss:$8 sps:$4 sm:$0xff]  }
 0x153   :  { %946 = vmatprep.subr.bf16.mxu0 %v4728_v15  ;;  %v4753_v15 = vld [vmem:[%s6898_s3 + $0x30] ss:$8 sps:$4 sm:$0xff]  }
 0x156   :  { %947 = vmatpush1.bf16.msra.mxu0 %v4726_v16  ;;  %v4758_v16 = vld [vmem:[%s6898_s3 + $0x44] ss:$8 sps:$4 sm:$0xff]  }
 0x157   :  { %948 = vmatprep.subr.bf16.mxu0 %v4731_v19  ;;  %v4756_v19 = vld [vmem:[%s6898_s3 + $0x40] ss:$8 sps:$4 sm:$0xff]  }
 0x15a   :  { %949 = vmatpush1.bf16.msra.mxu0 %v4729_v22  ;;  %v4759_v22 = vld [vmem:[%s6898_s3 + $0x50] ss:$8 sps:$4 sm:$0xff]  }
 0x15b   :  { %950 = vmatprep.subr.bf16.mxu0 %v4734_v24  ;;  %v4764_v24 = vld [vmem:[%s6898_s3 + $0x64] ss:$8 sps:$4 sm:$0xff]  }
 0x15e   :  { %951 = vmatpush1.bf16.msra.mxu0 %v4732_v25  ;;  %v4762_v25 = vld [vmem:[%s6898_s3 + $0x60] ss:$8 sps:$4 sm:$0xff]  }
 0x15f   :  { %952 = vmatprep.subr.bf16.mxu0 %v4737_v26  ;;  %v4767_v26 = vld [vmem:[%s6898_s3 + $0x74] ss:$8 sps:$4 sm:$0xff]  }
 0x162   :  { %953 = vmatpush1.bf16.msra.mxu0 %v4735_v27  ;;  %v4765_v27 = vld [vmem:[%s6898_s3 + $0x70] ss:$8 sps:$4 sm:$0xff]  }
 0x163   :  { %954 = vmatprep.subr.bf16.mxu0 %v4740_v28  ;;  %v4770_v28 = vld [vmem:[%s6898_s3 + $0x84] ss:$8 sps:$4 sm:$0xff]  }
 0x166   :  { %955 = vmatpush1.bf16.msra.mxu0 %v4738_v4  ;;  %v4768_v4 = vld [vmem:[%s6898_s3 + $0x80] ss:$8 sps:$4 sm:$0xff]  }
 0x167   :  { %956 = vmatprep.subr.bf16.mxu0 %v4743_v29  ;;  %v4773_v29 = vld [vmem:[%s6898_s3 + $0x94] ss:$8 sps:$4 sm:$0xff]  }
 0x16a   :  { %957 = vmatpush1.bf16.msra.mxu0 %v4741_v30  ;;  %v4771_v30 = vld [vmem:[%s6898_s3 + $0x90] ss:$8 sps:$4 sm:$0xff]  }
 0x16d   :  { %959 = vmatmul.mubr.bf16.vlgmr.msra.gmra.mrb[8].mxu0 %v240_v58  ;;  %v996_v58 = vrot.slane %v987_v34, %v5635_v51  ;;  %v4779_v34 = vld [vmem:[%s6898_s3 + $0xb4] ss:$8 sps:$4 sm:$0xff]  }
 0x16e   :  { %968 = vmatprep.mubr.bf16.mxu0 %v243_v23 }
 0x175   :  { %969 = vmatmul.mubr.bf16.gmra.mrb[12].mxu0 %v242_v17 }
 0x176   :  { %1067 = vmatprep.mubr.bf16.mxu0 %v5104_v3 }
 0x240   :  { %v960_v7 = vpop.f32.mrb[8].mxu0 }
 0x241   :  { %v999_v18 = vadd.f32 %v992_v55, %v960_v7  ;;  %v962_v2 = vpop.f32.mrb[9].mxu0  ;;  %v4780_v7 = vld [vmem:[%s6898_s3 + $0xc0] ss:$8 sps:$4 sm:$0xff]  }
 0x242   :  { %v1000_v11 = vadd.f32 %v996_v58, %v962_v2  ;;  %v964_v17 = vpop.f32.mrb[10].mxu0  ;;  %v4783_v2 = vld [vmem:[%s6898_s3 + $0xd0] ss:$8 sps:$4 sm:$0xff]  }
 0x243   :  { %v1015_v23 = vmul.f32 0.05, %v999_v18  ;;  %v1001_v35 = vadd.f32 %v992_v55, %v964_v17  ;;  %v966_v36 = vpop.f32.mrb[11].mxu0  ;;  %vm1007_vm1 = vcmp.ge.f32.partialorder %v999_v18, 0.0  ;;  %v4786_v17 = vld [vmem:[%s6898_s3 + $0xe0] ss:$8 sps:$4 sm:$0xff]  }
 0x244   :  { %v1016_v37 = vmul.f32 0.05, %v1000_v11  ;;  %v1002_v38 = vadd.f32 %v996_v58, %v966_v36  ;;  %vm1008_vm2 = vcmp.ge.f32.partialorder %v1000_v11, 0.0  ;;  %v4794_v36 = vld [vmem:[%s6860_s8 + $0x4] ss:$8 sps:$4 sm:$0xff]  }
 0x245   :  { %vm1009_vm3 = vcmp.ge.f32.partialorder %v1001_v35, 0.0  ;;  %v1017_v39 = vmul.f32 0.05, %v1001_v35  ;;  %v1023_v41 = vsel %vm1007_vm1, %v999_v18, %v1015_v23  ;;  %v4785_v18 = vld [vmem:[%s6898_s3 + $0xd4] ss:$8 sps:$4 sm:$0xff]  }
 0x246   :  { %vm1010_vm4 = vcmp.ge.f32.partialorder %v1002_v38, 0.0  ;;  %v1018_v40 = vmul.f32 0.05, %v1002_v38  ;;  %v1024_v43 = vsel %vm1008_vm2, %v1000_v11, %v1016_v37  ;;  %v4788_v11 = vld [vmem:[%s6898_s3 + $0xe4] ss:$8 sps:$4 sm:$0xff]  }
 0x247   :  { %v1025_v42 = vsel %vm1009_vm3, %v1001_v35, %v1017_v39  ;;  %v4791_v23 = vld [vmem:[%s6898_s3 + $0xf4] ss:$8 sps:$4 sm:$0xff]   ;;  %v4789_v35 = vld [vmem:[%s6898_s3 + $0xf0] ss:$8 sps:$4 sm:$0xff]  }
 0x248   :  { %v5639_v44 = vpack.c.bf16 %v1025_v42, %v1023_v41  ;;  %v1026_v45 = vsel %vm1010_vm4, %v1002_v38, %v1018_v40  ;;  %v970_v46 = vpop.f32.mrb[12].mxu0 }
 0x249   :  { %v5641_v47 = vpack.c.bf16 %v1026_v45, %v1024_v43  ;;  %v1003_v48 = vadd.f32 %v992_v55, %v970_v46  ;;  %v972_v49 = vpop.f32.mrb[13].mxu0 }
 0x24a   :  { %v1004_v50 = vadd.f32 %v996_v58, %v972_v49  ;;  %v974_v52 = vpop.f32.mrb[14].mxu0 }
 0x24b   :  { %v1019_v54 = vmul.f32 0.05, %v1003_v48  ;;  %v1005_v56 = vadd.f32 %v992_v55, %v974_v52  ;;  %v976_v57 = vpop.f32.mrb[15].mxu0  ;;  %1035 = vmatprep.subr.bf16.mxu0 %v5641_v47  ;;  %4540 = vmatprep.subr.bf16.mxu1 %v5641_v47  ;;  %vm1011_vm5 = vcmp.ge.f32.partialorder %v1003_v48, 0.0  ;;  %v4777_v55 = vld [vmem:[%s6898_s3 + $0xb0] ss:$8 sps:$4 sm:$0xff]  }
 0x24c   :  { %v1020_v8 = vmul.f32 0.05, %v1004_v50  ;;  %v1006_v9 = vadd.f32 %v996_v58, %v976_v57  ;;  %1036 = vmatpush1.bf16.msra.mxu0 %v5639_v44  ;;  %4542 = vmatpush1.bf16.msra.mxu1 %v5639_v44  ;;  %vm1012_vm6 = vcmp.ge.f32.partialorder %v1004_v50, 0.0  ;;  %v4782_v58 = vld [vmem:[%s6898_s3 + $0xc4] ss:$8 sps:$4 sm:$0xff]  }
 0x24d   :  { %vm1013_vm7 = vcmp.ge.f32.partialorder %v1005_v56, 0.0  ;;  %v1021_v60 = vmul.f32 0.05, %v1005_v56  ;;  %v1027_v12 = vsel %vm1011_vm5, %v1003_v48, %v1019_v54  ;;  %v4797_v54 = vld [vmem:[%s6860_s8 + $0x14] ss:$8 sps:$4 sm:$0xff]   ;;  %vm2962_vm5 = vcmask 130048  }
 0x24e   :  { %vm1014_vm8 = vcmp.ge.f32.partialorder %v1006_v9, 0.0  ;;  %v1022_v61 = vmul.f32 0.05, %v1006_v9  ;;  %v1028_v59 = vsel %vm1012_vm6, %v1004_v50, %v1020_v8  ;;  %v4792_v50 = vld [vmem:[%s6860_s8] ss:$8 sps:$4 sm:$0xff]  }
 0x24f   :  { %v1029_v53 = vsel %vm1013_vm7, %v1005_v56, %v1021_v60  ;;  %v4795_v56 = vld [vmem:[%s6860_s8 + $0x10] ss:$8 sps:$4 sm:$0xff]   ;;  %v4800_v8 = vld [vmem:[%s6860_s8 + $0x24] ss:$8 sps:$4 sm:$0xff]  }
 0x250   :  { %v5647_v62 = vpack.c.bf16 %v1029_v53, %v1027_v12  ;;  %v1030_v63 = vsel %vm1014_vm8, %v1006_v9, %v1022_v61  ;;  %v4798_v53 = vld [vmem:[%s6860_s8 + $0x20] ss:$8 sps:$4 sm:$0xff]   ;;  %vm3148_vm8 = vcmask 122880  }
 0x251   :  { %v5649_v0 = vpack.c.bf16 %v1030_v63, %v1028_v59  ;;  %v4803_v63 = vld [vmem:[%s6860_s8 + $0x34] ss:$8 sps:$4 sm:$0xff]  }
 0x253   :  { %1037 = vmatprep.subr.bf16.mxu0 %v5649_v0  ;;  %4541 = vmatprep.subr.bf16.mxu1 %v5649_v0 }
 0x254   :  { %1038 = vmatpush1.bf16.msra.mxu0 %v5647_v62  ;;  %4543 = vmatpush1.bf16.msra.mxu1 %v5647_v62 }
 0x255   :  { %1092 = vmatprep.subr.bf16.mxu1 %v5641_v47 }
 0x257   :  { %4020 = vmatmul.mubr.msk.bf16.vlgmr.msra.gmra.mrb[16].mxu0 %vm107_vm0, %v5271_v13  ;;  %4021 = vmatmul.mubr.msk.bf16.vlgmr.msra.gmra.mrb[8].mxu1 %vm107_vm0, %v5304_v20  ;;  %v4744_v13 = vld [vmem:[%s6898_s3] ss:$8 sps:$4 sm:$0xff]   ;;  %v4749_v20 = vld [vmem:[%s6898_s3 + $0x14] ss:$8 sps:$4 sm:$0xff]  }
 0x258   :  { %1093 = vmatpush1.bf16.msra.mxu1 %v5639_v44  ;;  %1124 = vmatprep.mubr.bf16.mxu1 %v5104_v3 }
 0x259   :  { %1094 = vmatprep.subr.bf16.mxu1 %v5649_v0  ;;  %1972 = vmatprep.mubr.bf16.mxu0 %v5104_v3 }
 0x25c   :  { %1095 = vmatpush1.bf16.msra.mxu1 %v5647_v62 }
 0x25d   :  { %1373 = vmatprep.subr.bf16.mxu1 %v4746_v1  ;;  %v4801_v1 = vld [vmem:[%s6860_s8 + $0x30] ss:$8 sps:$4 sm:$0xff]  }
 0x25f   :  { %4022 = vmatmul.mubr.msk.bf16.vlgmr.msra.gmra.mrb[12].mxu1 %vm107_vm0, %v5276_v14  ;;  %v4755_v14 = vld [vmem:[%s6898_s3 + $0x34] ss:$8 sps:$4 sm:$0xff]  }
 0x260   :  { %1134 = vmatprep.mubr.bf16.mxu1 %v5104_v3  ;;  %1374 = vmatpush1.bf16.msra.mxu1 %v4744_v13 }
 0x261   :  { %1375 = vmatprep.subr.bf16.mxu1 %v4749_v20  ;;  %v4806_v20 = vld [vmem:[%s6860_s8 + $0x44] ss:$8 sps:$4 sm:$0xff]  }
 0x264   :  { %1376 = vmatpush1.bf16.msra.mxu1 %v4747_v5 }
 0x265   :  { %1377 = vmatprep.subr.bf16.mxu1 %v4752_v6 }
 0x267   :  { %4023 = vmatmul.mubr.msk.bf16.gmra.mrb[16].mxu1 %vm107_vm0, %v5309_v21  ;;  %v4761_v21 = vld [vmem:[%s6898_s3 + $0x54] ss:$8 sps:$4 sm:$0xff]  }
 0x268   :  { %1378 = vmatpush1.bf16.msra.mxu1 %v4750_v10 }
 0x269   :  { %1379 = vmatprep.subr.bf16.mxu1 %v4755_v14 }
 0x26c   :  { %1380 = vmatpush1.bf16.msra.mxu1 %v4753_v15 }
 0x26d   :  { %1381 = vmatprep.subr.bf16.mxu1 %v4758_v16  ;;  %v4809_v16 = vld [vmem:[%s6860_s8 + $0x54] ss:$8 sps:$4 sm:$0xff]  }
 0x270   :  { %1382 = vmatpush1.bf16.msra.mxu1 %v4756_v19  ;;  %v4807_v19 = vld [vmem:[%s6860_s8 + $0x50] ss:$8 sps:$4 sm:$0xff]  }
 0x271   :  { %1383 = vmatprep.subr.bf16.mxu1 %v4761_v21  ;;  %v4812_v21 = vld [vmem:[%s6860_s8 + $0x64] ss:$8 sps:$4 sm:$0xff]  }
 0x274   :  { %1384 = vmatpush1.bf16.msra.mxu1 %v4759_v22  ;;  %v4810_v22 = vld [vmem:[%s6860_s8 + $0x60] ss:$8 sps:$4 sm:$0xff]  }
 0x275   :  { %1385 = vmatprep.subr.bf16.mxu1 %v4764_v24  ;;  %v4815_v24 = vld [vmem:[%s6860_s8 + $0x74] ss:$8 sps:$4 sm:$0xff]  }
 0x278   :  { %1386 = vmatpush1.bf16.msra.mxu1 %v4762_v25  ;;  %v4813_v25 = vld [vmem:[%s6860_s8 + $0x70] ss:$8 sps:$4 sm:$0xff]  }
 0x279   :  { %1387 = vmatprep.subr.bf16.mxu1 %v4767_v26  ;;  %v4818_v26 = vld [vmem:[%s6860_s8 + $0x84] ss:$8 sps:$4 sm:$0xff]  }
 0x27c   :  { %1388 = vmatpush1.bf16.msra.mxu1 %v4765_v27  ;;  %v4816_v27 = vld [vmem:[%s6860_s8 + $0x80] ss:$8 sps:$4 sm:$0xff]  }
 0x27d   :  { %1389 = vmatprep.subr.bf16.mxu1 %v4770_v28  ;;  %v4821_v28 = vld [vmem:[%s6860_s8 + $0x94] ss:$8 sps:$4 sm:$0xff]  }
 0x280   :  { %1390 = vmatpush1.bf16.msra.mxu1 %v4768_v4  ;;  %v4819_v4 = vld [vmem:[%s6860_s8 + $0x90] ss:$8 sps:$4 sm:$0xff]  }
 0x281   :  { %1391 = vmatprep.subr.bf16.mxu1 %v4773_v29  ;;  %v4824_v29 = vld [vmem:[%s6860_s8 + $0xa4] ss:$8 sps:$4 sm:$0xff]  }
 0x284   :  { %1392 = vmatpush1.bf16.msra.mxu1 %v4771_v30  ;;  %v4822_v30 = vld [vmem:[%s6860_s8 + $0xa0] ss:$8 sps:$4 sm:$0xff]  }
 0x285   :  { %1393 = vmatprep.subr.bf16.mxu1 %v4776_v31  ;;  %v4827_v31 = vld [vmem:[%s6860_s8 + $0xb4] ss:$8 sps:$4 sm:$0xff]  }
 0x288   :  { %1394 = vmatpush1.bf16.msra.mxu1 %v4774_v32  ;;  %v4825_v32 = vld [vmem:[%s6860_s8 + $0xb0] ss:$8 sps:$4 sm:$0xff]  }
 0x289   :  { %1395 = vmatprep.subr.bf16.mxu1 %v4779_v34  ;;  %v4830_v34 = vld [vmem:[%s6860_s8 + $0xc4] ss:$8 sps:$4 sm:$0xff]  }
 0x28c   :  { %1396 = vmatpush1.bf16.msra.mxu1 %v4777_v55  ;;  %v4828_v55 = vld [vmem:[%s6860_s8 + $0xc0] ss:$8 sps:$4 sm:$0xff]  }
 0x28d   :  { %1397 = vmatprep.subr.bf16.mxu1 %v4782_v58  ;;  %v4833_v58 = vld [vmem:[%s6860_s8 + $0xd4] ss:$8 sps:$4 sm:$0xff]  }
 0x290   :  { %1398 = vmatpush1.bf16.msra.mxu1 %v4780_v7  ;;  %v4831_v7 = vld [vmem:[%s6860_s8 + $0xd0] ss:$8 sps:$4 sm:$0xff]  }
 0x291   :  { %1399 = vmatprep.subr.bf16.mxu1 %v4785_v18  ;;  %v4836_v18 = vld [vmem:[%s6860_s8 + $0xe4] ss:$8 sps:$4 sm:$0xff]  }
 0x294   :  { %1400 = vmatpush1.bf16.msra.mxu1 %v4783_v2  ;;  %v4834_v2 = vld [vmem:[%s6860_s8 + $0xe0] ss:$8 sps:$4 sm:$0xff]  }
 0x295   :  { %1401 = vmatprep.subr.bf16.mxu1 %v4788_v11  ;;  %v4839_v11 = vld [vmem:[%s6860_s8 + $0xf4] ss:$8 sps:$4 sm:$0xff]  }
 0x298   :  { %1402 = vmatpush1.bf16.msra.mxu1 %v4786_v17  ;;  %v4837_v17 = vld [vmem:[%s6860_s8 + $0xf0] ss:$8 sps:$4 sm:$0xff]  }
 0x299   :  { %1403 = vmatprep.subr.bf16.mxu1 %v4791_v23  ;;  %v4842_v23 = vld [vmem:[%s6861_s9 + $0x4] ss:$8 sps:$4 sm:$0xff]  }
 0x29c   :  { %1404 = vmatpush1.bf16.msra.mxu1 %v4789_v35  ;;  %v4840_v35 = vld [vmem:[%s6861_s9] ss:$8 sps:$4 sm:$0xff]  }
 0x29d   :  { %1586 = vmatprep.subr.bf16.mxu1 %v4794_v36  ;;  %v4845_v36 = vld [vmem:[%s6861_s9 + $0x14] ss:$8 sps:$4 sm:$0xff]  }
 0x32a   :  { %v1069_v37 = vpop.f32.mrb[16].mxu0  ;;  %v1079_v38 = vpop.f32.mrb[8].mxu1 }
 0x32b   :  { %v1071_v39 = vpop.f32.mrb[17].mxu0  ;;  %v1081_v40 = vpop.f32.mrb[9].mxu1 }
 0x32c   :  { %v1073_v41 = vpop.f32.mrb[18].mxu0  ;;  %v1083_v42 = vpop.f32.mrb[10].mxu1 }
 0x32d   :  { %v1088_v43 = vpack.c.bf16 %v1073_v41, %v1069_v37  ;;  %v1075_v45 = vpop.f32.mrb[19].mxu0  ;;  %v1090_v46 = vpack.c.bf16 %v1083_v42, %v1079_v38  ;;  %v1085_v48 = vpop.f32.mrb[11].mxu1  ;;  %v4843_v37 = vld [vmem:[%s6861_s9 + $0x10] ss:$8 sps:$4 sm:$0xff]   ;;  %v4848_v38 = vld [vmem:[%s6861_s9 + $0x24] ss:$8 sps:$4 sm:$0xff]  }
 0x32e   :  { %v1089_v49 = vpack.c.bf16 %v1075_v45, %v1071_v39  ;;  %v1091_v52 = vpack.c.bf16 %v1085_v48, %v1081_v40  ;;  %v4846_v39 = vld [vmem:[%s6861_s9 + $0x20] ss:$8 sps:$4 sm:$0xff]   ;;  %v4854_v40 = vld [vmem:[%s6861_s9 + $0x44] ss:$8 sps:$4 sm:$0xff]   ;;  %v4855_v42 = vld [vmem:[%s6861_s9 + $0x50] ss:$8 sps:$4 sm:$0xff]  }
 0x32f   :  { %v4852_v41 = vld [vmem:[%s6861_s9 + $0x40] ss:$8 sps:$4 sm:$0xff]   ;;  %v4861_v48 = vld [vmem:[%s6861_s9 + $0x70] ss:$8 sps:$4 sm:$0xff]  }
 0x330   :  { %1405 = vmatprep.mubr.bf16.mxu1 %v1089_v49  ;;  %v4858_v45 = vld [vmem:[%s6861_s9 + $0x60] ss:$8 sps:$4 sm:$0xff]   ;;  %v4866_v49 = vld [vmem:[%s6861_s9 + $0x84] ss:$8 sps:$4 sm:$0xff]  }
 0x331   :  { %1406 = vmatmul.mubr.bf16.vlgmr.msra.gmra.mrb[20].mxu1 %v1088_v43  ;;  %v4860_v43 = vld [vmem:[%s6861_s9 + $0x64] ss:$8 sps:$4 sm:$0xff]  }
 0x332   :  { %1587 = vmatpush1.bf16.msra.mxu1 %v4792_v50  ;;  %1415 = vmatprep.mubr.bf16.mxu1 %v1091_v52  ;;  %v5778_v57 = vpop.f32.mrb[12].mxu1  ;;  %v4864_v50 = vld [vmem:[%s6861_s9 + $0x80] ss:$8 sps:$4 sm:$0xff]   ;;  %v4869_v52 = vld [vmem:[%s6861_s9 + $0x94] ss:$8 sps:$4 sm:$0xff]  }
 0x333   :  { %1588 = vmatprep.subr.bf16.mxu1 %v4797_v54  ;;  %v5783_v9 = vpop.f32.mrb[13].mxu1  ;;  %v4867_v54 = vld [vmem:[%s6861_s9 + $0x90] ss:$8 sps:$4 sm:$0xff]  }
 0x334   :  { %v5785_v60 = vpop.f32.mrb[14].mxu1 }
 0x335   :  { %v1145_v61 = vpack.c.bf16 %v5785_v60, %v5778_v57  ;;  %v5789_v12 = vpop.f32.mrb[15].mxu1 }
 0x336   :  { %1589 = vmatpush1.bf16.msra.mxu1 %v4795_v56  ;;  %v1146_v59 = vpack.c.bf16 %v5789_v12, %v5783_v9  ;;  %v4872_v56 = vld [vmem:[%s6861_s9 + $0xa4] ss:$8 sps:$4 sm:$0xff]   ;;  %v4875_v9 = vld [vmem:[%s6861_s9 + $0xb4] ss:$8 sps:$4 sm:$0xff]   ;;  %v4873_v12 = vld [vmem:[%s6861_s9 + $0xb0] ss:$8 sps:$4 sm:$0xff]  }
 0x337   :  { %1590 = vmatprep.subr.bf16.mxu1 %v4800_v8  ;;  %v4870_v8 = vld [vmem:[%s6861_s9 + $0xa0] ss:$8 sps:$4 sm:$0xff]  }
 0x339   :  { %1416 = vmatmul.mubr.bf16.gmra.mrb[24].mxu1 %v1090_v46  ;;  %v4863_v46 = vld [vmem:[%s6861_s9 + $0x74] ss:$8 sps:$4 sm:$0xff]  }
 0x33a   :  { %1591 = vmatpush1.bf16.msra.mxu1 %v4798_v53  ;;  %1618 = vmatprep.mubr.bf16.mxu1 %v5641_v47  ;;  %v5803_v13 = vpop.f32.mrb[16].mxu1  ;;  %v4804_v47 = vld [vmem:[%s6860_s8 + $0x40] ss:$8 sps:$4 sm:$0xff]   ;;  %v4878_v53 = vld [vmem:[%s6861_s9 + $0xc4] ss:$8 sps:$4 sm:$0xff]  }
 0x33b   :  { %1592 = vmatprep.subr.bf16.mxu1 %v4803_v63  ;;  %v5808_v5 = vpop.f32.mrb[17].mxu1  ;;  %v4881_v63 = vld [vmem:[%s6861_s9 + $0xd4] ss:$8 sps:$4 sm:$0xff]  }
 0x33c   :  { %v5810_v6 = vpop.f32.mrb[18].mxu1 }
 0x33d   :  { %v1147_v10 = vpack.c.bf16 %v5810_v6, %v5803_v13  ;;  %v5814_v14 = vpop.f32.mrb[19].mxu1 }
 0x33e   :  { %1593 = vmatpush1.bf16.msra.mxu1 %v4801_v1  ;;  %v1148_v15 = vpack.c.bf16 %v5814_v14, %v5808_v5  ;;  %v4879_v1 = vld [vmem:[%s6861_s9 + $0xd0] ss:$8 sps:$4 sm:$0xff]  }
 0x33f   :  { %1594 = vmatprep.subr.bf16.mxu1 %v4806_v20  ;;  %v4884_v20 = vld [vmem:[%s6861_s9 + $0xe4] ss:$8 sps:$4 sm:$0xff]  }
 0x342   :  { %1595 = vmatpush1.bf16.msra.mxu1 %v4804_v47  ;;  %v4882_v47 = vld [vmem:[%s6861_s9 + $0xe0] ss:$8 sps:$4 sm:$0xff]  }
 0x343   :  { %1596 = vmatprep.subr.bf16.mxu1 %v4809_v16  ;;  %v4887_v16 = vld [vmem:[%s6861_s9 + $0xf4] ss:$8 sps:$4 sm:$0xff]  }
 0x346   :  { %1597 = vmatpush1.bf16.msra.mxu1 %v4807_v19  ;;  %v4885_v19 = vld [vmem:[%s6861_s9 + $0xf0] ss:$8 sps:$4 sm:$0xff]  }
 0x347   :  { %1598 = vmatprep.subr.bf16.mxu1 %v4812_v21  ;;  %v1892_v21 = vld [vmem:[%s6863_s10] sm:$0x3] }
 0x34a   :  { %1599 = vmatpush1.bf16.msra.mxu1 %v4810_v22  ;;  %v1897_v22 = vrot.slane %v1892_v21, %v5630_v33 }
 0x34b   :  { %1600 = vmatprep.subr.bf16.mxu1 %v4815_v24  ;;  %v1901_v24 = vrot.slane %v1892_v21, %v5635_v51  ;;  %v4915_v21 = vld [vmem:[%s6862_s11 + $0x90] ss:$8 sps:$4 sm:$0xff]  }
 0x34e   :  { %1601 = vmatpush1.bf16.msra.mxu1 %v4813_v25 }
 0x34f   :  { %1602 = vmatprep.subr.bf16.mxu1 %v4818_v26 }
 0x352   :  { %1603 = vmatpush1.bf16.msra.mxu1 %v4816_v27 }
 0x353   :  { %1604 = vmatprep.subr.bf16.mxu1 %v4821_v28 }
 0x356   :  { %1605 = vmatpush1.bf16.msra.mxu1 %v4819_v4 }
 0x357   :  { %1606 = vmatprep.subr.bf16.mxu1 %v4824_v29 }
 0x35a   :  { %1607 = vmatpush1.bf16.msra.mxu1 %v4822_v30 }
 0x35b   :  { %1608 = vmatprep.subr.bf16.mxu1 %v4827_v31 }
 0x35e   :  { %1609 = vmatpush1.bf16.msra.mxu1 %v4825_v32 }
 0x35f   :  { %1610 = vmatprep.subr.bf16.mxu1 %v4830_v34 }
 0x362   :  { %1611 = vmatpush1.bf16.msra.mxu1 %v4828_v55 }
 0x363   :  { %1612 = vmatprep.subr.bf16.mxu1 %v4833_v58 }
 0x366   :  { %1613 = vmatpush1.bf16.msra.mxu1 %v4831_v7 }
 0x367   :  { %1614 = vmatprep.subr.bf16.mxu1 %v4836_v18 }
 0x36a   :  { %1615 = vmatpush1.bf16.msra.mxu1 %v4834_v2 }
 0x36b   :  { %1616 = vmatprep.subr.bf16.mxu1 %v4839_v11 }
 0x36e   :  { %1617 = vmatpush1.bf16.msra.mxu1 %v4837_v17 }
 0x36f   :  { %1831 = vmatprep.subr.bf16.mxu1 %v4842_v23 }
 0x371   :  { %1619 = vmatmul.mubr.bf16.vlgmr.msra.gmra.mrb[20].mxu1 %v5639_v44  ;;  %v4851_v44 = vld [vmem:[%s6861_s9 + $0x34] ss:$8 sps:$4 sm:$0xff]  }
 0x372   :  { %1628 = vmatprep.mubr.bf16.mxu1 %v5649_v0  ;;  %1832 = vmatpush1.bf16.msra.mxu1 %v4840_v35  ;;  %v4849_v0 = vld [vmem:[%s6861_s9 + $0x30] ss:$8 sps:$4 sm:$0xff]  }
 0x373   :  { %1833 = vmatprep.subr.bf16.mxu1 %v4845_v36 }
 0x376   :  { %1834 = vmatpush1.bf16.msra.mxu1 %v4843_v37 }
 0x377   :  { %1835 = vmatprep.subr.bf16.mxu1 %v4848_v38 }
 0x379   :  { %1629 = vmatmul.mubr.bf16.gmra.mrb[24].mxu1 %v5647_v62  ;;  %v4857_v62 = vld [vmem:[%s6861_s9 + $0x54] ss:$8 sps:$4 sm:$0xff]  }
 0x37a   :  { %1836 = vmatpush1.bf16.msra.mxu1 %v4846_v39  ;;  %1863 = vmatprep.mubr.bf16.mxu1 %v1146_v59  ;;  %v4876_v59 = vld [vmem:[%s6861_s9 + $0xc0] ss:$8 sps:$4 sm:$0xff]  }
 0x37b   :  { %1837 = vmatprep.subr.bf16.mxu1 %v4851_v44 }
 0x37e   :  { %1838 = vmatpush1.bf16.msra.mxu1 %v4849_v0 }
 0x37f   :  { %1839 = vmatprep.subr.bf16.mxu1 %v4854_v40 }
 0x382   :  { %1840 = vmatpush1.bf16.msra.mxu1 %v4852_v41 }
 0x383   :  { %1841 = vmatprep.subr.bf16.mxu1 %v4857_v62  ;;  %v5092_v62 = vld [vmem:[%s6892_s1] sm:$0xff]  }
 0x386   :  { %1842 = vmatpush1.bf16.msra.mxu1 %v4855_v42  ;;  %v4890_v42 = vld [vmem:[%s6862_s11 + $0x4] ss:$8 sps:$4 sm:$0xff]  }
 0x387   :  { %1843 = vmatprep.subr.bf16.mxu1 %v4860_v43  ;;  %v5093_v43 = vld [vmem:[%s6892_s1 + $0x8] sm:$0xff]  }
 0x38a   :  { %1844 = vmatpush1.bf16.msra.mxu1 %v4858_v45  ;;  %v4888_v45 = vld [vmem:[%s6862_s11] ss:$8 sps:$4 sm:$0xff]  }
 0x38b   :  { %1845 = vmatprep.subr.bf16.mxu1 %v4863_v46  ;;  %v4893_v46 = vld [vmem:[%s6862_s11 + $0x14] ss:$8 sps:$4 sm:$0xff]  }
 0x38e   :  { %1846 = vmatpush1.bf16.msra.mxu1 %v4861_v48  ;;  %v5094_v48 = vld [vmem:[%s6893_s7] sm:$0xff]  }
 0x38f   :  { %1847 = vmatprep.subr.bf16.mxu1 %v4866_v49  ;;  %v4891_v49 = vld [vmem:[%s6862_s11 + $0x10] ss:$8 sps:$4 sm:$0xff]  }
 0x392   :  { %1848 = vmatpush1.bf16.msra.mxu1 %v4864_v50  ;;  %v4896_v50 = vld [vmem:[%s6862_s11 + $0x24] ss:$8 sps:$4 sm:$0xff]  }
 0x393   :  { %1849 = vmatprep.subr.bf16.mxu1 %v4869_v52  ;;  %v4894_v52 = vld [vmem:[%s6862_s11 + $0x20] ss:$8 sps:$4 sm:$0xff]  }
 0x396   :  { %1850 = vmatpush1.bf16.msra.mxu1 %v4867_v54  ;;  %v5095_v54 = vld [vmem:[%s6893_s7 + $0x8] sm:$0xff]  }
 0x397   :  { %1851 = vmatprep.subr.bf16.mxu1 %v4872_v56  ;;  %v4897_v56 = vld [vmem:[%s6862_s11 + $0x30] ss:$8 sps:$4 sm:$0xff]  }
 0x39a   :  { %1852 = vmatpush1.bf16.msra.mxu1 %v4870_v8  ;;  %v4902_v8 = vld [vmem:[%s6862_s11 + $0x44] ss:$8 sps:$4 sm:$0xff]  }
 0x39b   :  { %1853 = vmatprep.subr.bf16.mxu1 %v4875_v9  ;;  %v4900_v9 = vld [vmem:[%s6862_s11 + $0x40] ss:$8 sps:$4 sm:$0xff]  }
 0x39e   :  { %1854 = vmatpush1.bf16.msra.mxu1 %v4873_v12  ;;  %v4905_v12 = vld [vmem:[%s6862_s11 + $0x54] ss:$8 sps:$4 sm:$0xff]  }
 0x39f   :  { %1855 = vmatprep.subr.bf16.mxu1 %v4878_v53  ;;  %v4903_v53 = vld [vmem:[%s6862_s11 + $0x50] ss:$8 sps:$4 sm:$0xff]  }
 0x3a2   :  { %1856 = vmatpush1.bf16.msra.mxu1 %v4876_v59  ;;  %v4908_v59 = vld [vmem:[%s6862_s11 + $0x64] ss:$8 sps:$4 sm:$0xff]  }
 0x3a3   :  { %1857 = vmatprep.subr.bf16.mxu1 %v4881_v63  ;;  %v4906_v63 = vld [vmem:[%s6862_s11 + $0x60] ss:$8 sps:$4 sm:$0xff]  }
 0x3a6   :  { %1858 = vmatpush1.bf16.msra.mxu1 %v4879_v1  ;;  %v4911_v1 = vld [vmem:[%s6862_s11 + $0x74] ss:$8 sps:$4 sm:$0xff]  }
 0x3a7   :  { %1859 = vmatprep.subr.bf16.mxu1 %v4884_v20  ;;  %v4909_v20 = vld [vmem:[%s6862_s11 + $0x70] ss:$8 sps:$4 sm:$0xff]  }
 0x3aa   :  { %1860 = vmatpush1.bf16.msra.mxu1 %v4882_v47  ;;  %v4914_v47 = vld [vmem:[%s6862_s11 + $0x84] ss:$8 sps:$4 sm:$0xff]  }
 0x3ab   :  { %1861 = vmatprep.subr.bf16.mxu1 %v4887_v16  ;;  %v4912_v16 = vld [vmem:[%s6862_s11 + $0x80] ss:$8 sps:$4 sm:$0xff]  }
 0x3ae   :  { %1862 = vmatpush1.bf16.msra.mxu1 %v4885_v19  ;;  %v4917_v19 = vld [vmem:[%s6862_s11 + $0x94] ss:$8 sps:$4 sm:$0xff]  }
 0x3b1   :  { %1864 = vmatmul.mubr.bf16.vlgmr.msra.gmra.mrb[20].mxu1 %v1145_v61 }
 0x3b2   :  { %1873 = vmatprep.mubr.bf16.mxu1 %v1148_v15 }
 0x3b9   :  { %1874 = vmatmul.mubr.bf16.gmra.mrb[24].mxu1 %v1147_v10 }
 0x484   :  { %v1865_v25 = vpop.f32.mrb[20].mxu1 }
 0x485   :  { %v1904_v26 = vadd.f32 %v1897_v22, %v1865_v25  ;;  %v1867_v57 = vpop.f32.mrb[21].mxu1  ;;  %v4923_v25 = vld [vmem:[%s6862_s11 + $0xb4] ss:$8 sps:$4 sm:$0xff]  }
 0x486   :  { %v1905_v60 = vadd.f32 %v1901_v24, %v1867_v57  ;;  %v1869_v61 = vpop.f32.mrb[22].mxu1  ;;  %v4926_v57 = vld [vmem:[%s6862_s11 + $0xc4] ss:$8 sps:$4 sm:$0xff]  }
 0x487   :  { %v1920_v27 = vmul.f32 0.05, %v1904_v26  ;;  %v1906_v5 = vadd.f32 %v1897_v22, %v1869_v61  ;;  %v1871_v14 = vpop.f32.mrb[23].mxu1  ;;  %vm1912_vm9 = vcmp.ge.f32.partialorder %v1904_v26, 0.0  ;;  %v4929_v61 = vld [vmem:[%s6862_s11 + $0xd4] ss:$8 sps:$4 sm:$0xff]  }
 0x488   :  { %v1921_v15 = vmul.f32 0.05, %v1905_v60  ;;  %v1907_v13 = vadd.f32 %v1901_v24, %v1871_v14  ;;  %vm1913_vm10 = vcmp.ge.f32.partialorder %v1905_v60, 0.0  ;;  %v4930_v14 = vld [vmem:[%s6862_s11 + $0xe0] ss:$8 sps:$4 sm:$0xff]  }
 0x489   :  { %vm1914_vm11 = vcmp.ge.f32.partialorder %v1906_v5, 0.0  ;;  %v1922_v6 = vmul.f32 0.05, %v1906_v5  ;;  %v1928_v28 = vsel %vm1912_vm9, %v1904_v26, %v1920_v27  ;;  %v4921_v26 = vld [vmem:[%s6862_s11 + $0xb0] ss:$8 sps:$4 sm:$0xff]  }
 0x48a   :  { %vm1915_vm12 = vcmp.ge.f32.partialorder %v1907_v13, 0.0  ;;  %v1923_v10 = vmul.f32 0.05, %v1907_v13  ;;  %v1929_v31 = vsel %vm1913_vm10, %v1905_v60, %v1921_v15  ;;  %v4924_v60 = vld [vmem:[%s6862_s11 + $0xc0] ss:$8 sps:$4 sm:$0xff]  }
 0x48b   :  { %v1930_v4 = vsel %vm1914_vm11, %v1906_v5, %v1922_v6  ;;  %v4927_v27 = vld [vmem:[%s6862_s11 + $0xd0] ss:$8 sps:$4 sm:$0xff]   ;;  %v4932_v5 = vld [vmem:[%s6862_s11 + $0xe4] ss:$8 sps:$4 sm:$0xff]   ;;  %v4935_v15 = vld [vmem:[%s6862_s11 + $0xf4] ss:$8 sps:$4 sm:$0xff]  }
 0x48c   :  { %v6003_v29 = vpack.c.bf16 %v1930_v4, %v1928_v28  ;;  %v1875_v30 = vpop.f32.mrb[24].mxu1  ;;  %v1931_v32 = vsel %vm1915_vm12, %v1907_v13, %v1923_v10  ;;  %v4933_v13 = vld [vmem:[%s6862_s11 + $0xf0] ss:$8 sps:$4 sm:$0xff]   ;;  %v4938_v6 = vld [vmem:[%s6864_s12 + $0x4] ss:$8 sps:$4 sm:$0xff]  }
 0x48d   :  { %v1908_v34 = vadd.f32 %v1897_v22, %v1875_v30  ;;  %v1877_v55 = vpop.f32.mrb[25].mxu1  ;;  %v6005_v58 = vpack.c.bf16 %v1931_v32, %v1929_v31 }
 0x48e   :  { %v1909_v7 = vadd.f32 %v1901_v24, %v1877_v55  ;;  %v1879_v18 = vpop.f32.mrb[26].mxu1  ;;  %v4941_v55 = vld [vmem:[%s6864_s12 + $0x14] ss:$8 sps:$4 sm:$0xff]  }
 0x48f   :  { %v1924_v2 = vmul.f32 0.05, %v1908_v34  ;;  %v1910_v11 = vadd.f32 %v1897_v22, %v1879_v18  ;;  %v1881_v17 = vpop.f32.mrb[27].mxu1  ;;  %1940 = vmatprep.subr.bf16.mxu0 %v6005_v58  ;;  %vm1916_vm13 = vcmp.ge.f32.partialorder %v1908_v34, 0.0  ;;  %v4920_v22 = vld [vmem:[%s6862_s11 + $0xa4] ss:$8 sps:$4 sm:$0xff]  }
 0x490   :  { %v1925_v23 = vmul.f32 0.05, %v1909_v7  ;;  %v1911_v35 = vadd.f32 %v1901_v24, %v1881_v17  ;;  %1941 = vmatpush1.bf16.msra.mxu0 %v6003_v29  ;;  %vm1917_vm14 = vcmp.ge.f32.partialorder %v1909_v7, 0.0  ;;  %v4918_v24 = vld [vmem:[%s6862_s11 + $0xa0] ss:$8 sps:$4 sm:$0xff]  }
 0x491   :  { %vm1918_vm15 = vcmp.ge.f32.partialorder %v1910_v11, 0.0  ;;  %v1926_v36 = vmul.f32 0.05, %v1910_v11  ;;  %v1932_v38 = vsel %vm1916_vm13, %v1908_v34, %v1924_v2  ;;  %v4936_v34 = vld [vmem:[%s6864_s12] ss:$8 sps:$4 sm:$0xff]  }
 0x492   :  { %vm1919_vm1 = vcmp.ge.f32.partialorder %v1911_v35, 0.0  ;;  %v1927_v37 = vmul.f32 0.05, %v1911_v35  ;;  %v1933_v0 = vsel %vm1917_vm14, %v1909_v7, %v1925_v23  ;;  %v4939_v18 = vld [vmem:[%s6864_s12 + $0x10] ss:$8 sps:$4 sm:$0xff]  }
 0x493   :  { %v1934_v39 = vsel %vm1918_vm15, %v1910_v11, %v1926_v36  ;;  %v4944_v11 = vld [vmem:[%s6864_s12 + $0x24] ss:$8 sps:$4 sm:$0xff]  }
 0x494   :  { %v6009_v44 = vpack.c.bf16 %v1934_v39, %v1932_v38  ;;  %v1935_v40 = vsel %vm1919_vm1, %v1911_v35, %v1927_v37  ;;  %v4942_v37 = vld [vmem:[%s6864_s12 + $0x20] ss:$8 sps:$4 sm:$0xff]   ;;  %v4947_v38 = vld [vmem:[%s6864_s12 + $0x34] ss:$8 sps:$4 sm:$0xff]   ;;  %v4945_v39 = vld [vmem:[%s6864_s12 + $0x30] ss:$8 sps:$4 sm:$0xff]  }
 0x495   :  { %v6011_v41 = vpack.c.bf16 %v1935_v40, %v1933_v0  ;;  %v4950_v0 = vld [vmem:[%s6864_s12 + $0x44] ss:$8 sps:$4 sm:$0xff]  }
 0x497   :  { %1942 = vmatprep.subr.bf16.mxu0 %v6011_v41 }
 0x498   :  { %1943 = vmatpush1.bf16.msra.mxu0 %v6009_v44 }
 0x499   :  { %1997 = vmatprep.subr.bf16.mxu0 %v6005_v58 }
 0x49b   :  { %4120 = vmatmul.mubr.msk.bf16.vlgmr.msra.gmra.mrb[20].mxu0 %vm107_vm0, %v5092_v62  ;;  %v2857_v62 = vld [vmem:[%s6866_s19 + $0x80] sm:$0xff] }
 0x49c   :  { %1998 = vmatpush1.bf16.msra.mxu0 %v6003_v29  ;;  %1982 = vmatprep.mubr.bf16.mxu0 %v5104_v3 }
 0x49d   :  { %1999 = vmatprep.subr.bf16.mxu0 %v6011_v41 }
 0x4a0   :  { %2000 = vmatpush1.bf16.msra.mxu0 %v6009_v44 }
 0x4a1   :  { %2278 = vmatprep.subr.bf16.mxu0 %v4890_v42  ;;  %v2858_v42 = vld [vmem:[%s6866_s19 + $0x88] sm:$0xff] }
 0x4a3   :  { %4121 = vmatmul.mubr.msk.bf16.gmra.mrb[24].mxu0 %vm107_vm0, %v5093_v43  ;;  %v2841_v43 = vld [vmem:[%s6866_s19] sm:$0xff] }
 0x4a4   :  { %2029 = vmatprep.mubr.bf16.mxu0 %v5104_v3 }
 0x4ab   :  { %4122 = vmatmul.mubr.msk.bf16.vlgmr.msra.gmra.mrb[28].mxu0 %vm107_vm0, %v5094_v48  ;;  %v2859_v48 = vld [vmem:[%s6866_s19 + $0x90] sm:$0xff] }
 0x4ac   :  { %2039 = vmatprep.mubr.bf16.mxu0 %v5104_v3  ;;  %2279 = vmatpush1.bf16.msra.mxu0 %v4888_v45  ;;  %v4899_v3 = vld [vmem:[%s6862_s11 + $0x34] ss:$8 sps:$4 sm:$0xff]  }
 0x4ad   :  { %2280 = vmatprep.subr.bf16.mxu0 %v4893_v46  ;;  %v6175_v46 = vpack.c.bf16 %v2858_v42, %v2857_v62  ;;  %v5005_v62 = vld [vmem:[%s6865_s13 + $0x70] ss:$8 sps:$4 sm:$0xff]   ;;  %v5010_v42 = vld [vmem:[%s6865_s13 + $0x84] ss:$8 sps:$4 sm:$0xff]  }
 0x4af   :  { %4397 = vmatprep.subr.bf16.mxu1 %v6175_v46 }
 0x4b0   :  { %2281 = vmatpush1.bf16.msra.mxu0 %v4891_v49  ;;  %v2860_v49 = vld [vmem:[%s6866_s19 + $0x98] sm:$0xff] }
 0x4b1   :  { %2282 = vmatprep.subr.bf16.mxu0 %v4896_v50 }
 0x4b3   :  { %4123 = vmatmul.mubr.msk.bf16.gmra.mrb[32].mxu0 %vm107_vm0, %v5095_v54  ;;  %v2843_v54 = vld [vmem:[%s6866_s19 + $0x10] sm:$0xff] }
 0x4b4   :  { %2283 = vmatpush1.bf16.msra.mxu0 %v4894_v52 }
 0x4b5   :  { %2284 = vmatprep.subr.bf16.mxu0 %v4899_v3  ;;  %v6190_v3 = vpack.c.bf16 %v2860_v49, %v2859_v48  ;;  %v5016_v48 = vld [vmem:[%s6865_s13 + $0xa4] ss:$8 sps:$4 sm:$0xff]   ;;  %v5014_v49 = vld [vmem:[%s6865_s13 + $0xa0] ss:$8 sps:$4 sm:$0xff]  }
 0x4b8   :  { %2285 = vmatpush1.bf16.msra.mxu0 %v4897_v56  ;;  %v2844_v56 = vld [vmem:[%s6866_s19 + $0x18] sm:$0xff] }
 0x4b9   :  { %2286 = vmatprep.subr.bf16.mxu0 %v4902_v8 }
 0x4bc   :  { %2287 = vmatpush1.bf16.msra.mxu0 %v4900_v9 }
 0x4bd   :  { %2288 = vmatprep.subr.bf16.mxu0 %v4905_v12  ;;  %v4948_v12 = vld [vmem:[%s6864_s12 + $0x40] ss:$8 sps:$4 sm:$0xff]  }
 0x4c0   :  { %2289 = vmatpush1.bf16.msra.mxu0 %v4903_v53 }
 0x4c1   :  { %2290 = vmatprep.subr.bf16.mxu0 %v4908_v59  ;;  %v6209_v59 = vpack.c.bf16 %v2844_v56, %v2843_v54  ;;  %v5019_v54 = vld [vmem:[%s6865_s13 + $0xb4] ss:$8 sps:$4 sm:$0xff]   ;;  %v5017_v56 = vld [vmem:[%s6865_s13 + $0xb0] ss:$8 sps:$4 sm:$0xff]  }
 0x4c4   :  { %2291 = vmatpush1.bf16.msra.mxu0 %v4906_v63  ;;  %v4953_v63 = vld [vmem:[%s6864_s12 + $0x54] ss:$8 sps:$4 sm:$0xff]  }
 0x4c5   :  { %2292 = vmatprep.subr.bf16.mxu0 %v4911_v1  ;;  %v4951_v1 = vld [vmem:[%s6864_s12 + $0x50] ss:$8 sps:$4 sm:$0xff]  }
 0x4c8   :  { %2293 = vmatpush1.bf16.msra.mxu0 %v4909_v20 }
 0x4c9   :  { %2294 = vmatprep.subr.bf16.mxu0 %v4914_v47  ;;  %v4956_v47 = vld [vmem:[%s6864_s12 + $0x64] ss:$8 sps:$4 sm:$0xff]  }
 0x4cc   :  { %2295 = vmatpush1.bf16.msra.mxu0 %v4912_v16 }
 0x4cd   :  { %2296 = vmatprep.subr.bf16.mxu0 %v4917_v19 }
 0x4d0   :  { %2297 = vmatpush1.bf16.msra.mxu0 %v4915_v21 }
 0x4d1   :  { %2298 = vmatprep.subr.bf16.mxu0 %v4920_v22 }
 0x4d4   :  { %2299 = vmatpush1.bf16.msra.mxu0 %v4918_v24  ;;  %v4954_v24 = vld [vmem:[%s6864_s12 + $0x60] ss:$8 sps:$4 sm:$0xff]  }
 0x4d5   :  { %2300 = vmatprep.subr.bf16.mxu0 %v4923_v25 }
 0x4d8   :  { %2301 = vmatpush1.bf16.msra.mxu0 %v4921_v26  ;;  %v4959_v26 = vld [vmem:[%s6864_s12 + $0x74] ss:$8 sps:$4 sm:$0xff]  }
 0x4d9   :  { %2302 = vmatprep.subr.bf16.mxu0 %v4926_v57  ;;  %v4957_v57 = vld [vmem:[%s6864_s12 + $0x70] ss:$8 sps:$4 sm:$0xff]  }
 0x4dc   :  { %2303 = vmatpush1.bf16.msra.mxu0 %v4924_v60  ;;  %v4962_v60 = vld [vmem:[%s6864_s12 + $0x84] ss:$8 sps:$4 sm:$0xff]  }
 0x4dd   :  { %2304 = vmatprep.subr.bf16.mxu0 %v4929_v61  ;;  %v4960_v61 = vld [vmem:[%s6864_s12 + $0x80] ss:$8 sps:$4 sm:$0xff]  }
 0x4e0   :  { %2305 = vmatpush1.bf16.msra.mxu0 %v4927_v27  ;;  %v4965_v27 = vld [vmem:[%s6864_s12 + $0x94] ss:$8 sps:$4 sm:$0xff]  }
 0x4e1   :  { %2306 = vmatprep.subr.bf16.mxu0 %v4932_v5  ;;  %v4963_v5 = vld [vmem:[%s6864_s12 + $0x90] ss:$8 sps:$4 sm:$0xff]  }
 0x4e4   :  { %2307 = vmatpush1.bf16.msra.mxu0 %v4930_v14  ;;  %v4968_v14 = vld [vmem:[%s6864_s12 + $0xa4] ss:$8 sps:$4 sm:$0xff]  }
 0x4e5   :  { %2308 = vmatprep.subr.bf16.mxu0 %v4935_v15  ;;  %v4966_v15 = vld [vmem:[%s6864_s12 + $0xa0] ss:$8 sps:$4 sm:$0xff]  }
 0x4e8   :  { %2309 = vmatpush1.bf16.msra.mxu0 %v4933_v13  ;;  %v4971_v13 = vld [vmem:[%s6864_s12 + $0xb4] ss:$8 sps:$4 sm:$0xff]  }
 0x4e9   :  { %2491 = vmatprep.subr.bf16.mxu0 %v4938_v6  ;;  %v4969_v6 = vld [vmem:[%s6864_s12 + $0xb0] ss:$8 sps:$4 sm:$0xff]  }
 0x56e   :  { %v1974_v10 = vpop.f32.mrb[20].mxu0 }
 0x56f   :  { %v1976_v28 = vpop.f32.mrb[21].mxu0 }
 0x570   :  { %v1978_v4 = vpop.f32.mrb[22].mxu0 }
 0x571   :  { %v1993_v30 = vpack.c.bf16 %v1978_v4, %v1974_v10  ;;  %v1980_v31 = vpop.f32.mrb[23].mxu0  ;;  %v4974_v10 = vld [vmem:[%s6864_s12 + $0xc4] ss:$8 sps:$4 sm:$0xff]   ;;  %v4977_v4 = vld [vmem:[%s6864_s12 + $0xd4] ss:$8 sps:$4 sm:$0xff]  }
 0x572   :  { %v1994_v32 = vpack.c.bf16 %v1980_v31, %v1976_v28  ;;  %v4972_v28 = vld [vmem:[%s6864_s12 + $0xc0] ss:$8 sps:$4 sm:$0xff]   ;;  %v4980_v31 = vld [vmem:[%s6864_s12 + $0xe4] ss:$8 sps:$4 sm:$0xff]  }
 0x574   :  { %2310 = vmatprep.mubr.bf16.mxu0 %v1994_v32  ;;  %v4978_v32 = vld [vmem:[%s6864_s12 + $0xe0] ss:$8 sps:$4 sm:$0xff]  }
 0x575   :  { %2311 = vmatmul.mubr.bf16.vlgmr.msra.gmra.mrb[36].mxu0 %v1993_v30  ;;  %v4975_v30 = vld [vmem:[%s6864_s12 + $0xd0] ss:$8 sps:$4 sm:$0xff]  }
 0x576   :  { %2492 = vmatpush1.bf16.msra.mxu0 %v4936_v34  ;;  %v1984_v7 = vpop.f32.mrb[24].mxu0  ;;  %v4983_v34 = vld [vmem:[%s6864_s12 + $0xf4] ss:$8 sps:$4 sm:$0xff]  }
 0x577   :  { %v1986_v2 = vpop.f32.mrb[25].mxu0  ;;  %2493 = vmatprep.subr.bf16.mxu0 %v4941_v55  ;;  %v4981_v55 = vld [vmem:[%s6864_s12 + $0xf0] ss:$8 sps:$4 sm:$0xff]  }
 0x578   :  { %v1988_v17 = vpop.f32.mrb[26].mxu0 }
 0x579   :  { %v1995_v23 = vpack.c.bf16 %v1988_v17, %v1984_v7  ;;  %v1990_v35 = vpop.f32.mrb[27].mxu0  ;;  %v4986_v7 = vld [vmem:[%s6865_s13 + $0x4] ss:$8 sps:$4 sm:$0xff]  }
 0x57a   :  { %v1996_v36 = vpack.c.bf16 %v1990_v35, %v1986_v2  ;;  %2494 = vmatpush1.bf16.msra.mxu0 %v4939_v18  ;;  %v4984_v18 = vld [vmem:[%s6865_s13] ss:$8 sps:$4 sm:$0xff]   ;;  %v4989_v2 = vld [vmem:[%s6865_s13 + $0x14] ss:$8 sps:$4 sm:$0xff]   ;;  %v4992_v17 = vld [vmem:[%s6865_s13 + $0x24] ss:$8 sps:$4 sm:$0xff]  }
 0x57b   :  { %2495 = vmatprep.subr.bf16.mxu0 %v4944_v11  ;;  %v4987_v11 = vld [vmem:[%s6865_s13 + $0x10] ss:$8 sps:$4 sm:$0xff]   ;;  %v4998_v35 = vld [vmem:[%s6865_s13 + $0x44] ss:$8 sps:$4 sm:$0xff]  }
 0x57c   :  { %2320 = vmatprep.mubr.bf16.mxu0 %v1996_v36  ;;  %v4996_v36 = vld [vmem:[%s6865_s13 + $0x40] ss:$8 sps:$4 sm:$0xff]  }
 0x57d   :  { %2321 = vmatmul.mubr.bf16.gmra.mrb[40].mxu0 %v1995_v23  ;;  %v4990_v23 = vld [vmem:[%s6865_s13 + $0x20] ss:$8 sps:$4 sm:$0xff]  }
 0x57e   :  { %2496 = vmatpush1.bf16.msra.mxu0 %v4942_v37  ;;  %2523 = vmatprep.mubr.bf16.mxu0 %v6005_v58  ;;  %v6162_v40 = vpop.f32.mrb[28].mxu0  ;;  %v2842_v58 = vld [vmem:[%s6866_s19 + $0x8] sm:$0xff]  ;;  %v4999_v37 = vld [vmem:[%s6865_s13 + $0x50] ss:$8 sps:$4 sm:$0xff]  }
 0x57f   :  { %2497 = vmatprep.subr.bf16.mxu0 %v4947_v38  ;;  %v6173_v45 = vpop.f32.mrb[29].mxu0  ;;  %v6188_v52 = vpack.c.bf16 %v2842_v58, %v2841_v43  ;;  %v5004_v38 = vld [vmem:[%s6865_s13 + $0x64] ss:$8 sps:$4 sm:$0xff]   ;;  %v5008_v43 = vld [vmem:[%s6865_s13 + $0x80] ss:$8 sps:$4 sm:$0xff]  }
 0x580   :  { %v6186_v50 = vpop.f32.mrb[30].mxu0  ;;  %v5011_v58 = vld [vmem:[%s6865_s13 + $0x90] ss:$8 sps:$4 sm:$0xff]  }
 0x581   :  { %v2050_v8 = vpack.c.bf16 %v6186_v50, %v6162_v40  ;;  %v6200_v9 = vpop.f32.mrb[31].mxu0  ;;  %4399 = vmatpush3.bf16.msra.mxu1 %v6188_v52  ;;  %v2845_v40 = vld [vmem:[%s6866_s19 + $0x20] sm:$0xff]  ;;  %v2846_v50 = vld [vmem:[%s6866_s19 + $0x28] sm:$0xff] }
 0x582   :  { %2498 = vmatpush1.bf16.msra.mxu0 %v4945_v39  ;;  %v2051_v53 = vpack.c.bf16 %v6200_v9, %v6173_v45  ;;  %4401 = vmatprep.subr.bf16.mxu1 %v6190_v3  ;;  %v5002_v39 = vld [vmem:[%s6865_s13 + $0x60] ss:$8 sps:$4 sm:$0xff]   ;;  %v5013_v45 = vld [vmem:[%s6865_s13 + $0x94] ss:$8 sps:$4 sm:$0xff]   ;;  %v5022_v9 = vld [vmem:[%s6865_s13 + $0xc4] ss:$8 sps:$4 sm:$0xff]  }
 0x583   :  { %2499 = vmatprep.subr.bf16.mxu0 %v4950_v0  ;;  %v5007_v0 = vld [vmem:[%s6865_s13 + $0x74] ss:$8 sps:$4 sm:$0xff]  }
 0x585   :  { %4403 = vmatpush3.bf16.msra.mxu1 %v6209_v59 }
 0x586   :  { %2500 = vmatpush1.bf16.msra.mxu0 %v4948_v12  ;;  %v6218_v20 = vpop.f32.mrb[32].mxu0  ;;  %v5020_v12 = vld [vmem:[%s6865_s13 + $0xc0] ss:$8 sps:$4 sm:$0xff]  }
 0x587   :  { %2501 = vmatprep.subr.bf16.mxu0 %v4953_v63  ;;  %v6224_v16 = vpop.f32.mrb[33].mxu0  ;;  %v5023_v63 = vld [vmem:[%s6865_s13 + $0xd0] ss:$8 sps:$4 sm:$0xff]  }
 0x588   :  { %v6226_v19 = vpop.f32.mrb[34].mxu0 }
 0x589   :  { %v2052_v21 = vpack.c.bf16 %v6226_v19, %v6218_v20  ;;  %v6230_v22 = vpop.f32.mrb[35].mxu0  ;;  %v2863_v20 = vld [vmem:[%s6866_s19 + $0xb0] sm:$0xff] }
 0x58a   :  { %2502 = vmatpush1.bf16.msra.mxu0 %v4951_v1  ;;  %v2053_v25 = vpack.c.bf16 %v6230_v22, %v6224_v16  ;;  %v5028_v1 = vld [vmem:[%s6865_s13 + $0xe4] ss:$8 sps:$4 sm:$0xff]   ;;  %v2864_v16 = vld [vmem:[%s6866_s19 + $0xb8] sm:$0xff] }
 0x58b   :  { %2503 = vmatprep.subr.bf16.mxu0 %v4956_v47  ;;  %v5026_v47 = vld [vmem:[%s6865_s13 + $0xe0] ss:$8 sps:$4 sm:$0xff]   ;;  %v6426_v19 = vpack.c.bf16 %v2864_v16, %v2863_v20  ;;  %v2848_v22 = vld [vmem:[%s6866_s19 + $0x38] sm:$0xff] }
 0x58e   :  { %2504 = vmatpush1.bf16.msra.mxu0 %v4954_v24  ;;  %v5031_v24 = vld [vmem:[%s6865_s13 + $0xf4] ss:$8 sps:$4 sm:$0xff]  }
 0x58f   :  { %2505 = vmatprep.subr.bf16.mxu0 %v4959_v26  ;;  %v5029_v26 = vld [vmem:[%s6865_s13 + $0xf0] ss:$8 sps:$4 sm:$0xff]  }
 0x592   :  { %2506 = vmatpush1.bf16.msra.mxu0 %v4957_v57  ;;  %v2861_v57 = vld [vmem:[%s6866_s19 + $0xa0] sm:$0xff] }
 0x593   :  { %2507 = vmatprep.subr.bf16.mxu0 %v4962_v60  ;;  %v2862_v60 = vld [vmem:[%s6866_s19 + $0xa8] sm:$0xff] }
 0x596   :  { %2508 = vmatpush1.bf16.msra.mxu0 %v4960_v61  ;;  %v6408_v61 = vpack.c.bf16 %v2862_v60, %v2861_v57 }
 0x597   :  { %2509 = vmatprep.subr.bf16.mxu0 %v4965_v27  ;;  %v2865_v27 = vld [vmem:[%s6866_s19 + $0xc0] sm:$0xff] }
 0x598   :  { %4405 = vmatprep.subr.bf16.mxu1 %v6408_v61 }
 0x59a   :  { %2510 = vmatpush1.bf16.msra.mxu0 %v4963_v5  ;;  %v2866_v5 = vld [vmem:[%s6866_s19 + $0xc8] sm:$0xff] }
 0x59b   :  { %2511 = vmatprep.subr.bf16.mxu0 %v4968_v14  ;;  %v6444_v14 = vpack.c.bf16 %v2866_v5, %v2865_v27 }
 0x59e   :  { %2512 = vmatpush1.bf16.msra.mxu0 %v4966_v15  ;;  %v2849_v15 = vld [vmem:[%s6866_s19 + $0x40] sm:$0xff] }
 0x59f   :  { %2513 = vmatprep.subr.bf16.mxu0 %v4971_v13  ;;  %v2850_v13 = vld [vmem:[%s6866_s19 + $0x48] sm:$0xff] }
 0x5a2   :  { %2514 = vmatpush1.bf16.msra.mxu0 %v4969_v6  ;;  %v6452_v6 = vpack.c.bf16 %v2850_v13, %v2849_v15 }
 0x5a3   :  { %2515 = vmatprep.subr.bf16.mxu0 %v4974_v10  ;;  %v2867_v10 = vld [vmem:[%s6866_s19 + $0xd0] sm:$0xff] }
 0x5a6   :  { %2516 = vmatpush1.bf16.msra.mxu0 %v4972_v28  ;;  %v2868_v28 = vld [vmem:[%s6866_s19 + $0xd8] sm:$0xff] }
 0x5a7   :  { %2517 = vmatprep.subr.bf16.mxu0 %v4977_v4  ;;  %v6462_v4 = vpack.c.bf16 %v2868_v28, %v2867_v10 }
 0x5aa   :  { %2518 = vmatpush1.bf16.msra.mxu0 %v4975_v30  ;;  %v2851_v30 = vld [vmem:[%s6866_s19 + $0x50] sm:$0xff] }
 0x5ab   :  { %2519 = vmatprep.subr.bf16.mxu0 %v4980_v31  ;;  %v2852_v31 = vld [vmem:[%s6866_s19 + $0x58] sm:$0xff] }
 0x5ae   :  { %2520 = vmatpush1.bf16.msra.mxu0 %v4978_v32  ;;  %v6470_v32 = vpack.c.bf16 %v2852_v31, %v2851_v30 }
 0x5af   :  { %2521 = vmatprep.subr.bf16.mxu0 %v4983_v34  ;;  %v2869_v34 = vld [vmem:[%s6866_s19 + $0xe0] sm:$0xff] }
 0x5b2   :  { %2522 = vmatpush1.bf16.msra.mxu0 %v4981_v55  ;;  %v2870_v55 = vld [vmem:[%s6866_s19 + $0xe8] sm:$0xff] }
 0x5b3   :  { %2736 = vmatprep.subr.bf16.mxu0 %v4986_v7  ;;  %v6480_v7 = vpack.c.bf16 %v2870_v55, %v2869_v34 }
 0x5b5   :  { %2524 = vmatmul.mubr.bf16.vlgmr.msra.gmra.mrb[36].mxu0 %v6003_v29  ;;  %v4995_v29 = vld [vmem:[%s6865_s13 + $0x34] ss:$8 sps:$4 sm:$0xff]  }
 0x5b6   :  { %2533 = vmatprep.mubr.bf16.mxu0 %v6011_v41  ;;  %2737 = vmatpush1.bf16.msra.mxu0 %v4984_v18  ;;  %v4993_v41 = vld [vmem:[%s6865_s13 + $0x30] ss:$8 sps:$4 sm:$0xff]   ;;  %v2853_v18 = vld [vmem:[%s6866_s19 + $0x60] sm:$0xff] }
 0x5b7   :  { %2738 = vmatprep.subr.bf16.mxu0 %v4989_v2  ;;  %v2854_v2 = vld [vmem:[%s6866_s19 + $0x68] sm:$0xff] }
 0x5ba   :  { %2739 = vmatpush1.bf16.msra.mxu0 %v4987_v11  ;;  %v6488_v11 = vpack.c.bf16 %v2854_v2, %v2853_v18  ;;  %v2874_v2 = vld [vmem:[%s6868_s20 + $0x8] sm:$0xff] }
 0x5bb   :  { %2740 = vmatprep.subr.bf16.mxu0 %v4992_v17  ;;  %v2871_v17 = vld [vmem:[%s6866_s19 + $0xf0] sm:$0xff] }
 0x5bd   :  { %2534 = vmatmul.mubr.bf16.gmra.mrb[40].mxu0 %v6009_v44  ;;  %v5001_v44 = vld [vmem:[%s6865_s13 + $0x54] ss:$8 sps:$4 sm:$0xff]  }
 0x5be   :  { %2741 = vmatpush1.bf16.msra.mxu0 %v4990_v23  ;;  %2768 = vmatprep.mubr.bf16.mxu0 %v2051_v53  ;;  %v5025_v53 = vld [vmem:[%s6865_s13 + $0xd4] ss:$8 sps:$4 sm:$0xff]  }
 0x5bf   :  { %2742 = vmatprep.subr.bf16.mxu0 %v4995_v29  ;;  %v2872_v23 = vld [vmem:[%s6866_s19 + $0xf8] sm:$0xff] }
 0x5c0   :  { %v6498_v29 = vpack.c.bf16 %v2872_v23, %v2871_v17  ;;  %v2876_v17 = vld [vmem:[%s6868_s20 + $0x18] sm:$0xff] }
 0x5c1   :  { %v6541_v23 = vpack.c.bf16 %v2876_v17, %v2874_v2 }
 0x5c2   :  { %2743 = vmatpush1.bf16.msra.mxu0 %v4993_v41  ;;  %v2855_v41 = vld [vmem:[%s6866_s19 + $0x70] sm:$0xff] }
 0x5c3   :  { %2744 = vmatprep.subr.bf16.mxu0 %v4998_v35  ;;  %v2856_v35 = vld [vmem:[%s6866_s19 + $0x78] sm:$0xff] }
 0x5c6   :  { %2745 = vmatpush1.bf16.msra.mxu0 %v4996_v36  ;;  %v6506_v36 = vpack.c.bf16 %v2856_v35, %v2855_v41  ;;  %v2873_v41 = vld [vmem:[%s6868_s20] sm:$0xff]  ;;  %v2875_v35 = vld [vmem:[%s6868_s20 + $0x10] sm:$0xff] }
 0x5c7   :  { %2746 = vmatprep.subr.bf16.mxu0 %v5001_v44  ;;  %v2797_v44 = vld [vmem:[%s6867_s14] sm:$0x3] }
 0x5ca   :  { %2747 = vmatpush1.bf16.msra.mxu0 %v4999_v37  ;;  %v2802_v37 = vrot.slane %v2797_v44, %v5630_v33 }
 0x5cb   :  { %2748 = vmatprep.subr.bf16.mxu0 %v5004_v38  ;;  %v2806_v38 = vrot.slane %v2797_v44, %v5635_v51  ;;  %v6549_v44 = vpack.c.bf16 %v2875_v35, %v2873_v41 }
 0x5ce   :  { %2749 = vmatpush1.bf16.msra.mxu0 %v5002_v39 }
 0x5cf   :  { %2750 = vmatprep.subr.bf16.mxu0 %v5007_v0 }
 0x5d2   :  { %2751 = vmatpush1.bf16.msra.mxu0 %v5005_v62 }
 0x5d3   :  { %2752 = vmatprep.subr.bf16.mxu0 %v5010_v42 }
 0x5d6   :  { %2753 = vmatpush1.bf16.msra.mxu0 %v5008_v43 }
 0x5d7   :  { %2754 = vmatprep.subr.bf16.mxu0 %v5013_v45 }
 0x5da   :  { %2755 = vmatpush1.bf16.msra.mxu0 %v5011_v58 }
 0x5db   :  { %2756 = vmatprep.subr.bf16.mxu0 %v5016_v48 }
 0x5de   :  { %2757 = vmatpush1.bf16.msra.mxu0 %v5014_v49 }
 0x5df   :  { %2758 = vmatprep.subr.bf16.mxu0 %v5019_v54 }
 0x5e2   :  { %2759 = vmatpush1.bf16.msra.mxu0 %v5017_v56 }
 0x5e3   :  { %2760 = vmatprep.subr.bf16.mxu0 %v5022_v9 }
 0x5e6   :  { %2761 = vmatpush1.bf16.msra.mxu0 %v5020_v12 }
 0x5e7   :  { %2762 = vmatprep.subr.bf16.mxu0 %v5025_v53 }
 0x5ea   :  { %2763 = vmatpush1.bf16.msra.mxu0 %v5023_v63 }
 0x5eb   :  { %2764 = vmatprep.subr.bf16.mxu0 %v5028_v1 }
 0x5ee   :  { %2765 = vmatpush1.bf16.msra.mxu0 %v5026_v47 }
 0x5ef   :  { %2766 = vmatprep.subr.bf16.mxu0 %v5031_v24 }
 0x5f2   :  { %2767 = vmatpush1.bf16.msra.mxu0 %v5029_v26 }
 0x5f5   :  { %2769 = vmatmul.mubr.bf16.vlgmr.msra.gmra.mrb[36].mxu0 %v2050_v8  ;;  %v6416_v8 = vpack.c.bf16 %v2846_v50, %v2845_v40 }
 0x5f6   :  { %2778 = vmatprep.mubr.bf16.mxu0 %v2053_v25 }
 0x5f7   :  { %4407 = vmatpush3.bf16.msra.mxu1 %v6416_v8 }
 0x5f8   :  { %4409 = vmatprep.subr.bf16.mxu1 %v6426_v19 }
 0x5fd   :  { %2779 = vmatmul.mubr.bf16.gmra.mrb[40].mxu0 %v2052_v21  ;;  %v2847_v21 = vld [vmem:[%s6866_s19 + $0x30] sm:$0xff] }
 0x5fe   :  { %v6434_v25 = vpack.c.bf16 %v2848_v22, %v2847_v21 }
 0x600   :  { %4411 = vmatpush3.bf16.msra.mxu1 %v6434_v25 }
 0x601   :  { %4413 = vmatprep.subr.bf16.mxu1 %v6444_v14 }
 0x604   :  { %4415 = vmatpush3.bf16.msra.mxu1 %v6452_v6 }
 0x605   :  { %4417 = vmatprep.subr.bf16.mxu1 %v6462_v4 }
 0x608   :  { %4419 = vmatpush3.bf16.msra.mxu1 %v6470_v32 }
 0x609   :  { %4421 = vmatprep.subr.bf16.mxu1 %v6480_v7 }
 0x60c   :  { %4423 = vmatpush3.bf16.msra.mxu1 %v6488_v11 }
 0x60d   :  { %4425 = vmatprep.subr.bf16.mxu1 %v6498_v29 }
 0x610   :  { %4427 = vmatpush3.bf16.msra.mxu1 %v6506_v36 }
 0x611   :  { %4429 = vmatprep.subr.bf16.mxu1 %v6541_v23 }
 0x6c8   :  { %v2770_v39 = vpop.f32.mrb[36].mxu0 }
 0x6c9   :  { %v2809_v0 = vadd.f32 %v2802_v37, %v2770_v39  ;;  %v2772_v62 = vpop.f32.mrb[37].mxu0 }
 0x6ca   :  { %v2810_v42 = vadd.f32 %v2806_v38, %v2772_v62  ;;  %v2774_v43 = vpop.f32.mrb[38].mxu0 }
 0x6cb   :  { %v2825_v45 = vmul.f32 0.05, %v2809_v0  ;;  %v2811_v58 = vadd.f32 %v2802_v37, %v2774_v43  ;;  %v2776_v48 = vpop.f32.mrb[39].mxu0  ;;  %vm2817_vm0 = vcmp.ge.f32.partialorder %v2809_v0, 0.0 }
 0x6cc   :  { %v2826_v49 = vmul.f32 0.05, %v2810_v42  ;;  %v2812_v54 = vadd.f32 %v2806_v38, %v2776_v48  ;;  %vm2818_vm2 = vcmp.ge.f32.partialorder %v2810_v42, 0.0 }
 0x6cd   :  { %vm2819_vm3 = vcmp.ge.f32.partialorder %v2811_v58, 0.0  ;;  %v2827_v56 = vmul.f32 0.05, %v2811_v58  ;;  %v6515_v12 = vsel %vm2817_vm0, %v2809_v0, %v2825_v45 }
 0x6ce   :  { %vm2820_vm4 = vcmp.ge.f32.partialorder %v2812_v54, 0.0  ;;  %v2828_v9 = vmul.f32 0.05, %v2812_v54  ;;  %v6519_v63 = vsel %vm2818_vm2, %v2810_v42, %v2826_v49 }
 0x6cf   :  { %v6517_v53 = vsel %vm2819_vm3, %v2811_v58, %v2827_v56 }
 0x6d0   :  { %v2877_v1 = vadd.f32 %v6517_v53, %v6515_v12  ;;  %v6523_v47 = vsel %vm2820_vm4, %v2812_v54, %v2828_v9  ;;  %v2780_v24 = vpop.f32.mrb[40].mxu0 }
 0x6d1   :  { %v2884_v26 = vadd.f32 %v6523_v47, %v6519_v63  ;;  %v6527_v57 = vadd.f32 %v2802_v37, %v2780_v24  ;;  %v2782_v60 = vpop.f32.mrb[41].mxu0 }
 0x6d2   :  { %v2878_v40 = vrot.slane %v2877_v1, 4  ;;  %v6529_v50 = vadd.f32 %v2806_v38, %v2782_v60  ;;  %v2784_v20 = vpop.f32.mrb[42].mxu0 }
 0x6d3   :  { %v2885_v16 = vrot.slane %v2884_v26, 4  ;;  %v6531_v21 = vadd.f32 %v2802_v37, %v2784_v20  ;;  %v2786_v22 = vpop.f32.mrb[43].mxu0  ;;  %v5105_v37 = vmov 0.0   ;;  %vm2821_vm13 = vcmp.ge.f32.partialorder %v6527_v57, 0.0 }
 0x6d4   :  { %v2879_v27 = vadd.f32 %v2878_v40, %v2877_v1  ;;  %v6533_v5 = vadd.f32 %v2806_v38, %v2786_v22  ;;  %vm2822_vm11 = vcmp.ge.f32.partialorder %v6529_v50, 0.0 }
 0x6d5   :  { %v2886_v15 = vadd.f32 %v2885_v16, %v2884_v26  ;;  %vm2823_vm12 = vcmp.ge.f32.partialorder %v6531_v21, 0.0 }
 0x6d6   :  { %v2880_v13 = vrot.slane %v2879_v27, 2  ;;  %vm2824_vm10 = vcmp.ge.f32.partialorder %v6533_v5, 0.0 }
 0x6d7   :  { %v2887_v10 = vrot.slane %v2886_v15, 2 }
 0x6d8   :  { %v2881_v28 = vadd.f32 %v2880_v13, %v2879_v27 }
 0x6d9   :  { %v2888_v30 = vadd.f32 %v2887_v10, %v2886_v15 }
 0x6da   :  { %v2882_v31 = vrot.slane %v2881_v28, 1 }
 0x6db   :  { %v2889_v34 = vrot.slane %v2888_v30, 1 }
 0x6dc   :  { %v2883_v18 = vadd.f32 %v2882_v31, %v2881_v28 }
 0x6dd   :  { %v2890_v55 = vadd.f32 %v2889_v34, %v2888_v30 }
 0x6df   :  { %2955 = vmatprep.mubr.f32.mxu1 %v2890_v55 }
 0x6e0   :  { %2956 = vmatmul.mubr.f32.vlgmr.msra.gmra.mrb[28].mxu1 %v2883_v18  ;;  %v28_v18 = vstv %s6869_s16 }
 0x6e1   :  { %4431 = vmatpush1.bf16.msra.mxu1 %v6549_v44  ;;  %3030 = vmatprep.mubr.f32.mxu1 %v5105_v37  ;;  %29 = vst [vmem:[#allocation2] sm:$0x1] %v28_v18 }
 0x6e2   :  { %4433 = vmatprep.subr.bf16.mxu1 %v6175_v46 }
 0x7b3   :  { %v4288_v38 = vpop.f32.mrb[28].mxu1 }
 0x7b4   :  { %v4289_v39 = vpop.f32.mrb[29].mxu1 }
 0x7b5   :  { %v4290_v0 = vadd.f32 %v4289_v39, %v4288_v38 }
 0x7b7   :  { %v6555_v62 = vmul.f32 0.00390625, %v4290_v0 }
 0x7b9   :  { %4220 = vmatmul.mubr.msk.f32.vlgmr.msra.gmra.mrb[30].mxu1 %vm2962_vm5, %v6555_v62 }
 0x7ba   :  { %4435 = vmatpush3.bf16.msra.mxu1 %v6188_v52 }
 0x7bb   :  { %4437 = vmatprep.subr.bf16.mxu1 %v6190_v3 }
 0x7be   :  { %4439 = vmatpush3.bf16.msra.mxu1 %v6209_v59 }
 0x7bf   :  { %4441 = vmatprep.subr.bf16.mxu1 %v6408_v61 }
 0x7c2   :  { %4443 = vmatpush3.bf16.msra.mxu1 %v6416_v8 }
 0x7c3   :  { %4445 = vmatprep.subr.bf16.mxu1 %v6426_v19 }
 0x7c6   :  { %4447 = vmatpush3.bf16.msra.mxu1 %v6434_v25 }
 0x7c7   :  { %4449 = vmatprep.subr.bf16.mxu1 %v6444_v14 }
 0x7ca   :  { %4451 = vmatpush3.bf16.msra.mxu1 %v6452_v6 }
 0x7cb   :  { %4453 = vmatprep.subr.bf16.mxu1 %v6462_v4 }
 0x7ce   :  { %4455 = vmatpush3.bf16.msra.mxu1 %v6470_v32 }
 0x7cf   :  { %4457 = vmatprep.subr.bf16.mxu1 %v6480_v7 }
 0x7d2   :  { %4459 = vmatpush3.bf16.msra.mxu1 %v6488_v11 }
 0x7d3   :  { %4461 = vmatprep.subr.bf16.mxu1 %v6498_v29 }
 0x7d6   :  { %4463 = vmatpush3.bf16.msra.mxu1 %v6506_v36 }
 0x7d7   :  { %4465 = vmatprep.subr.bf16.mxu1 %v6541_v23 }
 0x88c   :  { %v3032_v42 = vpop.f32.mrb[30].mxu1 }
 0x88d   :  { %v3040_v43 = vrot.slane %v3032_v42, %v5630_v33  ;;  %v3034_v45 = vpop.f32.mrb[31].mxu1 }
 0x88e   :  { %v3044_v58 = vrot.slane %v3034_v45, %v5630_v33  ;;  %v6590_v45 = vld [vmem:[%s6870_s15] sm:$0x1] }
 0x88f   :  { %v3045_v48 = vsub.f32 %v6515_v12, %v3040_v43  ;;  %v3047_v49 = vsub.f32 %v6517_v53, %v3040_v43 }
 0x890   :  { %v3046_v54 = vsub.f32 %v6519_v63, %v3044_v58  ;;  %v3048_v56 = vsub.f32 %v6523_v47, %v3044_v58 }
 0x891   :  { %v3049_v9 = vmul.f32 %v3045_v48, %v3045_v48  ;;  %v3051_v1 = vmul.f32 %v3047_v49, %v3047_v49 }
 0x892   :  { %v3050_v24 = vmul.f32 %v3046_v54, %v3046_v54  ;;  %v3052_v26 = vmul.f32 %v3048_v56, %v3048_v56  ;;  %v6595_v54 = vld [vmem:[#allocation2] sm:$0x1] }
 0x893   :  { %v3053_v60 = vadd.f32 %v3051_v1, %v3049_v9 }
 0x894   :  { %v3060_v40 = vadd.f32 %v3052_v26, %v3050_v24  ;;  %v6601_v26 = vld [vmem:[%s6871_s17] sm:$0x1] }
 0x895   :  { %v3054_v20 = vrot.slane %v3053_v60, 4 }
 0x896   :  { %v3061_v16 = vrot.slane %v3060_v40, 4 }
 0x897   :  { %v3055_v22 = vadd.f32 %v3054_v20, %v3053_v60 }
 0x898   :  { %v3062_v27 = vadd.f32 %v3061_v16, %v3060_v40  ;;  %v2832_v40 = vmul.f32 0.05, %v6533_v5  ;;  %v2830_v16 = vmul.f32 0.05, %v6529_v50 }
 0x899   :  { %v3056_v15 = vrot.slane %v3055_v22, 2 }
 0x89a   :  { %v3063_v13 = vrot.slane %v3062_v27, 2 }
 0x89b   :  { %v3057_v10 = vadd.f32 %v3056_v15, %v3055_v22 }
 0x89c   :  { %v3064_v28 = vadd.f32 %v3063_v13, %v3062_v27  ;;  %v6615_v27 = vsel %vm2824_vm10, %v6533_v5, %v2832_v40  ;;  %v6618_v13 = vsel %vm2822_vm11, %v6529_v50, %v2830_v16  ;;  %v2831_v5 = vmul.f32 0.05, %v6531_v21 }
 0x89d   :  { %v3058_v30 = vrot.slane %v3057_v10, 1  ;;  %v2829_v50 = vmul.f32 0.05, %v6527_v57 }
 0x89e   :  { %v3065_v31 = vrot.slane %v3064_v28, 1 }
 0x89f   :  { %v3059_v55 = vadd.f32 %v3058_v30, %v3057_v10 }
 0x8a0   :  { %v3066_v34 = vadd.f32 %v3065_v31, %v3064_v28  ;;  %v3266_v28 = vadd.f32 %v6615_v27, %v6618_v13 }
 0x8a2   :  { %3131 = vmatprep.mubr.f32.mxu1 %v3066_v34  ;;  %v3267_v30 = vrot.slane %v3266_v28, 4 }
 0x8a3   :  { %3132 = vmatmul.mubr.f32.vlgmr.msra.gmra.mrb[32].mxu1 %v3059_v55 }
 0x8a4   :  { %4467 = vmatpush1.bf16.msra.mxu1 %v6549_v44  ;;  %3240 = vmatprep.mubr.f32.mxu1 %v5105_v37  ;;  %v3268_v31 = vadd.f32 %v3267_v30, %v3266_v28 }
 0x8a5   :  { %4469 = vmatprep.subr.bf16.mxu1 %v6175_v46 }
 0x8a6   :  { %v3269_v18 = vrot.slane %v3268_v31, 2 }
 0x976   :  { %v4323_v2 = vpop.f32.mrb[32].mxu1 }
 0x977   :  { %v4324_v17 = vpop.f32.mrb[33].mxu1 }
 0x978   :  { %v4325_v41 = vadd.f32 %v4324_v17, %v4323_v2  ;;  %v3270_v2 = vadd.f32 %v3269_v18, %v3268_v31 }
 0x97a   :  { %v3137_v35 = vmul.f32 0.00390625, %v4325_v41  ;;  %v3271_v17 = vrot.slane %v3270_v2, 1 }
 0x97c   :  { %5080 = vrsqrt.f32 %v3137_v35  ;;  %vm3140_vm6 = vcmp.eq.f32.partialorder %v3137_v35, inf  ;;  %v3143_v0 = vand.u32 2147483648, %v3137_v35  ;;  %vm3142_vm7 = vcmp.eq.f32.partialorder %v3137_v35, 0.0 }
 0x986   :  { %v5081_v38 = vpop.eup %5080 }
 0x987   :  { %v3139_v39 = vmul.f32 %v5081_v38, %v3137_v35  ;;  %v6630_v38 = vsel %vm2823_vm12, %v6531_v21, %v2831_v5 }
 0x989   :  { %v3141_v42 = vsel %vm3140_vm6, %v3137_v35, %v3139_v39  ;;  %v3272_v35 = vadd.f32 %v3271_v17, %v3270_v2  ;;  %v6633_v39 = vsel %vm2821_vm13, %v6527_v57, %v2829_v50 }
 0x98a   :  { %v3144_v43 = vsel %vm3142_vm7, %v3143_v0, %v3141_v42  ;;  %v3259_v0 = vadd.f32 %v6630_v38, %v6633_v39 }
 0x98b   :  { %v3145_v58 = vadd.f32 %v3144_v43, %v6555_v62  ;;  %v6606_v62 = vld [vmem:[%s6872_s18] sm:$0x1] }
 0x98c   :  { %v3260_v42 = vrot.slane %v3259_v0, 4 }
 0x98d   :  { %v3147_v48 = vmul.f32 %v6590_v45, %v3145_v58 }
 0x98e   :  { %v3261_v43 = vadd.f32 %v3260_v42, %v3259_v0 }
 0x98f   :  { %v3149_v49 = vsel %vm3148_vm8, %v3147_v48, 0.0 }
 0x990   :  { %3150 = vadd.xlane.f32.xlu0 %v3149_v49  ;;  %v3262_v57 = vrot.slane %v3261_v43, 2 }
 0x992   :  { %v3263_v21 = vadd.f32 %v3262_v57, %v3261_v43 }
 0x994   :  { %v3264_v58 = vrot.slane %v3263_v21, 1 }
 0x996   :  { %v3265_v48 = vadd.f32 %v3264_v58, %v3263_v21  ;;  %v5034_v58 = vld [vmem:[%s6873_s21 + $0x4] ss:$8 sps:$4 sm:$0xff]  }
 0xa1d   :  { %v3151_v56 = vpop.xlane.xlu0 %3150 }
 0xa1e   :  { %v3153_v9 = vadd.f32 %v6595_v54, %v3151_v56 }
 0xa20   :  { %v3155_v1 = vmul.f32 0.05, %v3153_v9  ;;  %vm3154_vm9 = vcmp.ge.f32.partialorder %v3153_v9, 0.0 }
 0xa22   :  { %v3156_v24 = vsel %vm3154_vm9, %v3153_v9, %v3155_v1 }
 0xa23   :  { %3160 = vperm.xlu0 %4594, %v3156_v24  }
 0xaa2   :  { %v3161_v60 = vpop.permute.xlu0 %3160 }
 0xaa3   :  { %v3163_v20 = vmul.f32 %v3161_v60, %v6601_v26 }
 0xaa5   :  { %v3166_v22 = vadd.f32 %v6606_v62, %v3163_v20 }
 0xaa7   :  { %v3167_v15 = vsub.f32 0.0, %v3166_v22 }
 0xaa9   :  { %v3168_v10 = vmul.f32 1.442695, %v3167_v15 }
 0xaab   :  { %5082 = vpow2.f32 %v3168_v10 }
 0xab5   :  { %v5083_v34 = vpop.eup %5082 }
 0xab6   :  { %v3170_v55 = vadd.f32 1.0, %v5083_v34 }
 0xab8   :  { %5084 = vrcp.f32 %v3170_v55 }
 0xac2   :  { %v5085_v41 = vpop.eup %5084 }
 0xac3   :  { %4221 = vmatmul.mubr.msk.f32.vlgmr.msra.gmra.mrb[34].mxu1 %vm2962_vm5, %v5085_v41 }
 0xac4   :  { %4471 = vmatpush3.bf16.msra.mxu1 %v6188_v52  ;;  %3337 = vmatprep.mubr.f32.mxu1 %v3272_v35 }
 0xac5   :  { %4473 = vmatprep.subr.bf16.mxu1 %v6190_v3 }
 0xac8   :  { %4475 = vmatpush3.bf16.msra.mxu1 %v6209_v59 }
 0xac9   :  { %4477 = vmatprep.subr.bf16.mxu1 %v6408_v61 }
 0xacc   :  { %4479 = vmatpush3.bf16.msra.mxu1 %v6416_v8 }
 0xacd   :  { %4481 = vmatprep.subr.bf16.mxu1 %v6426_v19 }
 0xad0   :  { %4483 = vmatpush3.bf16.msra.mxu1 %v6434_v25 }
 0xad1   :  { %4485 = vmatprep.subr.bf16.mxu1 %v6444_v14 }
 0xad4   :  { %4487 = vmatpush3.bf16.msra.mxu1 %v6452_v6 }
 0xad5   :  { %4489 = vmatprep.subr.bf16.mxu1 %v6462_v4 }
 0xad8   :  { %4491 = vmatpush3.bf16.msra.mxu1 %v6470_v32 }
 0xad9   :  { %4493 = vmatprep.subr.bf16.mxu1 %v6480_v7 }
 0xadc   :  { %4495 = vmatpush3.bf16.msra.mxu1 %v6488_v11 }
 0xadd   :  { %4497 = vmatprep.subr.bf16.mxu1 %v6498_v29 }
 0xae0   :  { %4499 = vmatpush3.bf16.msra.mxu1 %v6506_v36 }
 0xae1   :  { %4501 = vmatprep.subr.bf16.mxu1 %v6541_v23 }
 0xae3   :  { %3338 = vmatmul.mubr.f32.vlgmr.msra.gmra.mrb[36].mxu1 %v3265_v48 }
 0xae4   :  { %4503 = vmatpush1.bf16.msra.mxu1 %v6549_v44  ;;  %3411 = vmatprep.mubr.f32.mxu1 %v5105_v37 }
 0xae5   :  { %4505 = vmatprep.subr.bf16.mxu1 %v6175_v46 }
 0xb96   :  { %v6654_v49 = vpop.f32.mrb[34].mxu1 }
 0xb97   :  { %v6656_v56 = vpop.f32.mrb[35].mxu1 }
 0xbb6   :  { %v4358_v9 = vpop.f32.mrb[36].mxu1 }
 0xbb7   :  { %v4359_v1 = vpop.f32.mrb[37].mxu1 }
 0xbb8   :  { %v4360_v24 = vadd.f32 %v4359_v1, %v4358_v9 }
 0xbba   :  { %v3343_v60 = vmul.f32 0.00390625, %v4360_v24 }
 0xbbc   :  { %4222 = vmatmul.mubr.msk.f32.vlgmr.msra.gmra.mrb[38].mxu1 %vm2962_vm5, %v3343_v60 }
 0xbbd   :  { %4507 = vmatpush3.bf16.msra.mxu1 %v6188_v52 }
 0xbbe   :  { %4509 = vmatprep.subr.bf16.mxu1 %v6190_v3 }
 0xbc1   :  { %4511 = vmatpush3.bf16.msra.mxu1 %v6209_v59 }
 0xbc2   :  { %4513 = vmatprep.subr.bf16.mxu1 %v6408_v61 }
 0xbc5   :  { %4515 = vmatpush3.bf16.msra.mxu1 %v6416_v8 }
 0xbc6   :  { %4517 = vmatprep.subr.bf16.mxu1 %v6426_v19 }
 0xbc9   :  { %4519 = vmatpush3.bf16.msra.mxu1 %v6434_v25 }
 0xbca   :  { %4521 = vmatprep.subr.bf16.mxu1 %v6444_v14 }
 0xbcd   :  { %4523 = vmatpush3.bf16.msra.mxu1 %v6452_v6 }
 0xbce   :  { %4525 = vmatprep.subr.bf16.mxu1 %v6462_v4 }
 0xbd1   :  { %4527 = vmatpush3.bf16.msra.mxu1 %v6470_v32 }
 0xbd2   :  { %4529 = vmatprep.subr.bf16.mxu1 %v6480_v7 }
 0xbd5   :  { %4531 = vmatpush3.bf16.msra.mxu1 %v6488_v11 }
 0xbd6   :  { %4533 = vmatprep.subr.bf16.mxu1 %v6498_v29 }
 0xbd9   :  { %4535 = vmatpush3.bf16.msra.mxu1 %v6506_v36 }
 0xbda   :  { %4537 = vmatprep.subr.bf16.mxu1 %v6541_v23 }
 0xc8f   :  { %v3413_v46 = vpop.f32.mrb[38].mxu1 }
 0xc90   :  { %v3421_v52 = vrot.slane %v3413_v46, %v5630_v33  ;;  %v3415_v3 = vpop.f32.mrb[39].mxu1 }
 0xc91   :  { %v3425_v59 = vrot.slane %v3415_v3, %v5630_v33 }
 0xc92   :  { %v3426_v61 = vsub.f32 %v6633_v39, %v3421_v52  ;;  %v3428_v8 = vsub.f32 %v6630_v38, %v3421_v52 }
 0xc93   :  { %v3427_v19 = vsub.f32 %v6618_v13, %v3425_v59  ;;  %v3429_v25 = vsub.f32 %v6615_v27, %v3425_v59  ;;  %v5032_v59 = vld [vmem:[%s6873_s21] ss:$8 sps:$4 sm:$0xff]  }
 0xc94   :  { %v3430_v14 = vmul.f32 %v3426_v61, %v3426_v61  ;;  %v3432_v6 = vmul.f32 %v3428_v8, %v3428_v8  ;;  %v5043_v8 = vld [vmem:[%s6873_s21 + $0x34] ss:$8 sps:$4 sm:$0xff]  }
 0xc95   :  { %v3431_v4 = vmul.f32 %v3427_v19, %v3427_v19  ;;  %v3433_v32 = vmul.f32 %v3429_v25, %v3429_v25  ;;  %v5041_v19 = vld [vmem:[%s6873_s21 + $0x30] ss:$8 sps:$4 sm:$0xff]   ;;  %v5046_v25 = vld [vmem:[%s6873_s21 + $0x44] ss:$8 sps:$4 sm:$0xff]  }
 0xc96   :  { %v3434_v7 = vadd.f32 %v3432_v6, %v3430_v14  ;;  %v5044_v14 = vld [vmem:[%s6873_s21 + $0x40] ss:$8 sps:$4 sm:$0xff]   ;;  %v5049_v6 = vld [vmem:[%s6873_s21 + $0x54] ss:$8 sps:$4 sm:$0xff]  }
 0xc97   :  { %v3441_v11 = vadd.f32 %v3433_v32, %v3431_v4  ;;  %v5047_v4 = vld [vmem:[%s6873_s21 + $0x50] ss:$8 sps:$4 sm:$0xff]   ;;  %v5052_v32 = vld [vmem:[%s6873_s21 + $0x64] ss:$8 sps:$4 sm:$0xff]  }
 0xc98   :  { %v3435_v29 = vrot.slane %v3434_v7, 4 }
 0xc99   :  { %v3442_v36 = vrot.slane %v3441_v11, 4 }
 0xc9a   :  { %v3436_v23 = vadd.f32 %v3435_v29, %v3434_v7  ;;  %v5050_v7 = vld [vmem:[%s6873_s21 + $0x60] ss:$8 sps:$4 sm:$0xff]   ;;  %v5053_v29 = vld [vmem:[%s6873_s21 + $0x70] ss:$8 sps:$4 sm:$0xff]  }
 0xc9b   :  { %v3443_v40 = vadd.f32 %v3442_v36, %v3441_v11  ;;  %v5055_v11 = vld [vmem:[%s6873_s21 + $0x74] ss:$8 sps:$4 sm:$0xff]   ;;  %v5058_v36 = vld [vmem:[%s6873_s21 + $0x84] ss:$8 sps:$4 sm:$0xff]  }
 0xc9c   :  { %v3437_v20 = vrot.slane %v3436_v23, 2 }
 0xc9d   :  { %v3444_v16 = vrot.slane %v3443_v40, 2 }
 0xc9e   :  { %v3438_v22 = vadd.f32 %v3437_v20, %v3436_v23  ;;  %v5056_v23 = vld [vmem:[%s6873_s21 + $0x80] ss:$8 sps:$4 sm:$0xff]   ;;  %v5059_v20 = vld [vmem:[%s6873_s21 + $0x90] ss:$8 sps:$4 sm:$0xff]  }
 0xc9f   :  { %v3445_v15 = vadd.f32 %v3444_v16, %v3443_v40  ;;  %v5061_v40 = vld [vmem:[%s6873_s21 + $0x94] ss:$8 sps:$4 sm:$0xff]   ;;  %v5064_v16 = vld [vmem:[%s6873_s21 + $0xa4] ss:$8 sps:$4 sm:$0xff]  }
 0xca0   :  { %v3439_v10 = vrot.slane %v3438_v22, 1 }
 0xca1   :  { %v3446_v28 = vrot.slane %v3445_v15, 1 }
 0xca2   :  { %v3440_v31 = vadd.f32 %v3439_v10, %v3438_v22  ;;  %v5062_v22 = vld [vmem:[%s6873_s21 + $0xa0] ss:$8 sps:$4 sm:$0xff]   ;;  %v5065_v10 = vld [vmem:[%s6873_s21 + $0xb0] ss:$8 sps:$4 sm:$0xff]  }
 0xca3   :  { %v3447_v30 = vadd.f32 %v3446_v28, %v3445_v15  ;;  %v5067_v15 = vld [vmem:[%s6873_s21 + $0xb4] ss:$8 sps:$4 sm:$0xff]   ;;  %v5070_v28 = vld [vmem:[%s6873_s21 + $0xc4] ss:$8 sps:$4 sm:$0xff]  }
 0xca5   :  { %3512 = vmatprep.mubr.f32.mxu1 %v3447_v30  ;;  %v5068_v30 = vld [vmem:[%s6873_s21 + $0xc0] ss:$8 sps:$4 sm:$0xff]  }
 0xca6   :  { %3513 = vmatmul.mubr.f32.vlgmr.msra.gmra.mrb[40].mxu1 %v3440_v31  ;;  %v5073_v31 = vld [vmem:[%s6873_s21 + $0xd4] ss:$8 sps:$4 sm:$0xff]  }
 0xca7   :  { %4539 = vmatpush1.bf16.msra.mxu1 %v6549_v44  ;;  %3616 = vmatprep.mubr.f32.mxu1 %v5105_v37 }
 0xca8   :  { %3843 = vmatprep.subr.bf16.mxu1 %v5034_v58  ;;  %v3671_v58 = vld [vmem:[%s6874_s22] sm:$0x3] }
 0xd79   :  { %v4393_v34 = vpop.f32.mrb[40].mxu1 }
 0xd7a   :  { %v4394_v55 = vpop.f32.mrb[41].mxu1 }
 0xd7b   :  { %v4395_v18 = vadd.f32 %v4394_v55, %v4393_v34  ;;  %v5071_v34 = vld [vmem:[%s6873_s21 + $0xd0] ss:$8 sps:$4 sm:$0xff]   ;;  %v5076_v55 = vld [vmem:[%s6873_s21 + $0xe4] ss:$8 sps:$4 sm:$0xff]  }
 0xd7d   :  { %v3518_v2 = vmul.f32 0.00390625, %v4395_v18  ;;  %v5074_v18 = vld [vmem:[%s6873_s21 + $0xe0] ss:$8 sps:$4 sm:$0xff]  }
 0xd7f   :  { %5086 = vrsqrt.f32 %v3518_v2  ;;  %vm3521_vm14 = vcmp.eq.f32.partialorder %v3518_v2, inf  ;;  %v3524_v5 = vand.u32 2147483648, %v3518_v2  ;;  %vm3523_vm15 = vcmp.eq.f32.partialorder %v3518_v2, 0.0 }
 0xd89   :  { %v5087_v17 = vpop.eup %5086 }
 0xd8a   :  { %v3520_v41 = vmul.f32 %v5087_v17, %v3518_v2  ;;  %v5079_v17 = vld [vmem:[%s6873_s21 + $0xf4] ss:$8 sps:$4 sm:$0xff]  }
 0xd8c   :  { %v3522_v35 = vsel %vm3521_vm14, %v3518_v2, %v3520_v41  ;;  %v3250_v2 = vrot.slane %v6654_v49, %v5630_v33  ;;  %v5077_v41 = vld [vmem:[%s6873_s21 + $0xf0] ss:$8 sps:$4 sm:$0xff]  }
 0xd8d   :  { %v3525_v50 = vsel %vm3523_vm15, %v3524_v5, %v3522_v35 }
 0xd8e   :  { %v3526_v0 = vadd.f32 %v3525_v50, %v3343_v60  ;;  %v3255_v5 = vmul.f32 %v3250_v2, %v6515_v12  ;;  %v3257_v35 = vmul.f32 %v3250_v2, %v6517_v53 }
 0xd90   :  { %v3527_v42 = vmul.f32 %v3526_v0, %v6590_v45  ;;  %v3635_v50 = vpack.c.bf16 %v3257_v35, %v3255_v5 }
 0xd92   :  { %v3528_v43 = vsel %vm3148_vm8, %v3527_v42, 0.0 }
 0xd93   :  { %3529 = vadd.xlane.f32.xlu1 %v3528_v43 }
 0xe20   :  { %v3530_v44 = vpop.xlane.xlu1 %3529 }
 0xe21   :  { %v3531_v37 = vadd.f32 %v3530_v44, %v6595_v54  ;;  %v3254_v54 = vrot.slane %v6656_v56, %v5630_v33  ;;  %v5038_v56 = vld [vmem:[%s6873_s21 + $0x20] ss:$8 sps:$4 sm:$0xff]  }
 0xe23   :  { %v3533_v57 = vmul.f32 0.05, %v3531_v37  ;;  %vm3532_vm1 = vcmp.ge.f32.partialorder %v3531_v37, 0.0  ;;  %v3256_v52 = vmul.f32 %v3254_v54, %v6519_v63  ;;  %v3258_v3 = vmul.f32 %v3254_v54, %v6523_v47  ;;  %v5035_v63 = vld [vmem:[%s6873_s21 + $0x10] ss:$8 sps:$4 sm:$0xff]   ;;  %v5097_v54 = vld [vmem:[%s6891_s24 + $0x8] sm:$0xff] }
 0xe24   :  { %v5040_v47 = vld [vmem:[%s6873_s21 + $0x24] ss:$8 sps:$4 sm:$0xff]  }
 0xe25   :  { %v3534_v21 = vsel %vm3532_vm1, %v3531_v37, %v3533_v57  ;;  %v3636_v61 = vpack.c.bf16 %v3258_v3, %v3256_v52 }
 0xe26   :  { %3537 = vperm.xlu1 %4595, %v3534_v21  }
 0xea5   :  { %v3538_v48 = vpop.permute.xlu1 %3537 }
 0xea6   :  { %v3540_v9 = vmul.f32 %v3538_v48, %v6601_v26  ;;  %v5037_v26 = vld [vmem:[%s6873_s21 + $0x14] ss:$8 sps:$4 sm:$0xff]   ;;  %v3676_v48 = vrot.slane %v3671_v58, %v5630_v33 }
 0xea8   :  { %v3542_v45 = vadd.f32 %v3540_v9, %v6606_v62  ;;  %v3680_v9 = vrot.slane %v3671_v58, %v5635_v51 }
 0xeaa   :  { %v3543_v1 = vsub.f32 0.0, %v3542_v45 }
 0xeac   :  { %v3544_v24 = vmul.f32 1.442695, %v3543_v1 }
 0xeae   :  { %5088 = vpow2.f32 %v3544_v24 }
 0xeb8   :  { %v5089_v60 = vpop.eup %5088 }
 0xeb9   :  { %v3546_v46 = vadd.f32 1.0, %v5089_v60 }
 0xebb   :  { %5090 = vrcp.f32 %v3546_v46 }
 0xec5   :  { %v5091_v62 = vpop.eup %5090 }
 0xec6   :  { %4223 = vmatmul.mubr.msk.f32.vlgmr.msra.gmra.mrb[42].mxu1 %vm2962_vm5, %v5091_v62 }
 0xec7   :  { %3844 = vmatpush1.bf16.msra.mxu1 %v5032_v59  ;;  %3875 = vmatprep.mubr.bf16.mxu1 %v3636_v61 }
 0xec8   :  { %3845 = vmatprep.subr.bf16.mxu1 %v5037_v26 }
 0xecb   :  { %3846 = vmatpush1.bf16.msra.mxu1 %v5035_v63 }
 0xecc   :  { %3847 = vmatprep.subr.bf16.mxu1 %v5040_v47 }
 0xecf   :  { %3848 = vmatpush1.bf16.msra.mxu1 %v5038_v56 }
 0xed0   :  { %3849 = vmatprep.subr.bf16.mxu1 %v5043_v8 }
 0xed3   :  { %3850 = vmatpush1.bf16.msra.mxu1 %v5041_v19 }
 0xed4   :  { %3851 = vmatprep.subr.bf16.mxu1 %v5046_v25 }
 0xed7   :  { %3852 = vmatpush1.bf16.msra.mxu1 %v5044_v14 }
 0xed8   :  { %3853 = vmatprep.subr.bf16.mxu1 %v5049_v6 }
 0xedb   :  { %3854 = vmatpush1.bf16.msra.mxu1 %v5047_v4 }
 0xedc   :  { %3855 = vmatprep.subr.bf16.mxu1 %v5052_v32 }
 0xedf   :  { %3856 = vmatpush1.bf16.msra.mxu1 %v5050_v7 }
 0xee0   :  { %3857 = vmatprep.subr.bf16.mxu1 %v5055_v11 }
 0xee3   :  { %3858 = vmatpush1.bf16.msra.mxu1 %v5053_v29 }
 0xee4   :  { %3859 = vmatprep.subr.bf16.mxu1 %v5058_v36 }
 0xee7   :  { %3860 = vmatpush1.bf16.msra.mxu1 %v5056_v23 }
 0xee8   :  { %3861 = vmatprep.subr.bf16.mxu1 %v5061_v40 }
 0xeeb   :  { %3862 = vmatpush1.bf16.msra.mxu1 %v5059_v20 }
 0xeec   :  { %3863 = vmatprep.subr.bf16.mxu1 %v5064_v16 }
 0xeef   :  { %3864 = vmatpush1.bf16.msra.mxu1 %v5062_v22 }
 0xef0   :  { %3865 = vmatprep.subr.bf16.mxu1 %v5067_v15 }
 0xef3   :  { %3866 = vmatpush1.bf16.msra.mxu1 %v5065_v10 }
 0xef4   :  { %3867 = vmatprep.subr.bf16.mxu1 %v5070_v28 }
 0xef7   :  { %3868 = vmatpush1.bf16.msra.mxu1 %v5068_v30 }
 0xef8   :  { %3869 = vmatprep.subr.bf16.mxu1 %v5073_v31 }
 0xefb   :  { %3870 = vmatpush1.bf16.msra.mxu1 %v5071_v34 }
 0xefc   :  { %3871 = vmatprep.subr.bf16.mxu1 %v5076_v55 }
 0xeff   :  { %3872 = vmatpush1.bf16.msra.mxu1 %v5074_v18 }
 0xf00   :  { %3873 = vmatprep.subr.bf16.mxu1 %v5079_v17 }
 0xf03   :  { %3874 = vmatpush1.bf16.msra.mxu1 %v5077_v41 }
 0xf06   :  { %3876 = vmatmul.mubr.bf16.vlgmr.msra.gmra.mrb[44].mxu1 %v3635_v50 }
 0xf99   :  { %v3618_v0 = vpop.f32.mrb[42].mxu1 }
 0xf9a   :  { %v3626_v49 = vrot.slane %v3618_v0, %v5630_v33  ;;  %v3620_v42 = vpop.f32.mrb[43].mxu1 }
 0xf9b   :  { %v3630_v43 = vrot.slane %v3620_v42, %v5630_v33 }
 0xf9c   :  { %v3631_v44 = vmul.f32 %v3626_v49, %v6633_v39  ;;  %v3633_v37 = vmul.f32 %v3626_v49, %v6630_v38 }
 0xf9d   :  { %v3632_v57 = vmul.f32 %v3630_v43, %v6618_v13  ;;  %v3634_v12 = vmul.f32 %v3630_v43, %v6615_v27  ;;  %v5096_v27 = vld [vmem:[%s6891_s24] sm:$0xff] }
 0xf9e   :  { %v3637_v53 = vpack.c.bf16 %v3633_v37, %v3631_v44 }
 0xf9f   :  { %v3638_v21 = vpack.c.bf16 %v3634_v12, %v3632_v57 }
 0xfa1   :  { %3885 = vmatprep.mubr.bf16.mxu1 %v3638_v21 }
 0xfa2   :  { %3886 = vmatmul.mubr.bf16.gmra.mrb[48].mxu1 %v3637_v53 }
 0xfd9   :  { %v3877_v45 = vpop.f32.mrb[44].mxu1 }
 0xfda   :  { %v3878_v39 = vadd.f32 %v3877_v45, %v3676_v48  ;;  %v3879_v1 = vpop.f32.mrb[45].mxu1 }
 0xfdb   :  { %v3880_v38 = vadd.f32 %v3879_v1, %v3680_v9  ;;  %v3881_v24 = vpop.f32.mrb[46].mxu1 }
 0xfdc   :  { %v3896_v13 = vadd.f32 %v5096_v27, %v3878_v39  ;;  %v3882_v60 = vadd.f32 %v3881_v24, %v3676_v48  ;;  %v3883_v46 = vpop.f32.mrb[47].mxu1 }
 0xfdd   :  { %v3897_v52 = vadd.f32 %v5097_v54, %v3880_v38  ;;  %v3884_v33 = vadd.f32 %v3883_v46, %v3680_v9 }
 0xfde   :  { %3904 = vst [vmem:[%s6875_s23] sm:$0xff] %v3896_v13 }
 0xfe5   :  { %v5098_v51 = vld [vmem:[%s6891_s24 + $0x10] sm:$0xff] }
 0xfe6   :  { %v3898_v3 = vadd.f32 %v5098_v51, %v3882_v60  ;;  %3905 = vst [vmem:[%s6875_s23 + $0x8] sm:$0xff] %v3897_v52 }
 0xfed   :  { %v5099_v59 = vld [vmem:[%s6891_s24 + $0x18] sm:$0xff] }
 0xfee   :  { %v3899_v26 = vadd.f32 %v5099_v59, %v3884_v33  ;;  %3906 = vst [vmem:[%s6875_s23 + $0x10] sm:$0xff] %v3898_v3 }
 0xff0   :  { %3907 = vst [vmem:[%s6875_s23 + $0x18] sm:$0xff] %v3899_v26 }
 0xff7   :  { %v5100_v8 = vld [vmem:[%s6891_s24 + $0x20] sm:$0xff]  ;;  %v5101_v6 = vld [vmem:[%s6891_s24 + $0x28] sm:$0xff] }
0x1075   :  { %v3887_v62 = vpop.f32.mrb[48].mxu1 }
0x1076   :  { %v3888_v61 = vadd.f32 %v3887_v62, %v3676_v48  ;;  %v3889_v63 = vpop.f32.mrb[49].mxu1 }
0x1077   :  { %v3890_v47 = vadd.f32 %v3889_v63, %v3680_v9  ;;  %v3891_v56 = vpop.f32.mrb[50].mxu1 }
0x1078   :  { %v3900_v19 = vadd.f32 %v5100_v8, %v3888_v61  ;;  %v3892_v25 = vadd.f32 %v3891_v56, %v3676_v48  ;;  %v3893_v14 = vpop.f32.mrb[51].mxu1 }
0x1079   :  { %v3901_v4 = vadd.f32 %v5101_v6, %v3890_v47  ;;  %v3894_v32 = vadd.f32 %v3893_v14, %v3680_v9 }
0x107a   :  { %3908 = vst [vmem:[%s6875_s23 + $0x20] sm:$0xff] %v3900_v19 }
0x1081   :  { %v5102_v7 = vld [vmem:[%s6891_s24 + $0x30] sm:$0xff] }
0x1082   :  { %v3902_v11 = vadd.f32 %v5102_v7, %v3892_v25  ;;  %3909 = vst [vmem:[%s6875_s23 + $0x28] sm:$0xff] %v3901_v4 }
0x1089   :  { %v5103_v29 = vld [vmem:[%s6891_s24 + $0x38] sm:$0xff] }
0x108a   :  { %v3903_v36 = vadd.f32 %v5103_v29, %v3894_v32  ;;  %3910 = vst [vmem:[%s6875_s23 + $0x30] sm:$0xff] %v3902_v11 }
0x108c   :  { %3911 = vst [vmem:[%s6875_s23 + $0x38] sm:$0xff] %v3903_v36 }

</bundles_post_ra>
